<compile_context>
chip_gen: v6e
topology: v6e:2x2x1
jax: 0.10.0
libtpu: 0.0.40
codegen_flags: <defaults>
</compile_context>

<pallas_src>
import numpy as np
from functools import partial

import jax
import jax.numpy as jnp
from jax import lax
from jax.experimental import pallas as pl
from jax.experimental.pallas import tpu as pltpu

ACT_IDENTITY, ACT_RELU, ACT_HARDSWISH, ACT_HARDSIGMOID = 0, 1, 2, 3

CP = 128                        # lane-dense padded channel width (real widths <= 96)
GEMM_ROW_CAP = 2048             # rows (pixels) per 1x1-conv GEMM tile
DW_ROW_CAP = 512                # rows per depthwise tile (k*k*CP-wide patches)
VMEM_LIMIT = 32 * 1024 * 1024   # explicit scoped-VMEM limit (safe on v5e/v6e/v7x)
BN_EPS = 1e-3


def _apply_act(y, act):
    if act == ACT_RELU:
        return jnp.maximum(y, 0.0)
    if act == ACT_HARDSWISH:            # x * relu6(x+3)/6
        return y * jnp.clip(y + 3.0, 0.0, 6.0) * (1.0 / 6.0)
    if act == ACT_HARDSIGMOID:          # relu6(x+3)/6
        return jnp.clip(y + 3.0, 0.0, 6.0) * (1.0 / 6.0)
    return y


def _round_up(x, m):
    return -(-x // m) * m


def _row_tile(hw, cap):
    """Row tile: full dim for tiny maps, else a multiple of 8 capped at `cap`."""
    if hw <= 8:
        return hw
    return min(cap, _round_up(hw, 8))


# ----------------------------------------------------------------------------
# Pallas kernels
# ----------------------------------------------------------------------------
def _gemm_stats_kernel(x_ref, w_ref, *rest, has_scale, hw, tm):
    """bf16 GEMM tile (optionally SE-scaled input) + per-tile BN partial stats."""
    if has_scale:
        s_ref, y_ref, ssum_ref, ssq_ref = rest
    else:
        y_ref, ssum_ref, ssq_ref = rest
    x = x_ref[0]                                       # (tm, K) bf16
    if has_scale:
        s = s_ref[0][0:1, :]                           # (1, CP) f32 SE gate
        x = (x.astype(jnp.float32) * s).astype(jnp.bfloat16)
    y = jnp.dot(x, w_ref[...], preferred_element_type=jnp.float32)   # (tm, CP) f32
    y_ref[0] = y.astype(y_ref.dtype)

    if hw % tm == 0:
        ym = y
    else:
        valid = hw - pl.program_id(1) * tm
        rows = lax.broadcasted_iota(jnp.int32, (tm, 1), 0)
        ym = jnp.where(rows < valid, y, 0.0)
    cols = y.shape[1]
    ssum_ref[0, 0] = jnp.broadcast_to(jnp.sum(ym, axis=0, keepdims=True), (8, cols))
    ssq_ref[0, 0] = jnp.broadcast_to(jnp.sum(ym * ym, axis=0, keepdims=True), (8, cols))


def _dw_stats_kernel(p_ref, w_ref, y_ref, ssum_ref, ssq_ref, *, kk, hw, tm):
    """Depthwise tap-accumulate (VPU, flat lane-dense bf16 patches) + BN partials."""
    w = w_ref[...].astype(jnp.float32)                 # (kk, CP)
    acc = p_ref[0, :, 0:CP].astype(jnp.float32) * w[0:1, :]
    for t in range(1, kk):
        acc = acc + p_ref[0, :, t * CP:(t + 1) * CP].astype(jnp.float32) * w[t:t + 1, :]
    y_ref[0] = acc.astype(y_ref.dtype)

    if hw % tm == 0:
        am = acc
    else:
        valid = hw - pl.program_id(1) * tm
        rows = lax.broadcasted_iota(jnp.int32, (tm, 1), 0)
        am = jnp.where(rows < valid, acc, 0.0)
    ssum_ref[0, 0] = jnp.broadcast_to(jnp.sum(am, axis=0, keepdims=True), (8, CP))
    ssq_ref[0, 0] = jnp.broadcast_to(jnp.sum(am * am, axis=0, keepdims=True), (8, CP))


def _bn_act_kernel(y_ref, sc_ref, sh_ref, *rest, act, has_res, want_pool, hw, tm):
    """Fused BN affine (precomputed scale/shift) + activation
       + optional residual add + optional SE pooling partial sums."""
    rest = list(rest)
    res_ref = rest.pop(0) if has_res else None
    o_ref = rest.pop(0)
    pool_ref = rest.pop(0) if want_pool else None

    out = y_ref[0].astype(jnp.float32) * sc_ref[...] + sh_ref[...]
    out = _apply_act(out, act)
    if has_res:
        out = out + res_ref[0].astype(jnp.float32)
    o_ref[0] = out.astype(o_ref.dtype)

    if want_pool:
        if hw % tm == 0:
            om = out
        else:
            valid = hw - pl.program_id(1) * tm
            rows = lax.broadcasted_iota(jnp.int32, (tm, 1), 0)
            om = jnp.where(rows < valid, out, 0.0)
        pool_ref[0, 0] = jnp.broadcast_to(
            jnp.sum(om, axis=0, keepdims=True), (8, out.shape[1]))


def _se_fc_kernel(pool_ref, w1_ref, b1_ref, w2_ref, b2_ref, s_ref):
    """SE gate: FC1+ReLU -> FC2+Hardsigmoid over the batched pooled matrix."""
    p = pool_ref[...].astype(jnp.bfloat16)                           # (N, CP)
    h = jnp.dot(p, w1_ref[...], preferred_element_type=jnp.float32) + b1_ref[...]
    h = jnp.maximum(h, 0.0)
    h = jnp.dot(h.astype(jnp.bfloat16), w2_ref[...],
                preferred_element_type=jnp.float32) + b2_ref[...]
    s = jnp.clip(h + 3.0, 0.0, 6.0) * (1.0 / 6.0)                    # (N, CP)
    for i in range(s.shape[0]):                                      # replicate to 8 sublanes
        s_ref[i] = jnp.broadcast_to(s[i:i + 1, :], (8, CP))


# ----------------------------------------------------------------------------
# JAX-side glue (tiny per-channel math + layout plumbing only)
# ----------------------------------------------------------------------------
def _bn_scale_shift(ssum_p, ssq_p, gamma, beta, m_real):
    """Reduce per-tile partials -> per-channel BN affine (scale, shift)."""
    ssum = jnp.sum(ssum_p[:, :, 0, :], axis=(0, 1))        # (CP,)
    ssq = jnp.sum(ssq_p[:, :, 0, :], axis=(0, 1))
    inv_m = 1.0 / float(m_real)
    mean = ssum * inv_m
    var = jnp.maximum(ssq * inv_m - mean * mean, 0.0)      # biased var (training BN)
    scale = gamma[0] * lax.rsqrt(var + BN_EPS)
    shift = beta[0] - mean * scale
    return scale[None, :], shift[None, :]                  # (1, CP) f32 each


def extract_patches(x, k, stride, dilation):
    """x: (N,H,W,C) bf16 -> taps stacked (N,Ho,Wo,k*k,C) bf16 (layout plumbing)."""
    pad = ((k - 1) // 2) * dilation
    N, H, W, C = x.shape
    xp = jnp.pad(x, ((0, 0), (pad, pad), (pad, pad), (0, 0)))
    span = dilation * (k - 1) + 1
    Ho = (H + 2 * pad - span) // stride + 1
    Wo = (W + 2 * pad - span) // stride + 1
    taps = []
    for di in range(k):
        for dj in range(k):
            i0, j0 = di * dilation, dj * dilation
            taps.append(xp[:, i0:i0 + stride * (Ho - 1) + 1:stride,
                              j0:j0 + stride * (Wo - 1) + 1:stride, :])
    return jnp.stack(taps, axis=3), Ho, Wo


# ----------------------------------------------------------------------------
# Layer wrappers
# ----------------------------------------------------------------------------
def bn_act_epilogue(y, scale, shift, act, tm, residual=None, want_pool=False):
    N, HW, C = y.shape
    T = pl.cdiv(HW, tm)
    in_specs = [pl.BlockSpec((1, tm, C), lambda n, t: (n, t, 0)),
                pl.BlockSpec((1, C), lambda n, t: (0, 0)),
                pl.BlockSpec((1, C), lambda n, t: (0, 0))]
    args = [y, scale, shift]
    if residual is not None:
        in_specs.append(pl.BlockSpec((1, tm, C), lambda n, t: (n, t, 0)))
        args.append(residual)

    out_shapes = [jax.ShapeDtypeStruct((N, HW, C), jnp.bfloat16)]
    out_specs = [pl.BlockSpec((1, tm, C), lambda n, t: (n, t, 0))]
    if want_pool:
        out_shapes.append(jax.ShapeDtypeStruct((N, T, 8, C), jnp.float32))
        out_specs.append(pl.BlockSpec((1, 1, 8, C), lambda n, t: (n, t, 0, 0)))

    outs = pl.pallas_call(
        partial(_bn_act_kernel, act=act, has_res=residual is not None,
                want_pool=want_pool, hw=HW, tm=tm),
        out_shape=tuple(out_shapes) if want_pool else out_shapes[0],
        grid=(N, T),
        in_specs=in_specs,
        out_specs=out_specs if want_pool else out_specs[0],
        compiler_params=pltpu.CompilerParams(
            dimension_semantics=("parallel", "parallel"),
            vmem_limit_bytes=VMEM_LIMIT),
    )(*args)
    if want_pool:
        return outs[0], outs[1]
    return outs, None


def gemm_bn_act(x3, p, act, se_scale=None, residual=None, want_pool=False):
    """(N, HW, K) bf16 @ (K, CP) bf16 conv + BN (batch stats) + act (+ residual)."""
    N, HW, K = x3.shape
    Cout = p["w"].shape[1]
    tm = _row_tile(HW, GEMM_ROW_CAP)
    T = pl.cdiv(HW, tm)

    in_specs = [pl.BlockSpec((1, tm, K), lambda n, t: (n, t, 0)),
                pl.BlockSpec((K, Cout), lambda n, t: (0, 0))]
    args = [x3, p["w"]]
    if se_scale is not None:
        in_specs.append(pl.BlockSpec((1, 8, Cout), lambda n, t: (n, 0, 0)))
        args.append(se_scale)

    y, ssum_p, ssq_p = pl.pallas_call(
        partial(_gemm_stats_kernel, has_scale=se_scale is not None, hw=HW, tm=tm),
        out_shape=(jax.ShapeDtypeStruct((N, HW, Cout), jnp.bfloat16),
                   jax.ShapeDtypeStruct((N, T, 8, Cout), jnp.float32),
                   jax.ShapeDtypeStruct((N, T, 8, Cout), jnp.float32)),
        grid=(N, T),
        in_specs=in_specs,
        out_specs=[pl.BlockSpec((1, tm, Cout), lambda n, t: (n, t, 0)),
                   pl.BlockSpec((1, 1, 8, Cout), lambda n, t: (n, t, 0, 0)),
                   pl.BlockSpec((1, 1, 8, Cout), lambda n, t: (n, t, 0, 0))],
        compiler_params=pltpu.CompilerParams(
            dimension_semantics=("parallel", "parallel"),
            vmem_limit_bytes=VMEM_LIMIT),
    )(*args)

    scale, shift = _bn_scale_shift(ssum_p, ssq_p, p["gamma"], p["beta"], N * HW)
    return bn_act_epilogue(y, scale, shift, act, tm,
                           residual=residual, want_pool=want_pool)


def dw_conv_bn_act(x4, p, k, stride, dilation, act, want_pool=False):
    """Depthwise kxk conv + BN + act on (N, H, W, CP) bf16 activations."""
    N = x4.shape[0]
    patches, Ho, Wo = extract_patches(x4, k, stride, dilation)
    HW = Ho * Wo
    kk = k * k
    pm = patches.reshape(N, HW, kk * CP)                # flat lane-dense bf16 patches
    tm = _row_tile(HW, DW_ROW_CAP)
    T = pl.cdiv(HW, tm)

    y, ssum_p, ssq_p = pl.pallas_call(
        partial(_dw_stats_kernel, kk=kk, hw=HW, tm=tm),
        out_shape=(jax.ShapeDtypeStruct((N, HW, CP), jnp.bfloat16),
                   jax.ShapeDtypeStruct((N, T, 8, CP), jnp.float32),
                   jax.ShapeDtypeStruct((N, T, 8, CP), jnp.float32)),
        grid=(N, T),
        in_specs=[pl.BlockSpec((1, tm, kk * CP), lambda n, t: (n, t, 0)),
                  pl.BlockSpec((kk, CP), lambda n, t: (0, 0))],
        out_specs=[pl.BlockSpec((1, tm, CP), lambda n, t: (n, t, 0)),
                   pl.BlockSpec((1, 1, 8, CP), lambda n, t: (n, t, 0, 0)),
                   pl.BlockSpec((1, 1, 8, CP), lambda n, t: (n, t, 0, 0))],
        compiler_params=pltpu.CompilerParams(
            dimension_semantics=("parallel", "parallel"),
            vmem_limit_bytes=VMEM_LIMIT),
    )(pm, p["w"])

    scale, shift = _bn_scale_shift(ssum_p, ssq_p, p["gamma"], p["beta"], N * HW)
    out, pool_p = bn_act_epilogue(y, scale, shift, act, tm, want_pool=want_pool)
    return out, pool_p, Ho, Wo


def se_gate(pool_p, hw, p):
    """pool partials (N,T,8,CP) -> per-image SE gate replicated to (N, 8, CP)."""
    pooled = jnp.sum(pool_p[:, :, 0, :], axis=1) * (1.0 / float(hw))   # (N, CP) f32
    N = pooled.shape[0]
    return pl.pallas_call(
        _se_fc_kernel,
        out_shape=jax.ShapeDtypeStruct((N, 8, CP), jnp.float32),
        grid=(1,),
        in_specs=[pl.BlockSpec((N, CP), lambda i: (0, 0)),
                  pl.BlockSpec((CP, CP), lambda i: (0, 0)),
                  pl.BlockSpec((1, CP), lambda i: (0, 0)),
                  pl.BlockSpec((CP, CP), lambda i: (0, 0)),
                  pl.BlockSpec((1, CP), lambda i: (0, 0))],
        out_specs=pl.BlockSpec((N, 8, CP), lambda i: (0, 0, 0)),
        compiler_params=pltpu.CompilerParams(vmem_limit_bytes=VMEM_LIMIT),
    )(pooled, p["w1"], p["b1"], p["w2"], p["b2"])


def cna_conv1x1(x4, p, act, se_scale=None, residual4=None):
    N, H, W, C = x4.shape
    res = None if residual4 is None else residual4.reshape(N, H * W, C)
    out, _ = gemm_bn_act(x4.reshape(N, H * W, C), p, act,
                         se_scale=se_scale, residual=res)
    return out.reshape(N, H, W, CP)


def cna_conv_spatial(x4, p, k, stride, dilation, act):
    """Full (non-depthwise) kxk conv (stem): im2col + GEMM."""
    N, _, _, C = x4.shape
    patches, Ho, Wo = extract_patches(x4, k, stride, dilation)
    pm = patches.reshape(N, Ho * Wo, k * k * C)
    out, _ = gemm_bn_act(pm, p, act)
    return out.reshape(N, Ho, Wo, CP)


def inverted_residual(x4, cfg, p):
    act = ACT_HARDSWISH if cfg.activation == "HS" else ACT_RELU
    use_res = (cfg.stride == 1) and (cfg.input_channels == cfg.out_channels)
    h = x4
    if cfg.expanded_channels != cfg.input_channels:
        h = cna_conv1x1(h, p["expand"], act)
    stride = 1 if cfg.dilation > 1 else cfg.stride
    h3, pool_p, Ho, Wo = dw_conv_bn_act(h, p["dw"], cfg.kernel, stride,
                                        cfg.dilation, act, want_pool=cfg.use_se)
    se_s = se_gate(pool_p, Ho * Wo, p["se"]) if cfg.use_se else None
    N = x4.shape[0]
    res = x4.reshape(N, -1, CP) if use_res else None
    out3, _ = gemm_bn_act(h3, p["project"], ACT_IDENTITY,
                          se_scale=se_s, residual=res)   # SE rescale fused into GEMM
    return out3.reshape(N, Ho, Wo, CP)


# ----------------------------------------------------------------------------
# Model config / params
# ----------------------------------------------------------------------------
class BlockConfig:
    def __init__(self, input_channels, kernel, expanded_channels, out_channels,
                 use_se, activation, stride):
        self.input_channels = input_channels
        self.kernel = kernel
        self.expanded_channels = expanded_channels
        self.out_channels = out_channels
        self.use_se = use_se
        self.activation = activation
        self.stride = stride
        self.is_octave = (stride == 2)
        self.dilation = 1


def make_configs():
    cfgs = [
        BlockConfig(8, 3, 8, 8, False, "RE", 1),
        BlockConfig(8, 3, 24, 12, False, "RE", 2),
        BlockConfig(12, 3, 36, 12, True, "HS", 1),
        BlockConfig(12, 5, 48, 16, True, "HS", 2),
    ]
    # mirror MobileNetV3.__init__ stride->dilation bookkeeping (default: no dilation)
    stride_to_dilation = [False, False, False]
    cur_location, cur_dilation = 0, 1
    for cfg in cfgs:
        if cfg.is_octave:
            if stride_to_dilation[cur_location]:
                cur_dilation = cur_dilation + cur_dilation
                cfg.stride = 1
            cur_location += 1
        cfg.dilation = cur_dilation
    return cfgs


def _make_divisible(v, divisor=8, min_value=None):
    if min_value is None:
        min_value = divisor
    new_v = max(min_value, int(v + divisor / 2) // divisor * divisor)
    if new_v < 0.9 * v:
        new_v += divisor
    return new_v


def _kaiming(key, shape, fan_out):
    return (jax.random.normal(key, shape, dtype=jnp.float32)
            * np.sqrt(2.0 / fan_out)).astype(jnp.float32)


def _pad_to(a, shape):
    return jnp.pad(a, [(0, t - s) for s, t in zip(a.shape, shape)])


def init_params(key, configs):
    keys = jax.random.split(key, 64)
    it = iter(range(64))
    nk = lambda: keys[next(it)]

    def bn_pair(c_real):
        # padded gamma entries are 0 so padded channels stay exactly 0 after BN
        g = _pad_to(jnp.ones((1, c_real), jnp.float32), (1, CP))
        b = jnp.zeros((1, CP), jnp.float32)
        return g, b

    params = {"blocks": []}
    c_stem = configs[0].input_channels
    g, b = bn_pair(c_stem)
    params["stem"] = dict(
        w=_pad_to(_kaiming(nk(), (3 * 3 * 3, c_stem), fan_out=c_stem * 9),
                  (3 * 3 * 3, CP)).astype(jnp.bfloat16),
        gamma=g, beta=b)

    for cfg in configs:
        p = {}
        if cfg.expanded_channels != cfg.input_channels:
            g, b = bn_pair(cfg.expanded_channels)
            p["expand"] = dict(
                w=_pad_to(_kaiming(nk(), (cfg.input_channels, cfg.expanded_channels),
                                   fan_out=cfg.expanded_channels),
                          (CP, CP)).astype(jnp.bfloat16),
                gamma=g, beta=b)
        kk = cfg.kernel * cfg.kernel
        g, b = bn_pair(cfg.expanded_channels)
        p["dw"] = dict(
            w=_pad_to(_kaiming(nk(), (kk, cfg.expanded_channels),
                               fan_out=cfg.expanded_channels * kk),
                      (kk, CP)).astype(jnp.bfloat16),
            gamma=g, beta=b)
        if cfg.use_se:
            se_c = _make_divisible(cfg.expanded_channels // 4, 8)
            p["se"] = dict(
                w1=_pad_to(_kaiming(nk(), (cfg.expanded_channels, se_c), fan_out=se_c),
                           (CP, CP)).astype(jnp.bfloat16),
                b1=jnp.zeros((1, CP), jnp.float32),
                w2=_pad_to(_kaiming(nk(), (se_c, cfg.expanded_channels),
                                    fan_out=cfg.expanded_channels),
                           (CP, CP)).astype(jnp.bfloat16),
                b2=jnp.zeros((1, CP), jnp.float32))
        g, b = bn_pair(cfg.out_channels)
        p["project"] = dict(
            w=_pad_to(_kaiming(nk(), (cfg.expanded_channels, cfg.out_channels),
                               fan_out=cfg.out_channels), (CP, CP)).astype(jnp.bfloat16),
            gamma=g, beta=b)
        params["blocks"].append(p)

    c_last = configs[-1].out_channels
    c_final = int(np.multiply(c_last, 6))
    g, b = bn_pair(c_final)
    params["final"] = dict(
        w=_pad_to(_kaiming(nk(), (c_last, c_final), fan_out=c_final),
                  (CP, CP)).astype(jnp.bfloat16),
        gamma=g, beta=b)
    return params


# ----------------------------------------------------------------------------
# Full forward (reproduces MobileNetV3._forward_impl: dict of feature maps)
# ----------------------------------------------------------------------------
def mobilenetv3_forward(params, configs, x_nchw):
    x = jnp.transpose(x_nchw, (0, 2, 3, 1)).astype(jnp.bfloat16)   # NCHW -> NHWC bf16
    ret = {}
    cur_location = 0
    # stem: CNALayer(3, C0, k=3, s=2, Hardswish)
    x = cna_conv_spatial(x, params["stem"], k=3, stride=2, dilation=1,
                         act=ACT_HARDSWISH)
    real_c = configs[0].input_channels
    for cfg, p in zip(configs, params["blocks"]):
        if cfg.is_octave:
            cur_location += 1
            ret["layer" + str(cur_location)] = jnp.transpose(
                x[..., :real_c].astype(jnp.float32), (0, 3, 1, 2))
        x = inverted_residual(x, cfg, p)
        real_c = cfg.out_channels
    # final: CNALayer(C_last, 6*C_last, k=1, Hardswish)
    x = cna_conv1x1(x, params["final"], ACT_HARDSWISH)
    c_final = int(np.multiply(configs[-1].out_channels, 6))
    ret["layer" + str(cur_location + 1)] = jnp.transpose(
        x[..., :c_final].astype(jnp.float32), (0, 3, 1, 2))
    return ret


if __name__ == "__main__":
    key = jax.random.PRNGKey(0)
    x = jax.random.normal(key, (2, 3, 16, 16), dtype=jnp.float32)   # NCHW like PyTorch

    configs = make_configs()
    params = init_params(jax.random.PRNGKey(1234), configs)

    fwd = jax.jit(lambda p, xx: mobilenetv3_forward(p, configs, xx))
    out = fwd(params, x)
    for v in out.values():
        jax.block_until_ready(v)
    print("KERNEL_OK")
</pallas_src>

<mosaic_0001>
module attributes {stable_mosaic.version = 11 : i64} {
  func.func @_gemm_stats_kernel(%arg0: i32, %arg1: i32, %arg2: memref<1x64x27xbf16, #tpu.memory_space<vmem>>, %arg3: memref<27x128xbf16, #tpu.memory_space<vmem>>, %arg4: memref<1x64x128xbf16, #tpu.memory_space<vmem>>, %arg5: memref<1x1x8x128xf32, #tpu.memory_space<vmem>>, %arg6: memref<1x1x8x128xf32, #tpu.memory_space<vmem>>) attributes {dimension_semantics = [#tpu.dimension_semantics<parallel>, #tpu.dimension_semantics<parallel>], iteration_bounds = array<i64: 2, 1>, scalar_prefetch = 0 : i64, scratch_operands = 0 : i64, tpu.core_type = #tpu.core_type<tc>, window_params = [{transform_indices = @transform_0, window_bounds = array<i64: 1, 64, 27>}, {pipeline_mode = #tpu.pipeline_mode<synchronous>, transform_indices = @transform_1, window_bounds = array<i64: 27, 128>}, {transform_indices = @transform_2, window_bounds = array<i64: 1, 64, 128>}, {transform_indices = @transform_3, window_bounds = array<i64: 1, 1, 8, 128>}, {transform_indices = @transform_4, window_bounds = array<i64: 1, 1, 8, 128>}]} {
    %c0 = arith.constant 0 : index
    %c0_0 = arith.constant 0 : index
    %c0_1 = arith.constant 0 : index
    %0 = vector.load %arg2[%c0, %c0_0, %c0_1] : memref<1x64x27xbf16, #tpu.memory_space<vmem>>, vector<1x64x27xbf16>
    %1 = vector.shape_cast %0 : vector<1x64x27xbf16> to vector<64x27xbf16>
    %c0_2 = arith.constant 0 : index
    %c0_3 = arith.constant 0 : index
    %2 = vector.load %arg3[%c0_2, %c0_3] : memref<27x128xbf16, #tpu.memory_space<vmem>>, vector<27x128xbf16>
    %cst = arith.constant dense<0.000000e+00> : vector<64x128xf32>
    %3 = tpu.matmul %1, %2, %cst {dimension_numbers = #tpu.dot_dimension_numbers<[1], [0], [0], [1], [0, 0, 1, 1], [], []>} : vector<64x27xbf16>, vector<27x128xbf16>, vector<64x128xf32> -> vector<64x128xf32>
    %4 = arith.truncf %3 : vector<64x128xf32> to vector<64x128xbf16>
    %c0_4 = arith.constant 0 : index
    %c0_5 = arith.constant 0 : index
    %c0_6 = arith.constant 0 : index
    %5 = vector.load %arg4[%c0_4, %c0_5, %c0_6] : memref<1x64x128xbf16, #tpu.memory_space<vmem>>, vector<1x64x128xbf16>
    %6 = vector.shape_cast %5 : vector<1x64x128xbf16> to vector<64x128xbf16>
    %7 = vector.shape_cast %4 : vector<64x128xbf16> to vector<1x64x128xbf16>
    tpu.vector_store %arg4[%c0_4, %c0_5, %c0_6], %7 {strides = array<i32>} : memref<1x64x128xbf16, #tpu.memory_space<vmem>>, vector<1x64x128xbf16>,
    %cst_7 = arith.constant dense<0.000000e+00> : vector<128xf32>
    %8 = vector.multi_reduction <add>, %3, %cst_7 [0] : vector<64x128xf32> to vector<128xf32>
    %9 = vector.shape_cast %8 : vector<128xf32> to vector<1x128xf32>
    %10 = vector.shape_cast %9 : vector<1x128xf32> to vector<1x128xf32>
    %11 = vector.broadcast %10 : vector<1x128xf32> to vector<8x128xf32>
    %c0_8 = arith.constant 0 : index
    %c0_9 = arith.constant 0 : index
    %c0_10 = arith.constant 0 : index
    %c0_11 = arith.constant 0 : index
    %12 = vector.load %arg5[%c0_8, %c0_9, %c0_10, %c0_11] : memref<1x1x8x128xf32, #tpu.memory_space<vmem>>, vector<1x1x8x128xf32>
    %13 = vector.shape_cast %12 : vector<1x1x8x128xf32> to vector<8x128xf32>
    %14 = vector.shape_cast %11 : vector<8x128xf32> to vector<1x1x8x128xf32>
    tpu.vector_store %arg5[%c0_8, %c0_9, %c0_10, %c0_11], %14 {strides = array<i32>} : memref<1x1x8x128xf32, #tpu.memory_space<vmem>>, vector<1x1x8x128xf32>,
    %15 = arith.mulf %3, %3 : vector<64x128xf32>
    %cst_12 = arith.constant dense<0.000000e+00> : vector<128xf32>
    %16 = vector.multi_reduction <add>, %15, %cst_12 [0] : vector<64x128xf32> to vector<128xf32>
    %17 = vector.shape_cast %16 : vector<128xf32> to vector<1x128xf32>
    %18 = vector.shape_cast %17 : vector<1x128xf32> to vector<1x128xf32>
    %19 = vector.broadcast %18 : vector<1x128xf32> to vector<8x128xf32>
    %c0_13 = arith.constant 0 : index
    %c0_14 = arith.constant 0 : index
    %c0_15 = arith.constant 0 : index
    %c0_16 = arith.constant 0 : index
    %20 = vector.load %arg6[%c0_13, %c0_14, %c0_15, %c0_16] : memref<1x1x8x128xf32, #tpu.memory_space<vmem>>, vector<1x1x8x128xf32>
    %21 = vector.shape_cast %20 : vector<1x1x8x128xf32> to vector<8x128xf32>
    %22 = vector.shape_cast %19 : vector<8x128xf32> to vector<1x1x8x128xf32>
    tpu.vector_store %arg6[%c0_13, %c0_14, %c0_15, %c0_16], %22 {strides = array<i32>} : memref<1x1x8x128xf32, #tpu.memory_space<vmem>>, vector<1x1x8x128xf32>,
    return
  }
  func.func @transform_0(%arg0: i32, %arg1: i32) -> (i32, i32, i32) {
    %c0_i32 = arith.constant 0 : i32
    %c0_i32_0 = arith.constant 0 : i32
    return %arg0, %arg1, %c0_i32 : i32, i32, i32
  }
  func.func @transform_1(%arg0: i32, %arg1: i32) -> (i32, i32) {
    %c0_i32 = arith.constant 0 : i32
    %c0_i32_0 = arith.constant 0 : i32
    %c0_i32_1 = arith.constant 0 : i32
    return %c0_i32, %c0_i32_0 : i32, i32
  }
  func.func @transform_2(%arg0: i32, %arg1: i32) -> (i32, i32, i32) {
    %c0_i32 = arith.constant 0 : i32
    %c0_i32_0 = arith.constant 0 : i32
    return %arg0, %arg1, %c0_i32 : i32, i32, i32
  }
  func.func @transform_3(%arg0: i32, %arg1: i32) -> (i32, i32, i32, i32) {
    %c0_i32 = arith.constant 0 : i32
    %c0_i32_0 = arith.constant 0 : i32
    %c0_i32_1 = arith.constant 0 : i32
    return %arg0, %arg1, %c0_i32, %c0_i32_0 : i32, i32, i32, i32
  }
  func.func @transform_4(%arg0: i32, %arg1: i32) -> (i32, i32, i32, i32) {
    %c0_i32 = arith.constant 0 : i32
    %c0_i32_0 = arith.constant 0 : i32
    %c0_i32_1 = arith.constant 0 : i32
    return %arg0, %arg1, %c0_i32, %c0_i32_0 : i32, i32, i32, i32
  }
}

module attributes {stable_mosaic.version = 11 : i64} {
  func.func @_bn_act_kernel(%arg0: i32, %arg1: i32, %arg2: memref<1x64x128xbf16, #tpu.memory_space<vmem>>, %arg3: memref<1x128xf32, #tpu.memory_space<vmem>>, %arg4: memref<1x128xf32, #tpu.memory_space<vmem>>, %arg5: memref<1x64x128xbf16, #tpu.memory_space<vmem>>) attributes {dimension_semantics = [#tpu.dimension_semantics<parallel>, #tpu.dimension_semantics<parallel>], iteration_bounds = array<i64: 2, 1>, scalar_prefetch = 0 : i64, scratch_operands = 0 : i64, tpu.core_type = #tpu.core_type<tc>, window_params = [{transform_indices = @transform_0, window_bounds = array<i64: 1, 64, 128>}, {pipeline_mode = #tpu.pipeline_mode<synchronous>, transform_indices = @transform_1, window_bounds = array<i64: 1, 128>}, {pipeline_mode = #tpu.pipeline_mode<synchronous>, transform_indices = @transform_2, window_bounds = array<i64: 1, 128>}, {transform_indices = @transform_3, window_bounds = array<i64: 1, 64, 128>}]} {
    %c0 = arith.constant 0 : index
    %c0_0 = arith.constant 0 : index
    %c0_1 = arith.constant 0 : index
    %0 = vector.load %arg2[%c0, %c0_0, %c0_1] : memref<1x64x128xbf16, #tpu.memory_space<vmem>>, vector<1x64x128xbf16>
    %1 = vector.shape_cast %0 : vector<1x64x128xbf16> to vector<64x128xbf16>
    %2 = arith.extf %1 : vector<64x128xbf16> to vector<64x128xf32>
    %c0_2 = arith.constant 0 : index
    %c0_3 = arith.constant 0 : index
    %3 = vector.load %arg3[%c0_2, %c0_3] : memref<1x128xf32, #tpu.memory_space<vmem>>, vector<1x128xf32>
    %4 = vector.broadcast %3 : vector<1x128xf32> to vector<64x128xf32>
    %5 = arith.mulf %2, %4 : vector<64x128xf32>
    %c0_4 = arith.constant 0 : index
    %c0_5 = arith.constant 0 : index
    %6 = vector.load %arg4[%c0_4, %c0_5] : memref<1x128xf32, #tpu.memory_space<vmem>>, vector<1x128xf32>
    %7 = vector.broadcast %6 : vector<1x128xf32> to vector<64x128xf32>
    %8 = arith.addf %5, %7 : vector<64x128xf32>
    %cst = arith.constant 3.000000e+00 : f32
    %9 = vector.broadcast %cst : f32 to vector<64x128xf32>
    %10 = arith.addf %8, %9 : vector<64x128xf32>
    %cst_6 = arith.constant 0.000000e+00 : f32
    %cst_7 = arith.constant 6.000000e+00 : f32
    %11 = vector.broadcast %cst_6 : f32 to vector<64x128xf32>
    %12 = arith.maximumf %11, %10 : vector<64x128xf32>
    %13 = vector.broadcast %cst_7 : f32 to vector<64x128xf32>
    %14 = arith.minimumf %13, %12 : vector<64x128xf32>
    %15 = arith.mulf %8, %14 : vector<64x128xf32>
    %cst_8 = arith.constant 0.166666672 : f32
    %16 = vector.broadcast %cst_8 : f32 to vector<64x128xf32>
    %17 = arith.mulf %15, %16 : vector<64x128xf32>
    %18 = arith.truncf %17 : vector<64x128xf32> to vector<64x128xbf16>
    %c0_9 = arith.constant 0 : index
    %c0_10 = arith.constant 0 : index
    %c0_11 = arith.constant 0 : index
    %19 = vector.load %arg5[%c0_9, %c0_10, %c0_11] : memref<1x64x128xbf16, #tpu.memory_space<vmem>>, vector<1x64x128xbf16>
    %20 = vector.shape_cast %19 : vector<1x64x128xbf16> to vector<64x128xbf16>
    %21 = vector.shape_cast %18 : vector<64x128xbf16> to vector<1x64x128xbf16>
    tpu.vector_store %arg5[%c0_9, %c0_10, %c0_11], %21 {strides = array<i32>} : memref<1x64x128xbf16, #tpu.memory_space<vmem>>, vector<1x64x128xbf16>,
    return
  }
  func.func @transform_0(%arg0: i32, %arg1: i32) -> (i32, i32, i32) {
    %c0_i32 = arith.constant 0 : i32
    %c0_i32_0 = arith.constant 0 : i32
    return %arg0, %arg1, %c0_i32 : i32, i32, i32
  }
  func.func @transform_1(%arg0: i32, %arg1: i32) -> (i32, i32) {
    %c0_i32 = arith.constant 0 : i32
    %c0_i32_0 = arith.constant 0 : i32
    %c0_i32_1 = arith.constant 0 : i32
    return %c0_i32, %c0_i32_0 : i32, i32
  }
  func.func @transform_2(%arg0: i32, %arg1: i32) -> (i32, i32) {
    %c0_i32 = arith.constant 0 : i32
    %c0_i32_0 = arith.constant 0 : i32
    %c0_i32_1 = arith.constant 0 : i32
    return %c0_i32, %c0_i32_0 : i32, i32
  }
  func.func @transform_3(%arg0: i32, %arg1: i32) -> (i32, i32, i32) {
    %c0_i32 = arith.constant 0 : i32
    %c0_i32_0 = arith.constant 0 : i32
    return %arg0, %arg1, %c0_i32 : i32, i32, i32
  }
}

module attributes {stable_mosaic.version = 11 : i64} {
  func.func @_dw_stats_kernel(%arg0: i32, %arg1: i32, %arg2: memref<1x64x1152xbf16, #tpu.memory_space<vmem>>, %arg3: memref<9x128xbf16, #tpu.memory_space<vmem>>, %arg4: memref<1x64x128xbf16, #tpu.memory_space<vmem>>, %arg5: memref<1x1x8x128xf32, #tpu.memory_space<vmem>>, %arg6: memref<1x1x8x128xf32, #tpu.memory_space<vmem>>) attributes {dimension_semantics = [#tpu.dimension_semantics<parallel>, #tpu.dimension_semantics<parallel>], iteration_bounds = array<i64: 2, 1>, scalar_prefetch = 0 : i64, scratch_operands = 0 : i64, tpu.core_type = #tpu.core_type<tc>, window_params = [{transform_indices = @transform_0, window_bounds = array<i64: 1, 64, 1152>}, {pipeline_mode = #tpu.pipeline_mode<synchronous>, transform_indices = @transform_1, window_bounds = array<i64: 9, 128>}, {transform_indices = @transform_2, window_bounds = array<i64: 1, 64, 128>}, {transform_indices = @transform_3, window_bounds = array<i64: 1, 1, 8, 128>}, {transform_indices = @transform_4, window_bounds = array<i64: 1, 1, 8, 128>}]} {
    %c0 = arith.constant 0 : index
    %c0_0 = arith.constant 0 : index
    %0 = vector.load %arg3[%c0, %c0_0] : memref<9x128xbf16, #tpu.memory_space<vmem>>, vector<9x128xbf16>
    %1 = arith.extf %0 : vector<9x128xbf16> to vector<9x128xf32>
    %c0_1 = arith.constant 0 : index
    %c0_2 = arith.constant 0 : index
    %c0_3 = arith.constant 0 : index
    %2 = vector.load %arg2[%c0_1, %c0_2, %c0_3] : memref<1x64x1152xbf16, #tpu.memory_space<vmem>>, vector<1x64x128xbf16>
    %3 = vector.shape_cast %2 : vector<1x64x128xbf16> to vector<64x128xbf16>
    %4 = arith.extf %3 : vector<64x128xbf16> to vector<64x128xf32>
    %5 = vector.extract_strided_slice %1 {offsets = [0, 0], sizes = [1, 128], strides = [1, 1]} : vector<9x128xf32> to vector<1x128xf32>
    %6 = vector.broadcast %5 : vector<1x128xf32> to vector<64x128xf32>
    %7 = arith.mulf %4, %6 : vector<64x128xf32>
    %c0_4 = arith.constant 0 : index
    %c0_5 = arith.constant 0 : index
    %c128 = arith.constant 128 : index
    %8 = vector.load %arg2[%c0_4, %c0_5, %c128] : memref<1x64x1152xbf16, #tpu.memory_space<vmem>>, vector<1x64x128xbf16>
    %9 = vector.shape_cast %8 : vector<1x64x128xbf16> to vector<64x128xbf16>
    %10 = arith.extf %9 : vector<64x128xbf16> to vector<64x128xf32>
    %11 = vector.extract_strided_slice %1 {offsets = [1, 0], sizes = [1, 128], strides = [1, 1]} : vector<9x128xf32> to vector<1x128xf32>
    %12 = vector.broadcast %11 : vector<1x128xf32> to vector<64x128xf32>
    %13 = arith.mulf %10, %12 : vector<64x128xf32>
    %14 = arith.addf %7, %13 : vector<64x128xf32>
    %c0_6 = arith.constant 0 : index
    %c0_7 = arith.constant 0 : index
    %c256 = arith.constant 256 : index
    %15 = vector.load %arg2[%c0_6, %c0_7, %c256] : memref<1x64x1152xbf16, #tpu.memory_space<vmem>>, vector<1x64x128xbf16>
    %16 = vector.shape_cast %15 : vector<1x64x128xbf16> to vector<64x128xbf16>
    %17 = arith.extf %16 : vector<64x128xbf16> to vector<64x128xf32>
    %18 = vector.extract_strided_slice %1 {offsets = [2, 0], sizes = [1, 128], strides = [1, 1]} : vector<9x128xf32> to vector<1x128xf32>
    %19 = vector.broadcast %18 : vector<1x128xf32> to vector<64x128xf32>
    %20 = arith.mulf %17, %19 : vector<64x128xf32>
    %21 = arith.addf %14, %20 : vector<64x128xf32>
    %c0_8 = arith.constant 0 : index
    %c0_9 = arith.constant 0 : index
    %c384 = arith.constant 384 : index
    %22 = vector.load %arg2[%c0_8, %c0_9, %c384] : memref<1x64x1152xbf16, #tpu.memory_space<vmem>>, vector<1x64x128xbf16>
    %23 = vector.shape_cast %22 : vector<1x64x128xbf16> to vector<64x128xbf16>
    %24 = arith.extf %23 : vector<64x128xbf16> to vector<64x128xf32>
    %25 = vector.extract_strided_slice %1 {offsets = [3, 0], sizes = [1, 128], strides = [1, 1]} : vector<9x128xf32> to vector<1x128xf32>
    %26 = vector.broadcast %25 : vector<1x128xf32> to vector<64x128xf32>
    %27 = arith.mulf %24, %26 : vector<64x128xf32>
    %28 = arith.addf %21, %27 : vector<64x128xf32>
    %c0_10 = arith.constant 0 : index
    %c0_11 = arith.constant 0 : index
    %c512 = arith.constant 512 : index
    %29 = vector.load %arg2[%c0_10, %c0_11, %c512] : memref<1x64x1152xbf16, #tpu.memory_space<vmem>>, vector<1x64x128xbf16>
    %30 = vector.shape_cast %29 : vector<1x64x128xbf16> to vector<64x128xbf16>
    %31 = arith.extf %30 : vector<64x128xbf16> to vector<64x128xf32>
    %32 = vector.extract_strided_slice %1 {offsets = [4, 0], sizes = [1, 128], strides = [1, 1]} : vector<9x128xf32> to vector<1x128xf32>
    %33 = vector.broadcast %32 : vector<1x128xf32> to vector<64x128xf32>
    %34 = arith.mulf %31, %33 : vector<64x128xf32>
    %35 = arith.addf %28, %34 : vector<64x128xf32>
    %c0_12 = arith.constant 0 : index
    %c0_13 = arith.constant 0 : index
    %c640 = arith.constant 640 : index
    %36 = vector.load %arg2[%c0_12, %c0_13, %c640] : memref<1x64x1152xbf16, #tpu.memory_space<vmem>>, vector<1x64x128xbf16>
    %37 = vector.shape_cast %36 : vector<1x64x128xbf16> to vector<64x128xbf16>
    %38 = arith.extf %37 : vector<64x128xbf16> to vector<64x128xf32>
    %39 = vector.extract_strided_slice %1 {offsets = [5, 0], sizes = [1, 128], strides = [1, 1]} : vector<9x128xf32> to vector<1x128xf32>
    %40 = vector.broadcast %39 : vector<1x128xf32> to vector<64x128xf32>
    %41 = arith.mulf %38, %40 : vector<64x128xf32>
    %42 = arith.addf %35, %41 : vector<64x128xf32>
    %c0_14 = arith.constant 0 : index
    %c0_15 = arith.constant 0 : index
    %c768 = arith.constant 768 : index
    %43 = vector.load %arg2[%c0_14, %c0_15, %c768] : memref<1x64x1152xbf16, #tpu.memory_space<vmem>>, vector<1x64x128xbf16>
    %44 = vector.shape_cast %43 : vector<1x64x128xbf16> to vector<64x128xbf16>
    %45 = arith.extf %44 : vector<64x128xbf16> to vector<64x128xf32>
    %46 = vector.extract_strided_slice %1 {offsets = [6, 0], sizes = [1, 128], strides = [1, 1]} : vector<9x128xf32> to vector<1x128xf32>
    %47 = vector.broadcast %46 : vector<1x128xf32> to vector<64x128xf32>
    %48 = arith.mulf %45, %47 : vector<64x128xf32>
    %49 = arith.addf %42, %48 : vector<64x128xf32>
    %c0_16 = arith.constant 0 : index
    %c0_17 = arith.constant 0 : index
    %c896 = arith.constant 896 : index
    %50 = vector.load %arg2[%c0_16, %c0_17, %c896] : memref<1x64x1152xbf16, #tpu.memory_space<vmem>>, vector<1x64x128xbf16>
    %51 = vector.shape_cast %50 : vector<1x64x128xbf16> to vector<64x128xbf16>
    %52 = arith.extf %51 : vector<64x128xbf16> to vector<64x128xf32>
    %53 = vector.extract_strided_slice %1 {offsets = [7, 0], sizes = [1, 128], strides = [1, 1]} : vector<9x128xf32> to vector<1x128xf32>
    %54 = vector.broadcast %53 : vector<1x128xf32> to vector<64x128xf32>
    %55 = arith.mulf %52, %54 : vector<64x128xf32>
    %56 = arith.addf %49, %55 : vector<64x128xf32>
    %c0_18 = arith.constant 0 : index
    %c0_19 = arith.constant 0 : index
    %c1024 = arith.constant 1024 : index
    %57 = vector.load %arg2[%c0_18, %c0_19, %c1024] : memref<1x64x1152xbf16, #tpu.memory_space<vmem>>, vector<1x64x128xbf16>
    %58 = vector.shape_cast %57 : vector<1x64x128xbf16> to vector<64x128xbf16>
    %59 = arith.extf %58 : vector<64x128xbf16> to vector<64x128xf32>
    %60 = vector.extract_strided_slice %1 {offsets = [8, 0], sizes = [1, 128], strides = [1, 1]} : vector<9x128xf32> to vector<1x128xf32>
    %61 = vector.broadcast %60 : vector<1x128xf32> to vector<64x128xf32>
    %62 = arith.mulf %59, %61 : vector<64x128xf32>
    %63 = arith.addf %56, %62 : vector<64x128xf32>
    %64 = arith.truncf %63 : vector<64x128xf32> to vector<64x128xbf16>
    %c0_20 = arith.constant 0 : index
    %c0_21 = arith.constant 0 : index
    %c0_22 = arith.constant 0 : index
    %65 = vector.load %arg4[%c0_20, %c0_21, %c0_22] : memref<1x64x128xbf16, #tpu.memory_space<vmem>>, vector<1x64x128xbf16>
    %66 = vector.shape_cast %65 : vector<1x64x128xbf16> to vector<64x128xbf16>
    %67 = vector.shape_cast %64 : vector<64x128xbf16> to vector<1x64x128xbf16>
    tpu.vector_store %arg4[%c0_20, %c0_21, %c0_22], %67 {strides = array<i32>} : memref<1x64x128xbf16, #tpu.memory_space<vmem>>, vector<1x64x128xbf16>,
    %cst = arith.constant dense<0.000000e+00> : vector<128xf32>
    %68 = vector.multi_reduction <add>, %63, %cst [0] : vector<64x128xf32> to vector<128xf32>
    %69 = vector.shape_cast %68 : vector<128xf32> to vector<1x128xf32>
    %70 = vector.shape_cast %69 : vector<1x128xf32> to vector<1x128xf32>
    %71 = vector.broadcast %70 : vector<1x128xf32> to vector<8x128xf32>
    %c0_23 = arith.constant 0 : index
    %c0_24 = arith.constant 0 : index
    %c0_25 = arith.constant 0 : index
    %c0_26 = arith.constant 0 : index
    %72 = vector.load %arg5[%c0_23, %c0_24, %c0_25, %c0_26] : memref<1x1x8x128xf32, #tpu.memory_space<vmem>>, vector<1x1x8x128xf32>
    %73 = vector.shape_cast %72 : vector<1x1x8x128xf32> to vector<8x128xf32>
    %74 = vector.shape_cast %71 : vector<8x128xf32> to vector<1x1x8x128xf32>
    tpu.vector_store %arg5[%c0_23, %c0_24, %c0_25, %c0_26], %74 {strides = array<i32>} : memref<1x1x8x128xf32, #tpu.memory_space<vmem>>, vector<1x1x8x128xf32>,
    %75 = arith.mulf %63, %63 : vector<64x128xf32>
    %cst_27 = arith.constant dense<0.000000e+00> : vector<128xf32>
    %76 = vector.multi_reduction <add>, %75, %cst_27 [0] : vector<64x128xf32> to vector<128xf32>
    %77 = vector.shape_cast %76 : vector<128xf32> to vector<1x128xf32>
    %78 = vector.shape_cast %77 : vector<1x128xf32> to vector<1x128xf32>
    %79 = vector.broadcast %78 : vector<1x128xf32> to vector<8x128xf32>
    %c0_28 = arith.constant 0 : index
    %c0_29 = arith.constant 0 : index
    %c0_30 = arith.constant 0 : index
    %c0_31 = arith.constant 0 : index
    %80 = vector.load %arg6[%c0_28, %c0_29, %c0_30, %c0_31] : memref<1x1x8x128xf32, #tpu.memory_space<vmem>>, vector<1x1x8x128xf32>
    %81 = vector.shape_cast %80 : vector<1x1x8x128xf32> to vector<8x128xf32>
    %82 = vector.shape_cast %79 : vector<8x128xf32> to vector<1x1x8x128xf32>
    tpu.vector_store %arg6[%c0_28, %c0_29, %c0_30, %c0_31], %82 {strides = array<i32>} : memref<1x1x8x128xf32, #tpu.memory_space<vmem>>, vector<1x1x8x128xf32>,
    return
  }
  func.func @transform_0(%arg0: i32, %arg1: i32) -> (i32, i32, i32) {
    %c0_i32 = arith.constant 0 : i32
    %c0_i32_0 = arith.constant 0 : i32
    return %arg0, %arg1, %c0_i32 : i32, i32, i32
  }
  func.func @transform_1(%arg0: i32, %arg1: i32) -> (i32, i32) {
    %c0_i32 = arith.constant 0 : i32
    %c0_i32_0 = arith.constant 0 : i32
    %c0_i32_1 = arith.constant 0 : i32
    return %c0_i32, %c0_i32_0 : i32, i32
  }
  func.func @transform_2(%arg0: i32, %arg1: i32) -> (i32, i32, i32) {
    %c0_i32 = arith.constant 0 : i32
    %c0_i32_0 = arith.constant 0 : i32
    return %arg0, %arg1, %c0_i32 : i32, i32, i32
  }
  func.func @transform_3(%arg0: i32, %arg1: i32) -> (i32, i32, i32, i32) {
    %c0_i32 = arith.constant 0 : i32
    %c0_i32_0 = arith.constant 0 : i32
    %c0_i32_1 = arith.constant 0 : i32
    return %arg0, %arg1, %c0_i32, %c0_i32_0 : i32, i32, i32, i32
  }
  func.func @transform_4(%arg0: i32, %arg1: i32) -> (i32, i32, i32, i32) {
    %c0_i32 = arith.constant 0 : i32
    %c0_i32_0 = arith.constant 0 : i32
    %c0_i32_1 = arith.constant 0 : i32
    return %arg0, %arg1, %c0_i32, %c0_i32_0 : i32, i32, i32, i32
  }
}

module attributes {stable_mosaic.version = 11 : i64} {
  func.func @_gemm_stats_kernel(%arg0: i32, %arg1: i32, %arg2: memref<1x64x128xbf16, #tpu.memory_space<vmem>>, %arg3: memref<128x128xbf16, #tpu.memory_space<vmem>>, %arg4: memref<1x64x128xbf16, #tpu.memory_space<vmem>>, %arg5: memref<1x1x8x128xf32, #tpu.memory_space<vmem>>, %arg6: memref<1x1x8x128xf32, #tpu.memory_space<vmem>>) attributes {dimension_semantics = [#tpu.dimension_semantics<parallel>, #tpu.dimension_semantics<parallel>], iteration_bounds = array<i64: 2, 1>, scalar_prefetch = 0 : i64, scratch_operands = 0 : i64, tpu.core_type = #tpu.core_type<tc>, window_params = [{transform_indices = @transform_0, window_bounds = array<i64: 1, 64, 128>}, {pipeline_mode = #tpu.pipeline_mode<synchronous>, transform_indices = @transform_1, window_bounds = array<i64: 128, 128>}, {transform_indices = @transform_2, window_bounds = array<i64: 1, 64, 128>}, {transform_indices = @transform_3, window_bounds = array<i64: 1, 1, 8, 128>}, {transform_indices = @transform_4, window_bounds = array<i64: 1, 1, 8, 128>}]} {
    %c0 = arith.constant 0 : index
    %c0_0 = arith.constant 0 : index
    %c0_1 = arith.constant 0 : index
    %0 = vector.load %arg2[%c0, %c0_0, %c0_1] : memref<1x64x128xbf16, #tpu.memory_space<vmem>>, vector<1x64x128xbf16>
    %1 = vector.shape_cast %0 : vector<1x64x128xbf16> to vector<64x128xbf16>
    %c0_2 = arith.constant 0 : index
    %c0_3 = arith.constant 0 : index
    %2 = vector.load %arg3[%c0_2, %c0_3] : memref<128x128xbf16, #tpu.memory_space<vmem>>, vector<128x128xbf16>
    %cst = arith.constant dense<0.000000e+00> : vector<64x128xf32>
    %3 = tpu.matmul %1, %2, %cst {dimension_numbers = #tpu.dot_dimension_numbers<[1], [0], [0], [1], [0, 0, 1, 1], [], []>} : vector<64x128xbf16>, vector<128x128xbf16>, vector<64x128xf32> -> vector<64x128xf32>
    %4 = arith.truncf %3 : vector<64x128xf32> to vector<64x128xbf16>
    %c0_4 = arith.constant 0 : index
    %c0_5 = arith.constant 0 : index
    %c0_6 = arith.constant 0 : index
    %5 = vector.load %arg4[%c0_4, %c0_5, %c0_6] : memref<1x64x128xbf16, #tpu.memory_space<vmem>>, vector<1x64x128xbf16>
    %6 = vector.shape_cast %5 : vector<1x64x128xbf16> to vector<64x128xbf16>
    %7 = vector.shape_cast %4 : vector<64x128xbf16> to vector<1x64x128xbf16>
    tpu.vector_store %arg4[%c0_4, %c0_5, %c0_6], %7 {strides = array<i32>} : memref<1x64x128xbf16, #tpu.memory_space<vmem>>, vector<1x64x128xbf16>,
    %cst_7 = arith.constant dense<0.000000e+00> : vector<128xf32>
    %8 = vector.multi_reduction <add>, %3, %cst_7 [0] : vector<64x128xf32> to vector<128xf32>
    %9 = vector.shape_cast %8 : vector<128xf32> to vector<1x128xf32>
    %10 = vector.shape_cast %9 : vector<1x128xf32> to vector<1x128xf32>
    %11 = vector.broadcast %10 : vector<1x128xf32> to vector<8x128xf32>
    %c0_8 = arith.constant 0 : index
    %c0_9 = arith.constant 0 : index
    %c0_10 = arith.constant 0 : index
    %c0_11 = arith.constant 0 : index
    %12 = vector.load %arg5[%c0_8, %c0_9, %c0_10, %c0_11] : memref<1x1x8x128xf32, #tpu.memory_space<vmem>>, vector<1x1x8x128xf32>
    %13 = vector.shape_cast %12 : vector<1x1x8x128xf32> to vector<8x128xf32>
    %14 = vector.shape_cast %11 : vector<8x128xf32> to vector<1x1x8x128xf32>
    tpu.vector_store %arg5[%c0_8, %c0_9, %c0_10, %c0_11], %14 {strides = array<i32>} : memref<1x1x8x128xf32, #tpu.memory_space<vmem>>, vector<1x1x8x128xf32>,
    %15 = arith.mulf %3, %3 : vector<64x128xf32>
    %cst_12 = arith.constant dense<0.000000e+00> : vector<128xf32>
    %16 = vector.multi_reduction <add>, %15, %cst_12 [0] : vector<64x128xf32> to vector<128xf32>
    %17 = vector.shape_cast %16 : vector<128xf32> to vector<1x128xf32>
    %18 = vector.shape_cast %17 : vector<1x128xf32> to vector<1x128xf32>
    %19 = vector.broadcast %18 : vector<1x128xf32> to vector<8x128xf32>
    %c0_13 = arith.constant 0 : index
    %c0_14 = arith.constant 0 : index
    %c0_15 = arith.constant 0 : index
    %c0_16 = arith.constant 0 : index
    %20 = vector.load %arg6[%c0_13, %c0_14, %c0_15, %c0_16] : memref<1x1x8x128xf32, #tpu.memory_space<vmem>>, vector<1x1x8x128xf32>
    %21 = vector.shape_cast %20 : vector<1x1x8x128xf32> to vector<8x128xf32>
    %22 = vector.shape_cast %19 : vector<8x128xf32> to vector<1x1x8x128xf32>
    tpu.vector_store %arg6[%c0_13, %c0_14, %c0_15, %c0_16], %22 {strides = array<i32>} : memref<1x1x8x128xf32, #tpu.memory_space<vmem>>, vector<1x1x8x128xf32>,
    return
  }
  func.func @transform_0(%arg0: i32, %arg1: i32) -> (i32, i32, i32) {
    %c0_i32 = arith.constant 0 : i32
    %c0_i32_0 = arith.constant 0 : i32
    return %arg0, %arg1, %c0_i32 : i32, i32, i32
  }
  func.func @transform_1(%arg0: i32, %arg1: i32) -> (i32, i32) {
    %c0_i32 = arith.constant 0 : i32
    %c0_i32_0 = arith.constant 0 : i32
    %c0_i32_1 = arith.constant 0 : i32
    return %c0_i32, %c0_i32_0 : i32, i32
  }
  func.func @transform_2(%arg0: i32, %arg1: i32) -> (i32, i32, i32) {
    %c0_i32 = arith.constant 0 : i32
    %c0_i32_0 = arith.constant 0 : i32
    return %arg0, %arg1, %c0_i32 : i32, i32, i32
  }
  func.func @transform_3(%arg0: i32, %arg1: i32) -> (i32, i32, i32, i32) {
    %c0_i32 = arith.constant 0 : i32
    %c0_i32_0 = arith.constant 0 : i32
    %c0_i32_1 = arith.constant 0 : i32
    return %arg0, %arg1, %c0_i32, %c0_i32_0 : i32, i32, i32, i32
  }
  func.func @transform_4(%arg0: i32, %arg1: i32) -> (i32, i32, i32, i32) {
    %c0_i32 = arith.constant 0 : i32
    %c0_i32_0 = arith.constant 0 : i32
    %c0_i32_1 = arith.constant 0 : i32
    return %arg0, %arg1, %c0_i32, %c0_i32_0 : i32, i32, i32, i32
  }
}

module attributes {stable_mosaic.version = 11 : i64} {
  func.func @_bn_act_kernel(%arg0: i32, %arg1: i32, %arg2: memref<1x64x128xbf16, #tpu.memory_space<vmem>>, %arg3: memref<1x128xf32, #tpu.memory_space<vmem>>, %arg4: memref<1x128xf32, #tpu.memory_space<vmem>>, %arg5: memref<1x64x128xbf16, #tpu.memory_space<vmem>>, %arg6: memref<1x64x128xbf16, #tpu.memory_space<vmem>>) attributes {dimension_semantics = [#tpu.dimension_semantics<parallel>, #tpu.dimension_semantics<parallel>], iteration_bounds = array<i64: 2, 1>, scalar_prefetch = 0 : i64, scratch_operands = 0 : i64, tpu.core_type = #tpu.core_type<tc>, window_params = [{transform_indices = @transform_0, window_bounds = array<i64: 1, 64, 128>}, {pipeline_mode = #tpu.pipeline_mode<synchronous>, transform_indices = @transform_1, window_bounds = array<i64: 1, 128>}, {pipeline_mode = #tpu.pipeline_mode<synchronous>, transform_indices = @transform_2, window_bounds = array<i64: 1, 128>}, {transform_indices = @transform_3, window_bounds = array<i64: 1, 64, 128>}, {transform_indices = @transform_4, window_bounds = array<i64: 1, 64, 128>}]} {
    %c0 = arith.constant 0 : index
    %c0_0 = arith.constant 0 : index
    %c0_1 = arith.constant 0 : index
    %0 = vector.load %arg2[%c0, %c0_0, %c0_1] : memref<1x64x128xbf16, #tpu.memory_space<vmem>>, vector<1x64x128xbf16>
    %1 = vector.shape_cast %0 : vector<1x64x128xbf16> to vector<64x128xbf16>
    %2 = arith.extf %1 : vector<64x128xbf16> to vector<64x128xf32>
    %c0_2 = arith.constant 0 : index
    %c0_3 = arith.constant 0 : index
    %3 = vector.load %arg3[%c0_2, %c0_3] : memref<1x128xf32, #tpu.memory_space<vmem>>, vector<1x128xf32>
    %4 = vector.broadcast %3 : vector<1x128xf32> to vector<64x128xf32>
    %5 = arith.mulf %2, %4 : vector<64x128xf32>
    %c0_4 = arith.constant 0 : index
    %c0_5 = arith.constant 0 : index
    %6 = vector.load %arg4[%c0_4, %c0_5] : memref<1x128xf32, #tpu.memory_space<vmem>>, vector<1x128xf32>
    %7 = vector.broadcast %6 : vector<1x128xf32> to vector<64x128xf32>
    %8 = arith.addf %5, %7 : vector<64x128xf32>
    %c0_6 = arith.constant 0 : index
    %c0_7 = arith.constant 0 : index
    %c0_8 = arith.constant 0 : index
    %9 = vector.load %arg5[%c0_6, %c0_7, %c0_8] : memref<1x64x128xbf16, #tpu.memory_space<vmem>>, vector<1x64x128xbf16>
    %10 = vector.shape_cast %9 : vector<1x64x128xbf16> to vector<64x128xbf16>
    %11 = arith.extf %10 : vector<64x128xbf16> to vector<64x128xf32>
    %12 = arith.addf %8, %11 : vector<64x128xf32>
    %13 = arith.truncf %12 : vector<64x128xf32> to vector<64x128xbf16>
    %c0_9 = arith.constant 0 : index
    %c0_10 = arith.constant 0 : index
    %c0_11 = arith.constant 0 : index
    %14 = vector.load %arg6[%c0_9, %c0_10, %c0_11] : memref<1x64x128xbf16, #tpu.memory_space<vmem>>, vector<1x64x128xbf16>
    %15 = vector.shape_cast %14 : vector<1x64x128xbf16> to vector<64x128xbf16>
    %16 = vector.shape_cast %13 : vector<64x128xbf16> to vector<1x64x128xbf16>
    tpu.vector_store %arg6[%c0_9, %c0_10, %c0_11], %16 {strides = array<i32>} : memref<1x64x128xbf16, #tpu.memory_space<vmem>>, vector<1x64x128xbf16>,
    return
  }
  func.func @transform_0(%arg0: i32, %arg1: i32) -> (i32, i32, i32) {
    %c0_i32 = arith.constant 0 : i32
    %c0_i32_0 = arith.constant 0 : i32
    return %arg0, %arg1, %c0_i32 : i32, i32, i32
  }
  func.func @transform_1(%arg0: i32, %arg1: i32) -> (i32, i32) {
    %c0_i32 = arith.constant 0 : i32
    %c0_i32_0 = arith.constant 0 : i32
    %c0_i32_1 = arith.constant 0 : i32
    return %c0_i32, %c0_i32_0 : i32, i32
  }
  func.func @transform_2(%arg0: i32, %arg1: i32) -> (i32, i32) {
    %c0_i32 = arith.constant 0 : i32
    %c0_i32_0 = arith.constant 0 : i32
    %c0_i32_1 = arith.constant 0 : i32
    return %c0_i32, %c0_i32_0 : i32, i32
  }
  func.func @transform_3(%arg0: i32, %arg1: i32) -> (i32, i32, i32) {
    %c0_i32 = arith.constant 0 : i32
    %c0_i32_0 = arith.constant 0 : i32
    return %arg0, %arg1, %c0_i32 : i32, i32, i32
  }
  func.func @transform_4(%arg0: i32, %arg1: i32) -> (i32, i32, i32) {
    %c0_i32 = arith.constant 0 : i32
    %c0_i32_0 = arith.constant 0 : i32
    return %arg0, %arg1, %c0_i32 : i32, i32, i32
  }
}

module attributes {stable_mosaic.version = 11 : i64} {
  func.func @_bn_act_kernel(%arg0: i32, %arg1: i32, %arg2: memref<1x64x128xbf16, #tpu.memory_space<vmem>>, %arg3: memref<1x128xf32, #tpu.memory_space<vmem>>, %arg4: memref<1x128xf32, #tpu.memory_space<vmem>>, %arg5: memref<1x64x128xbf16, #tpu.memory_space<vmem>>) attributes {dimension_semantics = [#tpu.dimension_semantics<parallel>, #tpu.dimension_semantics<parallel>], iteration_bounds = array<i64: 2, 1>, scalar_prefetch = 0 : i64, scratch_operands = 0 : i64, tpu.core_type = #tpu.core_type<tc>, window_params = [{transform_indices = @transform_0, window_bounds = array<i64: 1, 64, 128>}, {pipeline_mode = #tpu.pipeline_mode<synchronous>, transform_indices = @transform_1, window_bounds = array<i64: 1, 128>}, {pipeline_mode = #tpu.pipeline_mode<synchronous>, transform_indices = @transform_2, window_bounds = array<i64: 1, 128>}, {transform_indices = @transform_3, window_bounds = array<i64: 1, 64, 128>}]} {
    %c0 = arith.constant 0 : index
    %c0_0 = arith.constant 0 : index
    %c0_1 = arith.constant 0 : index
    %0 = vector.load %arg2[%c0, %c0_0, %c0_1] : memref<1x64x128xbf16, #tpu.memory_space<vmem>>, vector<1x64x128xbf16>
    %1 = vector.shape_cast %0 : vector<1x64x128xbf16> to vector<64x128xbf16>
    %2 = arith.extf %1 : vector<64x128xbf16> to vector<64x128xf32>
    %c0_2 = arith.constant 0 : index
    %c0_3 = arith.constant 0 : index
    %3 = vector.load %arg3[%c0_2, %c0_3] : memref<1x128xf32, #tpu.memory_space<vmem>>, vector<1x128xf32>
    %4 = vector.broadcast %3 : vector<1x128xf32> to vector<64x128xf32>
    %5 = arith.mulf %2, %4 : vector<64x128xf32>
    %c0_4 = arith.constant 0 : index
    %c0_5 = arith.constant 0 : index
    %6 = vector.load %arg4[%c0_4, %c0_5] : memref<1x128xf32, #tpu.memory_space<vmem>>, vector<1x128xf32>
    %7 = vector.broadcast %6 : vector<1x128xf32> to vector<64x128xf32>
    %8 = arith.addf %5, %7 : vector<64x128xf32>
    %cst = arith.constant 0.000000e+00 : f32
    %9 = vector.broadcast %cst : f32 to vector<64x128xf32>
    %10 = arith.maximumf %8, %9 : vector<64x128xf32>
    %11 = arith.truncf %10 : vector<64x128xf32> to vector<64x128xbf16>
    %c0_6 = arith.constant 0 : index
    %c0_7 = arith.constant 0 : index
    %c0_8 = arith.constant 0 : index
    %12 = vector.load %arg5[%c0_6, %c0_7, %c0_8] : memref<1x64x128xbf16, #tpu.memory_space<vmem>>, vector<1x64x128xbf16>
    %13 = vector.shape_cast %12 : vector<1x64x128xbf16> to vector<64x128xbf16>
    %14 = vector.shape_cast %11 : vector<64x128xbf16> to vector<1x64x128xbf16>
    tpu.vector_store %arg5[%c0_6, %c0_7, %c0_8], %14 {strides = array<i32>} : memref<1x64x128xbf16, #tpu.memory_space<vmem>>, vector<1x64x128xbf16>,
    return
  }
  func.func @transform_0(%arg0: i32, %arg1: i32) -> (i32, i32, i32) {
    %c0_i32 = arith.constant 0 : i32
    %c0_i32_0 = arith.constant 0 : i32
    return %arg0, %arg1, %c0_i32 : i32, i32, i32
  }
  func.func @transform_1(%arg0: i32, %arg1: i32) -> (i32, i32) {
    %c0_i32 = arith.constant 0 : i32
    %c0_i32_0 = arith.constant 0 : i32
    %c0_i32_1 = arith.constant 0 : i32
    return %c0_i32, %c0_i32_0 : i32, i32
  }
  func.func @transform_2(%arg0: i32, %arg1: i32) -> (i32, i32) {
    %c0_i32 = arith.constant 0 : i32
    %c0_i32_0 = arith.constant 0 : i32
    %c0_i32_1 = arith.constant 0 : i32
    return %c0_i32, %c0_i32_0 : i32, i32
  }
  func.func @transform_3(%arg0: i32, %arg1: i32) -> (i32, i32, i32) {
    %c0_i32 = arith.constant 0 : i32
    %c0_i32_0 = arith.constant 0 : i32
    return %arg0, %arg1, %c0_i32 : i32, i32, i32
  }
}

module attributes {stable_mosaic.version = 11 : i64} {
  func.func @_dw_stats_kernel(%arg0: i32, %arg1: i32, %arg2: memref<1x16x1152xbf16, #tpu.memory_space<vmem>>, %arg3: memref<9x128xbf16, #tpu.memory_space<vmem>>, %arg4: memref<1x16x128xbf16, #tpu.memory_space<vmem>>, %arg5: memref<1x1x8x128xf32, #tpu.memory_space<vmem>>, %arg6: memref<1x1x8x128xf32, #tpu.memory_space<vmem>>) attributes {dimension_semantics = [#tpu.dimension_semantics<parallel>, #tpu.dimension_semantics<parallel>], iteration_bounds = array<i64: 2, 1>, scalar_prefetch = 0 : i64, scratch_operands = 0 : i64, tpu.core_type = #tpu.core_type<tc>, window_params = [{transform_indices = @transform_0, window_bounds = array<i64: 1, 16, 1152>}, {pipeline_mode = #tpu.pipeline_mode<synchronous>, transform_indices = @transform_1, window_bounds = array<i64: 9, 128>}, {transform_indices = @transform_2, window_bounds = array<i64: 1, 16, 128>}, {transform_indices = @transform_3, window_bounds = array<i64: 1, 1, 8, 128>}, {transform_indices = @transform_4, window_bounds = array<i64: 1, 1, 8, 128>}]} {
    %c0 = arith.constant 0 : index
    %c0_0 = arith.constant 0 : index
    %0 = vector.load %arg3[%c0, %c0_0] : memref<9x128xbf16, #tpu.memory_space<vmem>>, vector<9x128xbf16>
    %1 = arith.extf %0 : vector<9x128xbf16> to vector<9x128xf32>
    %c0_1 = arith.constant 0 : index
    %c0_2 = arith.constant 0 : index
    %c0_3 = arith.constant 0 : index
    %2 = vector.load %arg2[%c0_1, %c0_2, %c0_3] : memref<1x16x1152xbf16, #tpu.memory_space<vmem>>, vector<1x16x128xbf16>
    %3 = vector.shape_cast %2 : vector<1x16x128xbf16> to vector<16x128xbf16>
    %4 = arith.extf %3 : vector<16x128xbf16> to vector<16x128xf32>
    %5 = vector.extract_strided_slice %1 {offsets = [0, 0], sizes = [1, 128], strides = [1, 1]} : vector<9x128xf32> to vector<1x128xf32>
    %6 = vector.broadcast %5 : vector<1x128xf32> to vector<16x128xf32>
    %7 = arith.mulf %4, %6 : vector<16x128xf32>
    %c0_4 = arith.constant 0 : index
    %c0_5 = arith.constant 0 : index
    %c128 = arith.constant 128 : index
    %8 = vector.load %arg2[%c0_4, %c0_5, %c128] : memref<1x16x1152xbf16, #tpu.memory_space<vmem>>, vector<1x16x128xbf16>
    %9 = vector.shape_cast %8 : vector<1x16x128xbf16> to vector<16x128xbf16>
    %10 = arith.extf %9 : vector<16x128xbf16> to vector<16x128xf32>
    %11 = vector.extract_strided_slice %1 {offsets = [1, 0], sizes = [1, 128], strides = [1, 1]} : vector<9x128xf32> to vector<1x128xf32>
    %12 = vector.broadcast %11 : vector<1x128xf32> to vector<16x128xf32>
    %13 = arith.mulf %10, %12 : vector<16x128xf32>
    %14 = arith.addf %7, %13 : vector<16x128xf32>
    %c0_6 = arith.constant 0 : index
    %c0_7 = arith.constant 0 : index
    %c256 = arith.constant 256 : index
    %15 = vector.load %arg2[%c0_6, %c0_7, %c256] : memref<1x16x1152xbf16, #tpu.memory_space<vmem>>, vector<1x16x128xbf16>
    %16 = vector.shape_cast %15 : vector<1x16x128xbf16> to vector<16x128xbf16>
    %17 = arith.extf %16 : vector<16x128xbf16> to vector<16x128xf32>
    %18 = vector.extract_strided_slice %1 {offsets = [2, 0], sizes = [1, 128], strides = [1, 1]} : vector<9x128xf32> to vector<1x128xf32>
    %19 = vector.broadcast %18 : vector<1x128xf32> to vector<16x128xf32>
    %20 = arith.mulf %17, %19 : vector<16x128xf32>
    %21 = arith.addf %14, %20 : vector<16x128xf32>
    %c0_8 = arith.constant 0 : index
    %c0_9 = arith.constant 0 : index
    %c384 = arith.constant 384 : index
    %22 = vector.load %arg2[%c0_8, %c0_9, %c384] : memref<1x16x1152xbf16, #tpu.memory_space<vmem>>, vector<1x16x128xbf16>
    %23 = vector.shape_cast %22 : vector<1x16x128xbf16> to vector<16x128xbf16>
    %24 = arith.extf %23 : vector<16x128xbf16> to vector<16x128xf32>
    %25 = vector.extract_strided_slice %1 {offsets = [3, 0], sizes = [1, 128], strides = [1, 1]} : vector<9x128xf32> to vector<1x128xf32>
    %26 = vector.broadcast %25 : vector<1x128xf32> to vector<16x128xf32>
    %27 = arith.mulf %24, %26 : vector<16x128xf32>
    %28 = arith.addf %21, %27 : vector<16x128xf32>
    %c0_10 = arith.constant 0 : index
    %c0_11 = arith.constant 0 : index
    %c512 = arith.constant 512 : index
    %29 = vector.load %arg2[%c0_10, %c0_11, %c512] : memref<1x16x1152xbf16, #tpu.memory_space<vmem>>, vector<1x16x128xbf16>
    %30 = vector.shape_cast %29 : vector<1x16x128xbf16> to vector<16x128xbf16>
    %31 = arith.extf %30 : vector<16x128xbf16> to vector<16x128xf32>
    %32 = vector.extract_strided_slice %1 {offsets = [4, 0], sizes = [1, 128], strides = [1, 1]} : vector<9x128xf32> to vector<1x128xf32>
    %33 = vector.broadcast %32 : vector<1x128xf32> to vector<16x128xf32>
    %34 = arith.mulf %31, %33 : vector<16x128xf32>
    %35 = arith.addf %28, %34 : vector<16x128xf32>
    %c0_12 = arith.constant 0 : index
    %c0_13 = arith.constant 0 : index
    %c640 = arith.constant 640 : index
    %36 = vector.load %arg2[%c0_12, %c0_13, %c640] : memref<1x16x1152xbf16, #tpu.memory_space<vmem>>, vector<1x16x128xbf16>
    %37 = vector.shape_cast %36 : vector<1x16x128xbf16> to vector<16x128xbf16>
    %38 = arith.extf %37 : vector<16x128xbf16> to vector<16x128xf32>
    %39 = vector.extract_strided_slice %1 {offsets = [5, 0], sizes = [1, 128], strides = [1, 1]} : vector<9x128xf32> to vector<1x128xf32>
    %40 = vector.broadcast %39 : vector<1x128xf32> to vector<16x128xf32>
    %41 = arith.mulf %38, %40 : vector<16x128xf32>
    %42 = arith.addf %35, %41 : vector<16x128xf32>
    %c0_14 = arith.constant 0 : index
    %c0_15 = arith.constant 0 : index
    %c768 = arith.constant 768 : index
    %43 = vector.load %arg2[%c0_14, %c0_15, %c768] : memref<1x16x1152xbf16, #tpu.memory_space<vmem>>, vector<1x16x128xbf16>
    %44 = vector.shape_cast %43 : vector<1x16x128xbf16> to vector<16x128xbf16>
    %45 = arith.extf %44 : vector<16x128xbf16> to vector<16x128xf32>
    %46 = vector.extract_strided_slice %1 {offsets = [6, 0], sizes = [1, 128], strides = [1, 1]} : vector<9x128xf32> to vector<1x128xf32>
    %47 = vector.broadcast %46 : vector<1x128xf32> to vector<16x128xf32>
    %48 = arith.mulf %45, %47 : vector<16x128xf32>
    %49 = arith.addf %42, %48 : vector<16x128xf32>
    %c0_16 = arith.constant 0 : index
    %c0_17 = arith.constant 0 : index
    %c896 = arith.constant 896 : index
    %50 = vector.load %arg2[%c0_16, %c0_17, %c896] : memref<1x16x1152xbf16, #tpu.memory_space<vmem>>, vector<1x16x128xbf16>
    %51 = vector.shape_cast %50 : vector<1x16x128xbf16> to vector<16x128xbf16>
    %52 = arith.extf %51 : vector<16x128xbf16> to vector<16x128xf32>
    %53 = vector.extract_strided_slice %1 {offsets = [7, 0], sizes = [1, 128], strides = [1, 1]} : vector<9x128xf32> to vector<1x128xf32>
    %54 = vector.broadcast %53 : vector<1x128xf32> to vector<16x128xf32>
    %55 = arith.mulf %52, %54 : vector<16x128xf32>
    %56 = arith.addf %49, %55 : vector<16x128xf32>
    %c0_18 = arith.constant 0 : index
    %c0_19 = arith.constant 0 : index
    %c1024 = arith.constant 1024 : index
    %57 = vector.load %arg2[%c0_18, %c0_19, %c1024] : memref<1x16x1152xbf16, #tpu.memory_space<vmem>>, vector<1x16x128xbf16>
    %58 = vector.shape_cast %57 : vector<1x16x128xbf16> to vector<16x128xbf16>
    %59 = arith.extf %58 : vector<16x128xbf16> to vector<16x128xf32>
    %60 = vector.extract_strided_slice %1 {offsets = [8, 0], sizes = [1, 128], strides = [1, 1]} : vector<9x128xf32> to vector<1x128xf32>
    %61 = vector.broadcast %60 : vector<1x128xf32> to vector<16x128xf32>
    %62 = arith.mulf %59, %61 : vector<16x128xf32>
    %63 = arith.addf %56, %62 : vector<16x128xf32>
    %64 = arith.truncf %63 : vector<16x128xf32> to vector<16x128xbf16>
    %c0_20 = arith.constant 0 : index
    %c0_21 = arith.constant 0 : index
    %c0_22 = arith.constant 0 : index
    %65 = vector.load %arg4[%c0_20, %c0_21, %c0_22] : memref<1x16x128xbf16, #tpu.memory_space<vmem>>, vector<1x16x128xbf16>
    %66 = vector.shape_cast %65 : vector<1x16x128xbf16> to vector<16x128xbf16>
    %67 = vector.shape_cast %64 : vector<16x128xbf16> to vector<1x16x128xbf16>
    tpu.vector_store %arg4[%c0_20, %c0_21, %c0_22], %67 {strides = array<i32>} : memref<1x16x128xbf16, #tpu.memory_space<vmem>>, vector<1x16x128xbf16>,
    %cst = arith.constant dense<0.000000e+00> : vector<128xf32>
    %68 = vector.multi_reduction <add>, %63, %cst [0] : vector<16x128xf32> to vector<128xf32>
    %69 = vector.shape_cast %68 : vector<128xf32> to vector<1x128xf32>
    %70 = vector.shape_cast %69 : vector<1x128xf32> to vector<1x128xf32>
    %71 = vector.broadcast %70 : vector<1x128xf32> to vector<8x128xf32>
    %c0_23 = arith.constant 0 : index
    %c0_24 = arith.constant 0 : index
    %c0_25 = arith.constant 0 : index
    %c0_26 = arith.constant 0 : index
    %72 = vector.load %arg5[%c0_23, %c0_24, %c0_25, %c0_26] : memref<1x1x8x128xf32, #tpu.memory_space<vmem>>, vector<1x1x8x128xf32>
    %73 = vector.shape_cast %72 : vector<1x1x8x128xf32> to vector<8x128xf32>
    %74 = vector.shape_cast %71 : vector<8x128xf32> to vector<1x1x8x128xf32>
    tpu.vector_store %arg5[%c0_23, %c0_24, %c0_25, %c0_26], %74 {strides = array<i32>} : memref<1x1x8x128xf32, #tpu.memory_space<vmem>>, vector<1x1x8x128xf32>,
    %75 = arith.mulf %63, %63 : vector<16x128xf32>
    %cst_27 = arith.constant dense<0.000000e+00> : vector<128xf32>
    %76 = vector.multi_reduction <add>, %75, %cst_27 [0] : vector<16x128xf32> to vector<128xf32>
    %77 = vector.shape_cast %76 : vector<128xf32> to vector<1x128xf32>
    %78 = vector.shape_cast %77 : vector<1x128xf32> to vector<1x128xf32>
    %79 = vector.broadcast %78 : vector<1x128xf32> to vector<8x128xf32>
    %c0_28 = arith.constant 0 : index
    %c0_29 = arith.constant 0 : index
    %c0_30 = arith.constant 0 : index
    %c0_31 = arith.constant 0 : index
    %80 = vector.load %arg6[%c0_28, %c0_29, %c0_30, %c0_31] : memref<1x1x8x128xf32, #tpu.memory_space<vmem>>, vector<1x1x8x128xf32>
    %81 = vector.shape_cast %80 : vector<1x1x8x128xf32> to vector<8x128xf32>
    %82 = vector.shape_cast %79 : vector<8x128xf32> to vector<1x1x8x128xf32>
    tpu.vector_store %arg6[%c0_28, %c0_29, %c0_30, %c0_31], %82 {strides = array<i32>} : memref<1x1x8x128xf32, #tpu.memory_space<vmem>>, vector<1x1x8x128xf32>,
    return
  }
  func.func @transform_0(%arg0: i32, %arg1: i32) -> (i32, i32, i32) {
    %c0_i32 = arith.constant 0 : i32
    %c0_i32_0 = arith.constant 0 : i32
    return %arg0, %arg1, %c0_i32 : i32, i32, i32
  }
  func.func @transform_1(%arg0: i32, %arg1: i32) -> (i32, i32) {
    %c0_i32 = arith.constant 0 : i32
    %c0_i32_0 = arith.constant 0 : i32
    %c0_i32_1 = arith.constant 0 : i32
    return %c0_i32, %c0_i32_0 : i32, i32
  }
  func.func @transform_2(%arg0: i32, %arg1: i32) -> (i32, i32, i32) {
    %c0_i32 = arith.constant 0 : i32
    %c0_i32_0 = arith.constant 0 : i32
    return %arg0, %arg1, %c0_i32 : i32, i32, i32
  }
  func.func @transform_3(%arg0: i32, %arg1: i32) -> (i32, i32, i32, i32) {
    %c0_i32 = arith.constant 0 : i32
    %c0_i32_0 = arith.constant 0 : i32
    %c0_i32_1 = arith.constant 0 : i32
    return %arg0, %arg1, %c0_i32, %c0_i32_0 : i32, i32, i32, i32
  }
  func.func @transform_4(%arg0: i32, %arg1: i32) -> (i32, i32, i32, i32) {
    %c0_i32 = arith.constant 0 : i32
    %c0_i32_0 = arith.constant 0 : i32
    %c0_i32_1 = arith.constant 0 : i32
    return %arg0, %arg1, %c0_i32, %c0_i32_0 : i32, i32, i32, i32
  }
}

module attributes {stable_mosaic.version = 11 : i64} {
  func.func @_bn_act_kernel(%arg0: i32, %arg1: i32, %arg2: memref<1x16x128xbf16, #tpu.memory_space<vmem>>, %arg3: memref<1x128xf32, #tpu.memory_space<vmem>>, %arg4: memref<1x128xf32, #tpu.memory_space<vmem>>, %arg5: memref<1x16x128xbf16, #tpu.memory_space<vmem>>) attributes {dimension_semantics = [#tpu.dimension_semantics<parallel>, #tpu.dimension_semantics<parallel>], iteration_bounds = array<i64: 2, 1>, scalar_prefetch = 0 : i64, scratch_operands = 0 : i64, tpu.core_type = #tpu.core_type<tc>, window_params = [{transform_indices = @transform_0, window_bounds = array<i64: 1, 16, 128>}, {pipeline_mode = #tpu.pipeline_mode<synchronous>, transform_indices = @transform_1, window_bounds = array<i64: 1, 128>}, {pipeline_mode = #tpu.pipeline_mode<synchronous>, transform_indices = @transform_2, window_bounds = array<i64: 1, 128>}, {transform_indices = @transform_3, window_bounds = array<i64: 1, 16, 128>}]} {
    %c0 = arith.constant 0 : index
    %c0_0 = arith.constant 0 : index
    %c0_1 = arith.constant 0 : index
    %0 = vector.load %arg2[%c0, %c0_0, %c0_1] : memref<1x16x128xbf16, #tpu.memory_space<vmem>>, vector<1x16x128xbf16>
    %1 = vector.shape_cast %0 : vector<1x16x128xbf16> to vector<16x128xbf16>
    %2 = arith.extf %1 : vector<16x128xbf16> to vector<16x128xf32>
    %c0_2 = arith.constant 0 : index
    %c0_3 = arith.constant 0 : index
    %3 = vector.load %arg3[%c0_2, %c0_3] : memref<1x128xf32, #tpu.memory_space<vmem>>, vector<1x128xf32>
    %4 = vector.broadcast %3 : vector<1x128xf32> to vector<16x128xf32>
    %5 = arith.mulf %2, %4 : vector<16x128xf32>
    %c0_4 = arith.constant 0 : index
    %c0_5 = arith.constant 0 : index
    %6 = vector.load %arg4[%c0_4, %c0_5] : memref<1x128xf32, #tpu.memory_space<vmem>>, vector<1x128xf32>
    %7 = vector.broadcast %6 : vector<1x128xf32> to vector<16x128xf32>
    %8 = arith.addf %5, %7 : vector<16x128xf32>
    %cst = arith.constant 0.000000e+00 : f32
    %9 = vector.broadcast %cst : f32 to vector<16x128xf32>
    %10 = arith.maximumf %8, %9 : vector<16x128xf32>
    %11 = arith.truncf %10 : vector<16x128xf32> to vector<16x128xbf16>
    %c0_6 = arith.constant 0 : index
    %c0_7 = arith.constant 0 : index
    %c0_8 = arith.constant 0 : index
    %12 = vector.load %arg5[%c0_6, %c0_7, %c0_8] : memref<1x16x128xbf16, #tpu.memory_space<vmem>>, vector<1x16x128xbf16>
    %13 = vector.shape_cast %12 : vector<1x16x128xbf16> to vector<16x128xbf16>
    %14 = vector.shape_cast %11 : vector<16x128xbf16> to vector<1x16x128xbf16>
    tpu.vector_store %arg5[%c0_6, %c0_7, %c0_8], %14 {strides = array<i32>} : memref<1x16x128xbf16, #tpu.memory_space<vmem>>, vector<1x16x128xbf16>,
    return
  }
  func.func @transform_0(%arg0: i32, %arg1: i32) -> (i32, i32, i32) {
    %c0_i32 = arith.constant 0 : i32
    %c0_i32_0 = arith.constant 0 : i32
    return %arg0, %arg1, %c0_i32 : i32, i32, i32
  }
  func.func @transform_1(%arg0: i32, %arg1: i32) -> (i32, i32) {
    %c0_i32 = arith.constant 0 : i32
    %c0_i32_0 = arith.constant 0 : i32
    %c0_i32_1 = arith.constant 0 : i32
    return %c0_i32, %c0_i32_0 : i32, i32
  }
  func.func @transform_2(%arg0: i32, %arg1: i32) -> (i32, i32) {
    %c0_i32 = arith.constant 0 : i32
    %c0_i32_0 = arith.constant 0 : i32
    %c0_i32_1 = arith.constant 0 : i32
    return %c0_i32, %c0_i32_0 : i32, i32
  }
  func.func @transform_3(%arg0: i32, %arg1: i32) -> (i32, i32, i32) {
    %c0_i32 = arith.constant 0 : i32
    %c0_i32_0 = arith.constant 0 : i32
    return %arg0, %arg1, %c0_i32 : i32, i32, i32
  }
}

module attributes {stable_mosaic.version = 11 : i64} {
  func.func @_gemm_stats_kernel(%arg0: i32, %arg1: i32, %arg2: memref<1x16x128xbf16, #tpu.memory_space<vmem>>, %arg3: memref<128x128xbf16, #tpu.memory_space<vmem>>, %arg4: memref<1x16x128xbf16, #tpu.memory_space<vmem>>, %arg5: memref<1x1x8x128xf32, #tpu.memory_space<vmem>>, %arg6: memref<1x1x8x128xf32, #tpu.memory_space<vmem>>) attributes {dimension_semantics = [#tpu.dimension_semantics<parallel>, #tpu.dimension_semantics<parallel>], iteration_bounds = array<i64: 2, 1>, scalar_prefetch = 0 : i64, scratch_operands = 0 : i64, tpu.core_type = #tpu.core_type<tc>, window_params = [{transform_indices = @transform_0, window_bounds = array<i64: 1, 16, 128>}, {pipeline_mode = #tpu.pipeline_mode<synchronous>, transform_indices = @transform_1, window_bounds = array<i64: 128, 128>}, {transform_indices = @transform_2, window_bounds = array<i64: 1, 16, 128>}, {transform_indices = @transform_3, window_bounds = array<i64: 1, 1, 8, 128>}, {transform_indices = @transform_4, window_bounds = array<i64: 1, 1, 8, 128>}]} {
    %c0 = arith.constant 0 : index
    %c0_0 = arith.constant 0 : index
    %c0_1 = arith.constant 0 : index
    %0 = vector.load %arg2[%c0, %c0_0, %c0_1] : memref<1x16x128xbf16, #tpu.memory_space<vmem>>, vector<1x16x128xbf16>
    %1 = vector.shape_cast %0 : vector<1x16x128xbf16> to vector<16x128xbf16>
    %c0_2 = arith.constant 0 : index
    %c0_3 = arith.constant 0 : index
    %2 = vector.load %arg3[%c0_2, %c0_3] : memref<128x128xbf16, #tpu.memory_space<vmem>>, vector<128x128xbf16>
    %cst = arith.constant dense<0.000000e+00> : vector<16x128xf32>
    %3 = tpu.matmul %1, %2, %cst {dimension_numbers = #tpu.dot_dimension_numbers<[1], [0], [0], [1], [0, 0, 1, 1], [], []>} : vector<16x128xbf16>, vector<128x128xbf16>, vector<16x128xf32> -> vector<16x128xf32>
    %4 = arith.truncf %3 : vector<16x128xf32> to vector<16x128xbf16>
    %c0_4 = arith.constant 0 : index
    %c0_5 = arith.constant 0 : index
    %c0_6 = arith.constant 0 : index
    %5 = vector.load %arg4[%c0_4, %c0_5, %c0_6] : memref<1x16x128xbf16, #tpu.memory_space<vmem>>, vector<1x16x128xbf16>
    %6 = vector.shape_cast %5 : vector<1x16x128xbf16> to vector<16x128xbf16>
    %7 = vector.shape_cast %4 : vector<16x128xbf16> to vector<1x16x128xbf16>
    tpu.vector_store %arg4[%c0_4, %c0_5, %c0_6], %7 {strides = array<i32>} : memref<1x16x128xbf16, #tpu.memory_space<vmem>>, vector<1x16x128xbf16>,
    %cst_7 = arith.constant dense<0.000000e+00> : vector<128xf32>
    %8 = vector.multi_reduction <add>, %3, %cst_7 [0] : vector<16x128xf32> to vector<128xf32>
    %9 = vector.shape_cast %8 : vector<128xf32> to vector<1x128xf32>
    %10 = vector.shape_cast %9 : vector<1x128xf32> to vector<1x128xf32>
    %11 = vector.broadcast %10 : vector<1x128xf32> to vector<8x128xf32>
    %c0_8 = arith.constant 0 : index
    %c0_9 = arith.constant 0 : index
    %c0_10 = arith.constant 0 : index
    %c0_11 = arith.constant 0 : index
    %12 = vector.load %arg5[%c0_8, %c0_9, %c0_10, %c0_11] : memref<1x1x8x128xf32, #tpu.memory_space<vmem>>, vector<1x1x8x128xf32>
    %13 = vector.shape_cast %12 : vector<1x1x8x128xf32> to vector<8x128xf32>
    %14 = vector.shape_cast %11 : vector<8x128xf32> to vector<1x1x8x128xf32>
    tpu.vector_store %arg5[%c0_8, %c0_9, %c0_10, %c0_11], %14 {strides = array<i32>} : memref<1x1x8x128xf32, #tpu.memory_space<vmem>>, vector<1x1x8x128xf32>,
    %15 = arith.mulf %3, %3 : vector<16x128xf32>
    %cst_12 = arith.constant dense<0.000000e+00> : vector<128xf32>
    %16 = vector.multi_reduction <add>, %15, %cst_12 [0] : vector<16x128xf32> to vector<128xf32>
    %17 = vector.shape_cast %16 : vector<128xf32> to vector<1x128xf32>
    %18 = vector.shape_cast %17 : vector<1x128xf32> to vector<1x128xf32>
    %19 = vector.broadcast %18 : vector<1x128xf32> to vector<8x128xf32>
    %c0_13 = arith.constant 0 : index
    %c0_14 = arith.constant 0 : index
    %c0_15 = arith.constant 0 : index
    %c0_16 = arith.constant 0 : index
    %20 = vector.load %arg6[%c0_13, %c0_14, %c0_15, %c0_16] : memref<1x1x8x128xf32, #tpu.memory_space<vmem>>, vector<1x1x8x128xf32>
    %21 = vector.shape_cast %20 : vector<1x1x8x128xf32> to vector<8x128xf32>
    %22 = vector.shape_cast %19 : vector<8x128xf32> to vector<1x1x8x128xf32>
    tpu.vector_store %arg6[%c0_13, %c0_14, %c0_15, %c0_16], %22 {strides = array<i32>} : memref<1x1x8x128xf32, #tpu.memory_space<vmem>>, vector<1x1x8x128xf32>,
    return
  }
  func.func @transform_0(%arg0: i32, %arg1: i32) -> (i32, i32, i32) {
    %c0_i32 = arith.constant 0 : i32
    %c0_i32_0 = arith.constant 0 : i32
    return %arg0, %arg1, %c0_i32 : i32, i32, i32
  }
  func.func @transform_1(%arg0: i32, %arg1: i32) -> (i32, i32) {
    %c0_i32 = arith.constant 0 : i32
    %c0_i32_0 = arith.constant 0 : i32
    %c0_i32_1 = arith.constant 0 : i32
    return %c0_i32, %c0_i32_0 : i32, i32
  }
  func.func @transform_2(%arg0: i32, %arg1: i32) -> (i32, i32, i32) {
    %c0_i32 = arith.constant 0 : i32
    %c0_i32_0 = arith.constant 0 : i32
    return %arg0, %arg1, %c0_i32 : i32, i32, i32
  }
  func.func @transform_3(%arg0: i32, %arg1: i32) -> (i32, i32, i32, i32) {
    %c0_i32 = arith.constant 0 : i32
    %c0_i32_0 = arith.constant 0 : i32
    %c0_i32_1 = arith.constant 0 : i32
    return %arg0, %arg1, %c0_i32, %c0_i32_0 : i32, i32, i32, i32
  }
  func.func @transform_4(%arg0: i32, %arg1: i32) -> (i32, i32, i32, i32) {
    %c0_i32 = arith.constant 0 : i32
    %c0_i32_0 = arith.constant 0 : i32
    %c0_i32_1 = arith.constant 0 : i32
    return %arg0, %arg1, %c0_i32, %c0_i32_0 : i32, i32, i32, i32
  }
}

module attributes {stable_mosaic.version = 11 : i64} {
  func.func @_bn_act_kernel(%arg0: i32, %arg1: i32, %arg2: memref<1x16x128xbf16, #tpu.memory_space<vmem>>, %arg3: memref<1x128xf32, #tpu.memory_space<vmem>>, %arg4: memref<1x128xf32, #tpu.memory_space<vmem>>, %arg5: memref<1x16x128xbf16, #tpu.memory_space<vmem>>) attributes {dimension_semantics = [#tpu.dimension_semantics<parallel>, #tpu.dimension_semantics<parallel>], iteration_bounds = array<i64: 2, 1>, scalar_prefetch = 0 : i64, scratch_operands = 0 : i64, tpu.core_type = #tpu.core_type<tc>, window_params = [{transform_indices = @transform_0, window_bounds = array<i64: 1, 16, 128>}, {pipeline_mode = #tpu.pipeline_mode<synchronous>, transform_indices = @transform_1, window_bounds = array<i64: 1, 128>}, {pipeline_mode = #tpu.pipeline_mode<synchronous>, transform_indices = @transform_2, window_bounds = array<i64: 1, 128>}, {transform_indices = @transform_3, window_bounds = array<i64: 1, 16, 128>}]} {
    %c0 = arith.constant 0 : index
    %c0_0 = arith.constant 0 : index
    %c0_1 = arith.constant 0 : index
    %0 = vector.load %arg2[%c0, %c0_0, %c0_1] : memref<1x16x128xbf16, #tpu.memory_space<vmem>>, vector<1x16x128xbf16>
    %1 = vector.shape_cast %0 : vector<1x16x128xbf16> to vector<16x128xbf16>
    %2 = arith.extf %1 : vector<16x128xbf16> to vector<16x128xf32>
    %c0_2 = arith.constant 0 : index
    %c0_3 = arith.constant 0 : index
    %3 = vector.load %arg3[%c0_2, %c0_3] : memref<1x128xf32, #tpu.memory_space<vmem>>, vector<1x128xf32>
    %4 = vector.broadcast %3 : vector<1x128xf32> to vector<16x128xf32>
    %5 = arith.mulf %2, %4 : vector<16x128xf32>
    %c0_4 = arith.constant 0 : index
    %c0_5 = arith.constant 0 : index
    %6 = vector.load %arg4[%c0_4, %c0_5] : memref<1x128xf32, #tpu.memory_space<vmem>>, vector<1x128xf32>
    %7 = vector.broadcast %6 : vector<1x128xf32> to vector<16x128xf32>
    %8 = arith.addf %5, %7 : vector<16x128xf32>
    %9 = arith.truncf %8 : vector<16x128xf32> to vector<16x128xbf16>
    %c0_6 = arith.constant 0 : index
    %c0_7 = arith.constant 0 : index
    %c0_8 = arith.constant 0 : index
    %10 = vector.load %arg5[%c0_6, %c0_7, %c0_8] : memref<1x16x128xbf16, #tpu.memory_space<vmem>>, vector<1x16x128xbf16>
    %11 = vector.shape_cast %10 : vector<1x16x128xbf16> to vector<16x128xbf16>
    %12 = vector.shape_cast %9 : vector<16x128xbf16> to vector<1x16x128xbf16>
    tpu.vector_store %arg5[%c0_6, %c0_7, %c0_8], %12 {strides = array<i32>} : memref<1x16x128xbf16, #tpu.memory_space<vmem>>, vector<1x16x128xbf16>,
    return
  }
  func.func @transform_0(%arg0: i32, %arg1: i32) -> (i32, i32, i32) {
    %c0_i32 = arith.constant 0 : i32
    %c0_i32_0 = arith.constant 0 : i32
    return %arg0, %arg1, %c0_i32 : i32, i32, i32
  }
  func.func @transform_1(%arg0: i32, %arg1: i32) -> (i32, i32) {
    %c0_i32 = arith.constant 0 : i32
    %c0_i32_0 = arith.constant 0 : i32
    %c0_i32_1 = arith.constant 0 : i32
    return %c0_i32, %c0_i32_0 : i32, i32
  }
  func.func @transform_2(%arg0: i32, %arg1: i32) -> (i32, i32) {
    %c0_i32 = arith.constant 0 : i32
    %c0_i32_0 = arith.constant 0 : i32
    %c0_i32_1 = arith.constant 0 : i32
    return %c0_i32, %c0_i32_0 : i32, i32
  }
  func.func @transform_3(%arg0: i32, %arg1: i32) -> (i32, i32, i32) {
    %c0_i32 = arith.constant 0 : i32
    %c0_i32_0 = arith.constant 0 : i32
    return %arg0, %arg1, %c0_i32 : i32, i32, i32
  }
}

module attributes {stable_mosaic.version = 11 : i64} {
  func.func @_bn_act_kernel(%arg0: i32, %arg1: i32, %arg2: memref<1x16x128xbf16, #tpu.memory_space<vmem>>, %arg3: memref<1x128xf32, #tpu.memory_space<vmem>>, %arg4: memref<1x128xf32, #tpu.memory_space<vmem>>, %arg5: memref<1x16x128xbf16, #tpu.memory_space<vmem>>) attributes {dimension_semantics = [#tpu.dimension_semantics<parallel>, #tpu.dimension_semantics<parallel>], iteration_bounds = array<i64: 2, 1>, scalar_prefetch = 0 : i64, scratch_operands = 0 : i64, tpu.core_type = #tpu.core_type<tc>, window_params = [{transform_indices = @transform_0, window_bounds = array<i64: 1, 16, 128>}, {pipeline_mode = #tpu.pipeline_mode<synchronous>, transform_indices = @transform_1, window_bounds = array<i64: 1, 128>}, {pipeline_mode = #tpu.pipeline_mode<synchronous>, transform_indices = @transform_2, window_bounds = array<i64: 1, 128>}, {transform_indices = @transform_3, window_bounds = array<i64: 1, 16, 128>}]} {
    %c0 = arith.constant 0 : index
    %c0_0 = arith.constant 0 : index
    %c0_1 = arith.constant 0 : index
    %0 = vector.load %arg2[%c0, %c0_0, %c0_1] : memref<1x16x128xbf16, #tpu.memory_space<vmem>>, vector<1x16x128xbf16>
    %1 = vector.shape_cast %0 : vector<1x16x128xbf16> to vector<16x128xbf16>
    %2 = arith.extf %1 : vector<16x128xbf16> to vector<16x128xf32>
    %c0_2 = arith.constant 0 : index
    %c0_3 = arith.constant 0 : index
    %3 = vector.load %arg3[%c0_2, %c0_3] : memref<1x128xf32, #tpu.memory_space<vmem>>, vector<1x128xf32>
    %4 = vector.broadcast %3 : vector<1x128xf32> to vector<16x128xf32>
    %5 = arith.mulf %2, %4 : vector<16x128xf32>
    %c0_4 = arith.constant 0 : index
    %c0_5 = arith.constant 0 : index
    %6 = vector.load %arg4[%c0_4, %c0_5] : memref<1x128xf32, #tpu.memory_space<vmem>>, vector<1x128xf32>
    %7 = vector.broadcast %6 : vector<1x128xf32> to vector<16x128xf32>
    %8 = arith.addf %5, %7 : vector<16x128xf32>
    %cst = arith.constant 3.000000e+00 : f32
    %9 = vector.broadcast %cst : f32 to vector<16x128xf32>
    %10 = arith.addf %8, %9 : vector<16x128xf32>
    %cst_6 = arith.constant 0.000000e+00 : f32
    %cst_7 = arith.constant 6.000000e+00 : f32
    %11 = vector.broadcast %cst_6 : f32 to vector<16x128xf32>
    %12 = arith.maximumf %11, %10 : vector<16x128xf32>
    %13 = vector.broadcast %cst_7 : f32 to vector<16x128xf32>
    %14 = arith.minimumf %13, %12 : vector<16x128xf32>
    %15 = arith.mulf %8, %14 : vector<16x128xf32>
    %cst_8 = arith.constant 0.166666672 : f32
    %16 = vector.broadcast %cst_8 : f32 to vector<16x128xf32>
    %17 = arith.mulf %15, %16 : vector<16x128xf32>
    %18 = arith.truncf %17 : vector<16x128xf32> to vector<16x128xbf16>
    %c0_9 = arith.constant 0 : index
    %c0_10 = arith.constant 0 : index
    %c0_11 = arith.constant 0 : index
    %19 = vector.load %arg5[%c0_9, %c0_10, %c0_11] : memref<1x16x128xbf16, #tpu.memory_space<vmem>>, vector<1x16x128xbf16>
    %20 = vector.shape_cast %19 : vector<1x16x128xbf16> to vector<16x128xbf16>
    %21 = vector.shape_cast %18 : vector<16x128xbf16> to vector<1x16x128xbf16>
    tpu.vector_store %arg5[%c0_9, %c0_10, %c0_11], %21 {strides = array<i32>} : memref<1x16x128xbf16, #tpu.memory_space<vmem>>, vector<1x16x128xbf16>,
    return
  }
  func.func @transform_0(%arg0: i32, %arg1: i32) -> (i32, i32, i32) {
    %c0_i32 = arith.constant 0 : i32
    %c0_i32_0 = arith.constant 0 : i32
    return %arg0, %arg1, %c0_i32 : i32, i32, i32
  }
  func.func @transform_1(%arg0: i32, %arg1: i32) -> (i32, i32) {
    %c0_i32 = arith.constant 0 : i32
    %c0_i32_0 = arith.constant 0 : i32
    %c0_i32_1 = arith.constant 0 : i32
    return %c0_i32, %c0_i32_0 : i32, i32
  }
  func.func @transform_2(%arg0: i32, %arg1: i32) -> (i32, i32) {
    %c0_i32 = arith.constant 0 : i32
    %c0_i32_0 = arith.constant 0 : i32
    %c0_i32_1 = arith.constant 0 : i32
    return %c0_i32, %c0_i32_0 : i32, i32
  }
  func.func @transform_3(%arg0: i32, %arg1: i32) -> (i32, i32, i32) {
    %c0_i32 = arith.constant 0 : i32
    %c0_i32_0 = arith.constant 0 : i32
    return %arg0, %arg1, %c0_i32 : i32, i32, i32
  }
}

module attributes {stable_mosaic.version = 11 : i64} {
  func.func @_bn_act_kernel(%arg0: i32, %arg1: i32, %arg2: memref<1x16x128xbf16, #tpu.memory_space<vmem>>, %arg3: memref<1x128xf32, #tpu.memory_space<vmem>>, %arg4: memref<1x128xf32, #tpu.memory_space<vmem>>, %arg5: memref<1x16x128xbf16, #tpu.memory_space<vmem>>, %arg6: memref<1x1x8x128xf32, #tpu.memory_space<vmem>>) attributes {dimension_semantics = [#tpu.dimension_semantics<parallel>, #tpu.dimension_semantics<parallel>], iteration_bounds = array<i64: 2, 1>, scalar_prefetch = 0 : i64, scratch_operands = 0 : i64, tpu.core_type = #tpu.core_type<tc>, window_params = [{transform_indices = @transform_0, window_bounds = array<i64: 1, 16, 128>}, {pipeline_mode = #tpu.pipeline_mode<synchronous>, transform_indices = @transform_1, window_bounds = array<i64: 1, 128>}, {pipeline_mode = #tpu.pipeline_mode<synchronous>, transform_indices = @transform_2, window_bounds = array<i64: 1, 128>}, {transform_indices = @transform_3, window_bounds = array<i64: 1, 16, 128>}, {transform_indices = @transform_4, window_bounds = array<i64: 1, 1, 8, 128>}]} {
    %c0 = arith.constant 0 : index
    %c0_0 = arith.constant 0 : index
    %c0_1 = arith.constant 0 : index
    %0 = vector.load %arg2[%c0, %c0_0, %c0_1] : memref<1x16x128xbf16, #tpu.memory_space<vmem>>, vector<1x16x128xbf16>
    %1 = vector.shape_cast %0 : vector<1x16x128xbf16> to vector<16x128xbf16>
    %2 = arith.extf %1 : vector<16x128xbf16> to vector<16x128xf32>
    %c0_2 = arith.constant 0 : index
    %c0_3 = arith.constant 0 : index
    %3 = vector.load %arg3[%c0_2, %c0_3] : memref<1x128xf32, #tpu.memory_space<vmem>>, vector<1x128xf32>
    %4 = vector.broadcast %3 : vector<1x128xf32> to vector<16x128xf32>
    %5 = arith.mulf %2, %4 : vector<16x128xf32>
    %c0_4 = arith.constant 0 : index
    %c0_5 = arith.constant 0 : index
    %6 = vector.load %arg4[%c0_4, %c0_5] : memref<1x128xf32, #tpu.memory_space<vmem>>, vector<1x128xf32>
    %7 = vector.broadcast %6 : vector<1x128xf32> to vector<16x128xf32>
    %8 = arith.addf %5, %7 : vector<16x128xf32>
    %cst = arith.constant 3.000000e+00 : f32
    %9 = vector.broadcast %cst : f32 to vector<16x128xf32>
    %10 = arith.addf %8, %9 : vector<16x128xf32>
    %cst_6 = arith.constant 0.000000e+00 : f32
    %cst_7 = arith.constant 6.000000e+00 : f32
    %11 = vector.broadcast %cst_6 : f32 to vector<16x128xf32>
    %12 = arith.maximumf %11, %10 : vector<16x128xf32>
    %13 = vector.broadcast %cst_7 : f32 to vector<16x128xf32>
    %14 = arith.minimumf %13, %12 : vector<16x128xf32>
    %15 = arith.mulf %8, %14 : vector<16x128xf32>
    %cst_8 = arith.constant 0.166666672 : f32
    %16 = vector.broadcast %cst_8 : f32 to vector<16x128xf32>
    %17 = arith.mulf %15, %16 : vector<16x128xf32>
    %18 = arith.truncf %17 : vector<16x128xf32> to vector<16x128xbf16>
    %c0_9 = arith.constant 0 : index
    %c0_10 = arith.constant 0 : index
    %c0_11 = arith.constant 0 : index
    %19 = vector.load %arg5[%c0_9, %c0_10, %c0_11] : memref<1x16x128xbf16, #tpu.memory_space<vmem>>, vector<1x16x128xbf16>
    %20 = vector.shape_cast %19 : vector<1x16x128xbf16> to vector<16x128xbf16>
    %21 = vector.shape_cast %18 : vector<16x128xbf16> to vector<1x16x128xbf16>
    tpu.vector_store %arg5[%c0_9, %c0_10, %c0_11], %21 {strides = array<i32>} : memref<1x16x128xbf16, #tpu.memory_space<vmem>>, vector<1x16x128xbf16>,
    %cst_12 = arith.constant dense<0.000000e+00> : vector<128xf32>
    %22 = vector.multi_reduction <add>, %17, %cst_12 [0] : vector<16x128xf32> to vector<128xf32>
    %23 = vector.shape_cast %22 : vector<128xf32> to vector<1x128xf32>
    %24 = vector.shape_cast %23 : vector<1x128xf32> to vector<1x128xf32>
    %25 = vector.broadcast %24 : vector<1x128xf32> to vector<8x128xf32>
    %c0_13 = arith.constant 0 : index
    %c0_14 = arith.constant 0 : index
    %c0_15 = arith.constant 0 : index
    %c0_16 = arith.constant 0 : index
    %26 = vector.load %arg6[%c0_13, %c0_14, %c0_15, %c0_16] : memref<1x1x8x128xf32, #tpu.memory_space<vmem>>, vector<1x1x8x128xf32>
    %27 = vector.shape_cast %26 : vector<1x1x8x128xf32> to vector<8x128xf32>
    %28 = vector.shape_cast %25 : vector<8x128xf32> to vector<1x1x8x128xf32>
    tpu.vector_store %arg6[%c0_13, %c0_14, %c0_15, %c0_16], %28 {strides = array<i32>} : memref<1x1x8x128xf32, #tpu.memory_space<vmem>>, vector<1x1x8x128xf32>,
    return
  }
  func.func @transform_0(%arg0: i32, %arg1: i32) -> (i32, i32, i32) {
    %c0_i32 = arith.constant 0 : i32
    %c0_i32_0 = arith.constant 0 : i32
    return %arg0, %arg1, %c0_i32 : i32, i32, i32
  }
  func.func @transform_1(%arg0: i32, %arg1: i32) -> (i32, i32) {
    %c0_i32 = arith.constant 0 : i32
    %c0_i32_0 = arith.constant 0 : i32
    %c0_i32_1 = arith.constant 0 : i32
    return %c0_i32, %c0_i32_0 : i32, i32
  }
  func.func @transform_2(%arg0: i32, %arg1: i32) -> (i32, i32) {
    %c0_i32 = arith.constant 0 : i32
    %c0_i32_0 = arith.constant 0 : i32
    %c0_i32_1 = arith.constant 0 : i32
    return %c0_i32, %c0_i32_0 : i32, i32
  }
  func.func @transform_3(%arg0: i32, %arg1: i32) -> (i32, i32, i32) {
    %c0_i32 = arith.constant 0 : i32
    %c0_i32_0 = arith.constant 0 : i32
    return %arg0, %arg1, %c0_i32 : i32, i32, i32
  }
  func.func @transform_4(%arg0: i32, %arg1: i32) -> (i32, i32, i32, i32) {
    %c0_i32 = arith.constant 0 : i32
    %c0_i32_0 = arith.constant 0 : i32
    %c0_i32_1 = arith.constant 0 : i32
    return %arg0, %arg1, %c0_i32, %c0_i32_0 : i32, i32, i32, i32
  }
}

module attributes {stable_mosaic.version = 11 : i64} {
  func.func @_gemm_stats_kernel(%arg0: i32, %arg1: i32, %arg2: memref<1x16x128xbf16, #tpu.memory_space<vmem>>, %arg3: memref<128x128xbf16, #tpu.memory_space<vmem>>, %arg4: memref<1x8x128xf32, #tpu.memory_space<vmem>>, %arg5: memref<1x16x128xbf16, #tpu.memory_space<vmem>>, %arg6: memref<1x1x8x128xf32, #tpu.memory_space<vmem>>, %arg7: memref<1x1x8x128xf32, #tpu.memory_space<vmem>>) attributes {dimension_semantics = [#tpu.dimension_semantics<parallel>, #tpu.dimension_semantics<parallel>], iteration_bounds = array<i64: 2, 1>, scalar_prefetch = 0 : i64, scratch_operands = 0 : i64, tpu.core_type = #tpu.core_type<tc>, window_params = [{transform_indices = @transform_0, window_bounds = array<i64: 1, 16, 128>}, {pipeline_mode = #tpu.pipeline_mode<synchronous>, transform_indices = @transform_1, window_bounds = array<i64: 128, 128>}, {transform_indices = @transform_2, window_bounds = array<i64: 1, 8, 128>}, {transform_indices = @transform_3, window_bounds = array<i64: 1, 16, 128>}, {transform_indices = @transform_4, window_bounds = array<i64: 1, 1, 8, 128>}, {transform_indices = @transform_5, window_bounds = array<i64: 1, 1, 8, 128>}]} {
    %c0 = arith.constant 0 : index
    %c0_0 = arith.constant 0 : index
    %c0_1 = arith.constant 0 : index
    %0 = vector.load %arg2[%c0, %c0_0, %c0_1] : memref<1x16x128xbf16, #tpu.memory_space<vmem>>, vector<1x16x128xbf16>
    %1 = vector.shape_cast %0 : vector<1x16x128xbf16> to vector<16x128xbf16>
    %c0_2 = arith.constant 0 : index
    %c0_3 = arith.constant 0 : index
    %c0_4 = arith.constant 0 : index
    %2 = vector.load %arg4[%c0_2, %c0_3, %c0_4] : memref<1x8x128xf32, #tpu.memory_space<vmem>>, vector<1x8x128xf32>
    %3 = vector.shape_cast %2 : vector<1x8x128xf32> to vector<8x128xf32>
    %4 = vector.extract_strided_slice %3 {offsets = [0, 0], sizes = [1, 128], strides = [1, 1]} : vector<8x128xf32> to vector<1x128xf32>
    %5 = arith.extf %1 : vector<16x128xbf16> to vector<16x128xf32>
    %6 = vector.broadcast %4 : vector<1x128xf32> to vector<16x128xf32>
    %7 = arith.mulf %5, %6 : vector<16x128xf32>
    %8 = arith.truncf %7 : vector<16x128xf32> to vector<16x128xbf16>
    %c0_5 = arith.constant 0 : index
    %c0_6 = arith.constant 0 : index
    %9 = vector.load %arg3[%c0_5, %c0_6] : memref<128x128xbf16, #tpu.memory_space<vmem>>, vector<128x128xbf16>
    %cst = arith.constant dense<0.000000e+00> : vector<16x128xf32>
    %10 = tpu.matmul %8, %9, %cst {dimension_numbers = #tpu.dot_dimension_numbers<[1], [0], [0], [1], [0, 0, 1, 1], [], []>} : vector<16x128xbf16>, vector<128x128xbf16>, vector<16x128xf32> -> vector<16x128xf32>
    %11 = arith.truncf %10 : vector<16x128xf32> to vector<16x128xbf16>
    %c0_7 = arith.constant 0 : index
    %c0_8 = arith.constant 0 : index
    %c0_9 = arith.constant 0 : index
    %12 = vector.load %arg5[%c0_7, %c0_8, %c0_9] : memref<1x16x128xbf16, #tpu.memory_space<vmem>>, vector<1x16x128xbf16>
    %13 = vector.shape_cast %12 : vector<1x16x128xbf16> to vector<16x128xbf16>
    %14 = vector.shape_cast %11 : vector<16x128xbf16> to vector<1x16x128xbf16>
    tpu.vector_store %arg5[%c0_7, %c0_8, %c0_9], %14 {strides = array<i32>} : memref<1x16x128xbf16, #tpu.memory_space<vmem>>, vector<1x16x128xbf16>,
    %cst_10 = arith.constant dense<0.000000e+00> : vector<128xf32>
    %15 = vector.multi_reduction <add>, %10, %cst_10 [0] : vector<16x128xf32> to vector<128xf32>
    %16 = vector.shape_cast %15 : vector<128xf32> to vector<1x128xf32>
    %17 = vector.shape_cast %16 : vector<1x128xf32> to vector<1x128xf32>
    %18 = vector.broadcast %17 : vector<1x128xf32> to vector<8x128xf32>
    %c0_11 = arith.constant 0 : index
    %c0_12 = arith.constant 0 : index
    %c0_13 = arith.constant 0 : index
    %c0_14 = arith.constant 0 : index
    %19 = vector.load %arg6[%c0_11, %c0_12, %c0_13, %c0_14] : memref<1x1x8x128xf32, #tpu.memory_space<vmem>>, vector<1x1x8x128xf32>
    %20 = vector.shape_cast %19 : vector<1x1x8x128xf32> to vector<8x128xf32>
    %21 = vector.shape_cast %18 : vector<8x128xf32> to vector<1x1x8x128xf32>
    tpu.vector_store %arg6[%c0_11, %c0_12, %c0_13, %c0_14], %21 {strides = array<i32>} : memref<1x1x8x128xf32, #tpu.memory_space<vmem>>, vector<1x1x8x128xf32>,
    %22 = arith.mulf %10, %10 : vector<16x128xf32>
    %cst_15 = arith.constant dense<0.000000e+00> : vector<128xf32>
    %23 = vector.multi_reduction <add>, %22, %cst_15 [0] : vector<16x128xf32> to vector<128xf32>
    %24 = vector.shape_cast %23 : vector<128xf32> to vector<1x128xf32>
    %25 = vector.shape_cast %24 : vector<1x128xf32> to vector<1x128xf32>
    %26 = vector.broadcast %25 : vector<1x128xf32> to vector<8x128xf32>
    %c0_16 = arith.constant 0 : index
    %c0_17 = arith.constant 0 : index
    %c0_18 = arith.constant 0 : index
    %c0_19 = arith.constant 0 : index
    %27 = vector.load %arg7[%c0_16, %c0_17, %c0_18, %c0_19] : memref<1x1x8x128xf32, #tpu.memory_space<vmem>>, vector<1x1x8x128xf32>
    %28 = vector.shape_cast %27 : vector<1x1x8x128xf32> to vector<8x128xf32>
    %29 = vector.shape_cast %26 : vector<8x128xf32> to vector<1x1x8x128xf32>
    tpu.vector_store %arg7[%c0_16, %c0_17, %c0_18, %c0_19], %29 {strides = array<i32>} : memref<1x1x8x128xf32, #tpu.memory_space<vmem>>, vector<1x1x8x128xf32>,
    return
  }
  func.func @transform_0(%arg0: i32, %arg1: i32) -> (i32, i32, i32) {
    %c0_i32 = arith.constant 0 : i32
    %c0_i32_0 = arith.constant 0 : i32
    return %arg0, %arg1, %c0_i32 : i32, i32, i32
  }
  func.func @transform_1(%arg0: i32, %arg1: i32) -> (i32, i32) {
    %c0_i32 = arith.constant 0 : i32
    %c0_i32_0 = arith.constant 0 : i32
    %c0_i32_1 = arith.constant 0 : i32
    return %c0_i32, %c0_i32_0 : i32, i32
  }
  func.func @transform_2(%arg0: i32, %arg1: i32) -> (i32, i32, i32) {
    %c0_i32 = arith.constant 0 : i32
    %c0_i32_0 = arith.constant 0 : i32
    %c0_i32_1 = arith.constant 0 : i32
    return %arg0, %c0_i32, %c0_i32_0 : i32, i32, i32
  }
  func.func @transform_3(%arg0: i32, %arg1: i32) -> (i32, i32, i32) {
    %c0_i32 = arith.constant 0 : i32
    %c0_i32_0 = arith.constant 0 : i32
    return %arg0, %arg1, %c0_i32 : i32, i32, i32
  }
  func.func @transform_4(%arg0: i32, %arg1: i32) -> (i32, i32, i32, i32) {
    %c0_i32 = arith.constant 0 : i32
    %c0_i32_0 = arith.constant 0 : i32
    %c0_i32_1 = arith.constant 0 : i32
    return %arg0, %arg1, %c0_i32, %c0_i32_0 : i32, i32, i32, i32
  }
  func.func @transform_5(%arg0: i32, %arg1: i32) -> (i32, i32, i32, i32) {
    %c0_i32 = arith.constant 0 : i32
    %c0_i32_0 = arith.constant 0 : i32
    %c0_i32_1 = arith.constant 0 : i32
    return %arg0, %arg1, %c0_i32, %c0_i32_0 : i32, i32, i32, i32
  }
}

module attributes {stable_mosaic.version = 11 : i64} {
  func.func @_se_fc_kernel(%arg0: i32, %arg1: memref<2x128xf32, #tpu.memory_space<vmem>>, %arg2: memref<128x128xbf16, #tpu.memory_space<vmem>>, %arg3: memref<1x128xf32, #tpu.memory_space<vmem>>, %arg4: memref<128x128xbf16, #tpu.memory_space<vmem>>, %arg5: memref<1x128xf32, #tpu.memory_space<vmem>>, %arg6: memref<2x8x128xf32, #tpu.memory_space<vmem>>) attributes {dimension_semantics = [#tpu.dimension_semantics<arbitrary>], iteration_bounds = array<i64: 1>, scalar_prefetch = 0 : i64, scratch_operands = 0 : i64, tpu.core_type = #tpu.core_type<tc>, window_params = [{pipeline_mode = #tpu.pipeline_mode<synchronous>, transform_indices = @transform_0, window_bounds = array<i64: 2, 128>}, {pipeline_mode = #tpu.pipeline_mode<synchronous>, transform_indices = @transform_1, window_bounds = array<i64: 128, 128>}, {pipeline_mode = #tpu.pipeline_mode<synchronous>, transform_indices = @transform_2, window_bounds = array<i64: 1, 128>}, {pipeline_mode = #tpu.pipeline_mode<synchronous>, transform_indices = @transform_3, window_bounds = array<i64: 128, 128>}, {pipeline_mode = #tpu.pipeline_mode<synchronous>, transform_indices = @transform_4, window_bounds = array<i64: 1, 128>}, {pipeline_mode = #tpu.pipeline_mode<synchronous>, transform_indices = @transform_5, window_bounds = array<i64: 2, 8, 128>}]} {
    %c0 = arith.constant 0 : index
    %c0_0 = arith.constant 0 : index
    %0 = vector.load %arg1[%c0, %c0_0] : memref<2x128xf32, #tpu.memory_space<vmem>>, vector<2x128xf32>
    %1 = arith.truncf %0 : vector<2x128xf32> to vector<2x128xbf16>
    %c0_1 = arith.constant 0 : index
    %c0_2 = arith.constant 0 : index
    %2 = vector.load %arg2[%c0_1, %c0_2] : memref<128x128xbf16, #tpu.memory_space<vmem>>, vector<128x128xbf16>
    %cst = arith.constant dense<0.000000e+00> : vector<2x128xf32>
    %3 = tpu.matmul %1, %2, %cst {dimension_numbers = #tpu.dot_dimension_numbers<[1], [0], [0], [1], [0, 0, 1, 1], [], []>} : vector<2x128xbf16>, vector<128x128xbf16>, vector<2x128xf32> -> vector<2x128xf32>
    %c0_3 = arith.constant 0 : index
    %c0_4 = arith.constant 0 : index
    %4 = vector.load %arg3[%c0_3, %c0_4] : memref<1x128xf32, #tpu.memory_space<vmem>>, vector<1x128xf32>
    %5 = vector.broadcast %4 : vector<1x128xf32> to vector<2x128xf32>
    %6 = arith.addf %3, %5 : vector<2x128xf32>
    %cst_5 = arith.constant 0.000000e+00 : f32
    %7 = vector.broadcast %cst_5 : f32 to vector<2x128xf32>
    %8 = arith.maximumf %6, %7 : vector<2x128xf32>
    %9 = arith.truncf %8 : vector<2x128xf32> to vector<2x128xbf16>
    %c0_6 = arith.constant 0 : index
    %c0_7 = arith.constant 0 : index
    %10 = vector.load %arg4[%c0_6, %c0_7] : memref<128x128xbf16, #tpu.memory_space<vmem>>, vector<128x128xbf16>
    %cst_8 = arith.constant dense<0.000000e+00> : vector<2x128xf32>
    %11 = tpu.matmul %9, %10, %cst_8 {dimension_numbers = #tpu.dot_dimension_numbers<[1], [0], [0], [1], [0, 0, 1, 1], [], []>} : vector<2x128xbf16>, vector<128x128xbf16>, vector<2x128xf32> -> vector<2x128xf32>
    %c0_9 = arith.constant 0 : index
    %c0_10 = arith.constant 0 : index
    %12 = vector.load %arg5[%c0_9, %c0_10] : memref<1x128xf32, #tpu.memory_space<vmem>>, vector<1x128xf32>
    %13 = vector.broadcast %12 : vector<1x128xf32> to vector<2x128xf32>
    %14 = arith.addf %11, %13 : vector<2x128xf32>
    %cst_11 = arith.constant 3.000000e+00 : f32
    %15 = vector.broadcast %cst_11 : f32 to vector<2x128xf32>
    %16 = arith.addf %14, %15 : vector<2x128xf32>
    %cst_12 = arith.constant 0.000000e+00 : f32
    %cst_13 = arith.constant 6.000000e+00 : f32
    %17 = vector.broadcast %cst_12 : f32 to vector<2x128xf32>
    %18 = arith.maximumf %17, %16 : vector<2x128xf32>
    %19 = vector.broadcast %cst_13 : f32 to vector<2x128xf32>
    %20 = arith.minimumf %19, %18 : vector<2x128xf32>
    %cst_14 = arith.constant 0.166666672 : f32
    %21 = vector.broadcast %cst_14 : f32 to vector<2x128xf32>
    %22 = arith.mulf %20, %21 : vector<2x128xf32>
    %23 = vector.extract_strided_slice %22 {offsets = [0, 0], sizes = [1, 128], strides = [1, 1]} : vector<2x128xf32> to vector<1x128xf32>
    %24 = vector.shape_cast %23 : vector<1x128xf32> to vector<1x128xf32>
    %25 = vector.broadcast %24 : vector<1x128xf32> to vector<8x128xf32>
    %c0_15 = arith.constant 0 : index
    %c0_16 = arith.constant 0 : index
    %c0_17 = arith.constant 0 : index
    %26 = vector.load %arg6[%c0_15, %c0_16, %c0_17] : memref<2x8x128xf32, #tpu.memory_space<vmem>>, vector<1x8x128xf32>
    %27 = vector.shape_cast %26 : vector<1x8x128xf32> to vector<8x128xf32>
    %28 = vector.shape_cast %25 : vector<8x128xf32> to vector<1x8x128xf32>
    tpu.vector_store %arg6[%c0_15, %c0_16, %c0_17], %28 {strides = array<i32>} : memref<2x8x128xf32, #tpu.memory_space<vmem>>, vector<1x8x128xf32>,
    %29 = vector.extract_strided_slice %22 {offsets = [1, 0], sizes = [1, 128], strides = [1, 1]} : vector<2x128xf32> to vector<1x128xf32>
    %30 = vector.shape_cast %29 : vector<1x128xf32> to vector<1x128xf32>
    %31 = vector.broadcast %30 : vector<1x128xf32> to vector<8x128xf32>
    %c1 = arith.constant 1 : index
    %c0_18 = arith.constant 0 : index
    %c0_19 = arith.constant 0 : index
    %32 = vector.load %arg6[%c1, %c0_18, %c0_19] : memref<2x8x128xf32, #tpu.memory_space<vmem>>, vector<1x8x128xf32>
    %33 = vector.shape_cast %32 : vector<1x8x128xf32> to vector<8x128xf32>
    %34 = vector.shape_cast %31 : vector<8x128xf32> to vector<1x8x128xf32>
    tpu.vector_store %arg6[%c1, %c0_18, %c0_19], %34 {strides = array<i32>} : memref<2x8x128xf32, #tpu.memory_space<vmem>>, vector<1x8x128xf32>,
    return
  }
  func.func @transform_0(%arg0: i32) -> (i32, i32) {
    %c0_i32 = arith.constant 0 : i32
    %c0_i32_0 = arith.constant 0 : i32
    %c0_i32_1 = arith.constant 0 : i32
    return %c0_i32, %c0_i32_0 : i32, i32
  }
  func.func @transform_1(%arg0: i32) -> (i32, i32) {
    %c0_i32 = arith.constant 0 : i32
    %c0_i32_0 = arith.constant 0 : i32
    %c0_i32_1 = arith.constant 0 : i32
    return %c0_i32, %c0_i32_0 : i32, i32
  }
  func.func @transform_2(%arg0: i32) -> (i32, i32) {
    %c0_i32 = arith.constant 0 : i32
    %c0_i32_0 = arith.constant 0 : i32
    %c0_i32_1 = arith.constant 0 : i32
    return %c0_i32, %c0_i32_0 : i32, i32
  }
  func.func @transform_3(%arg0: i32) -> (i32, i32) {
    %c0_i32 = arith.constant 0 : i32
    %c0_i32_0 = arith.constant 0 : i32
    %c0_i32_1 = arith.constant 0 : i32
    return %c0_i32, %c0_i32_0 : i32, i32
  }
  func.func @transform_4(%arg0: i32) -> (i32, i32) {
    %c0_i32 = arith.constant 0 : i32
    %c0_i32_0 = arith.constant 0 : i32
    %c0_i32_1 = arith.constant 0 : i32
    return %c0_i32, %c0_i32_0 : i32, i32
  }
  func.func @transform_5(%arg0: i32) -> (i32, i32, i32) {
    %c0_i32 = arith.constant 0 : i32
    %c0_i32_0 = arith.constant 0 : i32
    %c0_i32_1 = arith.constant 0 : i32
    %c0_i32_2 = arith.constant 0 : i32
    return %c0_i32, %c0_i32_0, %c0_i32_1 : i32, i32, i32
  }
}

module attributes {stable_mosaic.version = 11 : i64} {
  func.func @_bn_act_kernel(%arg0: i32, %arg1: i32, %arg2: memref<1x16x128xbf16, #tpu.memory_space<vmem>>, %arg3: memref<1x128xf32, #tpu.memory_space<vmem>>, %arg4: memref<1x128xf32, #tpu.memory_space<vmem>>, %arg5: memref<1x16x128xbf16, #tpu.memory_space<vmem>>, %arg6: memref<1x16x128xbf16, #tpu.memory_space<vmem>>) attributes {dimension_semantics = [#tpu.dimension_semantics<parallel>, #tpu.dimension_semantics<parallel>], iteration_bounds = array<i64: 2, 1>, scalar_prefetch = 0 : i64, scratch_operands = 0 : i64, tpu.core_type = #tpu.core_type<tc>, window_params = [{transform_indices = @transform_0, window_bounds = array<i64: 1, 16, 128>}, {pipeline_mode = #tpu.pipeline_mode<synchronous>, transform_indices = @transform_1, window_bounds = array<i64: 1, 128>}, {pipeline_mode = #tpu.pipeline_mode<synchronous>, transform_indices = @transform_2, window_bounds = array<i64: 1, 128>}, {transform_indices = @transform_3, window_bounds = array<i64: 1, 16, 128>}, {transform_indices = @transform_4, window_bounds = array<i64: 1, 16, 128>}]} {
    %c0 = arith.constant 0 : index
    %c0_0 = arith.constant 0 : index
    %c0_1 = arith.constant 0 : index
    %0 = vector.load %arg2[%c0, %c0_0, %c0_1] : memref<1x16x128xbf16, #tpu.memory_space<vmem>>, vector<1x16x128xbf16>
    %1 = vector.shape_cast %0 : vector<1x16x128xbf16> to vector<16x128xbf16>
    %2 = arith.extf %1 : vector<16x128xbf16> to vector<16x128xf32>
    %c0_2 = arith.constant 0 : index
    %c0_3 = arith.constant 0 : index
    %3 = vector.load %arg3[%c0_2, %c0_3] : memref<1x128xf32, #tpu.memory_space<vmem>>, vector<1x128xf32>
    %4 = vector.broadcast %3 : vector<1x128xf32> to vector<16x128xf32>
    %5 = arith.mulf %2, %4 : vector<16x128xf32>
    %c0_4 = arith.constant 0 : index
    %c0_5 = arith.constant 0 : index
    %6 = vector.load %arg4[%c0_4, %c0_5] : memref<1x128xf32, #tpu.memory_space<vmem>>, vector<1x128xf32>
    %7 = vector.broadcast %6 : vector<1x128xf32> to vector<16x128xf32>
    %8 = arith.addf %5, %7 : vector<16x128xf32>
    %c0_6 = arith.constant 0 : index
    %c0_7 = arith.constant 0 : index
    %c0_8 = arith.constant 0 : index
    %9 = vector.load %arg5[%c0_6, %c0_7, %c0_8] : memref<1x16x128xbf16, #tpu.memory_space<vmem>>, vector<1x16x128xbf16>
    %10 = vector.shape_cast %9 : vector<1x16x128xbf16> to vector<16x128xbf16>
    %11 = arith.extf %10 : vector<16x128xbf16> to vector<16x128xf32>
    %12 = arith.addf %8, %11 : vector<16x128xf32>
    %13 = arith.truncf %12 : vector<16x128xf32> to vector<16x128xbf16>
    %c0_9 = arith.constant 0 : index
    %c0_10 = arith.constant 0 : index
    %c0_11 = arith.constant 0 : index
    %14 = vector.load %arg6[%c0_9, %c0_10, %c0_11] : memref<1x16x128xbf16, #tpu.memory_space<vmem>>, vector<1x16x128xbf16>
    %15 = vector.shape_cast %14 : vector<1x16x128xbf16> to vector<16x128xbf16>
    %16 = vector.shape_cast %13 : vector<16x128xbf16> to vector<1x16x128xbf16>
    tpu.vector_store %arg6[%c0_9, %c0_10, %c0_11], %16 {strides = array<i32>} : memref<1x16x128xbf16, #tpu.memory_space<vmem>>, vector<1x16x128xbf16>,
    return
  }
  func.func @transform_0(%arg0: i32, %arg1: i32) -> (i32, i32, i32) {
    %c0_i32 = arith.constant 0 : i32
    %c0_i32_0 = arith.constant 0 : i32
    return %arg0, %arg1, %c0_i32 : i32, i32, i32
  }
  func.func @transform_1(%arg0: i32, %arg1: i32) -> (i32, i32) {
    %c0_i32 = arith.constant 0 : i32
    %c0_i32_0 = arith.constant 0 : i32
    %c0_i32_1 = arith.constant 0 : i32
    return %c0_i32, %c0_i32_0 : i32, i32
  }
  func.func @transform_2(%arg0: i32, %arg1: i32) -> (i32, i32) {
    %c0_i32 = arith.constant 0 : i32
    %c0_i32_0 = arith.constant 0 : i32
    %c0_i32_1 = arith.constant 0 : i32
    return %c0_i32, %c0_i32_0 : i32, i32
  }
  func.func @transform_3(%arg0: i32, %arg1: i32) -> (i32, i32, i32) {
    %c0_i32 = arith.constant 0 : i32
    %c0_i32_0 = arith.constant 0 : i32
    return %arg0, %arg1, %c0_i32 : i32, i32, i32
  }
  func.func @transform_4(%arg0: i32, %arg1: i32) -> (i32, i32, i32) {
    %c0_i32 = arith.constant 0 : i32
    %c0_i32_0 = arith.constant 0 : i32
    return %arg0, %arg1, %c0_i32 : i32, i32, i32
  }
}

module attributes {stable_mosaic.version = 11 : i64} {
  func.func @_dw_stats_kernel(%arg0: i32, %arg1: i32, %arg2: memref<1x4x3200xbf16, #tpu.memory_space<vmem>>, %arg3: memref<25x128xbf16, #tpu.memory_space<vmem>>, %arg4: memref<1x4x128xbf16, #tpu.memory_space<vmem>>, %arg5: memref<1x1x8x128xf32, #tpu.memory_space<vmem>>, %arg6: memref<1x1x8x128xf32, #tpu.memory_space<vmem>>) attributes {dimension_semantics = [#tpu.dimension_semantics<parallel>, #tpu.dimension_semantics<parallel>], iteration_bounds = array<i64: 2, 1>, scalar_prefetch = 0 : i64, scratch_operands = 0 : i64, tpu.core_type = #tpu.core_type<tc>, window_params = [{transform_indices = @transform_0, window_bounds = array<i64: 1, 4, 3200>}, {pipeline_mode = #tpu.pipeline_mode<synchronous>, transform_indices = @transform_1, window_bounds = array<i64: 25, 128>}, {transform_indices = @transform_2, window_bounds = array<i64: 1, 4, 128>}, {transform_indices = @transform_3, window_bounds = array<i64: 1, 1, 8, 128>}, {transform_indices = @transform_4, window_bounds = array<i64: 1, 1, 8, 128>}]} {
    %c0 = arith.constant 0 : index
    %c0_0 = arith.constant 0 : index
    %0 = vector.load %arg3[%c0, %c0_0] : memref<25x128xbf16, #tpu.memory_space<vmem>>, vector<25x128xbf16>
    %1 = arith.extf %0 : vector<25x128xbf16> to vector<25x128xf32>
    %c0_1 = arith.constant 0 : index
    %c0_2 = arith.constant 0 : index
    %c0_3 = arith.constant 0 : index
    %2 = vector.load %arg2[%c0_1, %c0_2, %c0_3] : memref<1x4x3200xbf16, #tpu.memory_space<vmem>>, vector<1x4x128xbf16>
    %3 = vector.shape_cast %2 : vector<1x4x128xbf16> to vector<4x128xbf16>
    %4 = arith.extf %3 : vector<4x128xbf16> to vector<4x128xf32>
    %5 = vector.extract_strided_slice %1 {offsets = [0, 0], sizes = [1, 128], strides = [1, 1]} : vector<25x128xf32> to vector<1x128xf32>
    %6 = vector.broadcast %5 : vector<1x128xf32> to vector<4x128xf32>
    %7 = arith.mulf %4, %6 : vector<4x128xf32>
    %c0_4 = arith.constant 0 : index
    %c0_5 = arith.constant 0 : index
    %c128 = arith.constant 128 : index
    %8 = vector.load %arg2[%c0_4, %c0_5, %c128] : memref<1x4x3200xbf16, #tpu.memory_space<vmem>>, vector<1x4x128xbf16>
    %9 = vector.shape_cast %8 : vector<1x4x128xbf16> to vector<4x128xbf16>
    %10 = arith.extf %9 : vector<4x128xbf16> to vector<4x128xf32>
    %11 = vector.extract_strided_slice %1 {offsets = [1, 0], sizes = [1, 128], strides = [1, 1]} : vector<25x128xf32> to vector<1x128xf32>
    %12 = vector.broadcast %11 : vector<1x128xf32> to vector<4x128xf32>
    %13 = arith.mulf %10, %12 : vector<4x128xf32>
    %14 = arith.addf %7, %13 : vector<4x128xf32>
    %c0_6 = arith.constant 0 : index
    %c0_7 = arith.constant 0 : index
    %c256 = arith.constant 256 : index
    %15 = vector.load %arg2[%c0_6, %c0_7, %c256] : memref<1x4x3200xbf16, #tpu.memory_space<vmem>>, vector<1x4x128xbf16>
    %16 = vector.shape_cast %15 : vector<1x4x128xbf16> to vector<4x128xbf16>
    %17 = arith.extf %16 : vector<4x128xbf16> to vector<4x128xf32>
    %18 = vector.extract_strided_slice %1 {offsets = [2, 0], sizes = [1, 128], strides = [1, 1]} : vector<25x128xf32> to vector<1x128xf32>
    %19 = vector.broadcast %18 : vector<1x128xf32> to vector<4x128xf32>
    %20 = arith.mulf %17, %19 : vector<4x128xf32>
    %21 = arith.addf %14, %20 : vector<4x128xf32>
    %c0_8 = arith.constant 0 : index
    %c0_9 = arith.constant 0 : index
    %c384 = arith.constant 384 : index
    %22 = vector.load %arg2[%c0_8, %c0_9, %c384] : memref<1x4x3200xbf16, #tpu.memory_space<vmem>>, vector<1x4x128xbf16>
    %23 = vector.shape_cast %22 : vector<1x4x128xbf16> to vector<4x128xbf16>
    %24 = arith.extf %23 : vector<4x128xbf16> to vector<4x128xf32>
    %25 = vector.extract_strided_slice %1 {offsets = [3, 0], sizes = [1, 128], strides = [1, 1]} : vector<25x128xf32> to vector<1x128xf32>
    %26 = vector.broadcast %25 : vector<1x128xf32> to vector<4x128xf32>
    %27 = arith.mulf %24, %26 : vector<4x128xf32>
    %28 = arith.addf %21, %27 : vector<4x128xf32>
    %c0_10 = arith.constant 0 : index
    %c0_11 = arith.constant 0 : index
    %c512 = arith.constant 512 : index
    %29 = vector.load %arg2[%c0_10, %c0_11, %c512] : memref<1x4x3200xbf16, #tpu.memory_space<vmem>>, vector<1x4x128xbf16>
    %30 = vector.shape_cast %29 : vector<1x4x128xbf16> to vector<4x128xbf16>
    %31 = arith.extf %30 : vector<4x128xbf16> to vector<4x128xf32>
    %32 = vector.extract_strided_slice %1 {offsets = [4, 0], sizes = [1, 128], strides = [1, 1]} : vector<25x128xf32> to vector<1x128xf32>
    %33 = vector.broadcast %32 : vector<1x128xf32> to vector<4x128xf32>
    %34 = arith.mulf %31, %33 : vector<4x128xf32>
    %35 = arith.addf %28, %34 : vector<4x128xf32>
    %c0_12 = arith.constant 0 : index
    %c0_13 = arith.constant 0 : index
    %c640 = arith.constant 640 : index
    %36 = vector.load %arg2[%c0_12, %c0_13, %c640] : memref<1x4x3200xbf16, #tpu.memory_space<vmem>>, vector<1x4x128xbf16>
    %37 = vector.shape_cast %36 : vector<1x4x128xbf16> to vector<4x128xbf16>
    %38 = arith.extf %37 : vector<4x128xbf16> to vector<4x128xf32>
    %39 = vector.extract_strided_slice %1 {offsets = [5, 0], sizes = [1, 128], strides = [1, 1]} : vector<25x128xf32> to vector<1x128xf32>
    %40 = vector.broadcast %39 : vector<1x128xf32> to vector<4x128xf32>
    %41 = arith.mulf %38, %40 : vector<4x128xf32>
    %42 = arith.addf %35, %41 : vector<4x128xf32>
    %c0_14 = arith.constant 0 : index
    %c0_15 = arith.constant 0 : index
    %c768 = arith.constant 768 : index
    %43 = vector.load %arg2[%c0_14, %c0_15, %c768] : memref<1x4x3200xbf16, #tpu.memory_space<vmem>>, vector<1x4x128xbf16>
    %44 = vector.shape_cast %43 : vector<1x4x128xbf16> to vector<4x128xbf16>
    %45 = arith.extf %44 : vector<4x128xbf16> to vector<4x128xf32>
    %46 = vector.extract_strided_slice %1 {offsets = [6, 0], sizes = [1, 128], strides = [1, 1]} : vector<25x128xf32> to vector<1x128xf32>
    %47 = vector.broadcast %46 : vector<1x128xf32> to vector<4x128xf32>
    %48 = arith.mulf %45, %47 : vector<4x128xf32>
    %49 = arith.addf %42, %48 : vector<4x128xf32>
    %c0_16 = arith.constant 0 : index
    %c0_17 = arith.constant 0 : index
    %c896 = arith.constant 896 : index
    %50 = vector.load %arg2[%c0_16, %c0_17, %c896] : memref<1x4x3200xbf16, #tpu.memory_space<vmem>>, vector<1x4x128xbf16>
    %51 = vector.shape_cast %50 : vector<1x4x128xbf16> to vector<4x128xbf16>
    %52 = arith.extf %51 : vector<4x128xbf16> to vector<4x128xf32>
    %53 = vector.extract_strided_slice %1 {offsets = [7, 0], sizes = [1, 128], strides = [1, 1]} : vector<25x128xf32> to vector<1x128xf32>
    %54 = vector.broadcast %53 : vector<1x128xf32> to vector<4x128xf32>
    %55 = arith.mulf %52, %54 : vector<4x128xf32>
    %56 = arith.addf %49, %55 : vector<4x128xf32>
    %c0_18 = arith.constant 0 : index
    %c0_19 = arith.constant 0 : index
    %c1024 = arith.constant 1024 : index
    %57 = vector.load %arg2[%c0_18, %c0_19, %c1024] : memref<1x4x3200xbf16, #tpu.memory_space<vmem>>, vector<1x4x128xbf16>
    %58 = vector.shape_cast %57 : vector<1x4x128xbf16> to vector<4x128xbf16>
    %59 = arith.extf %58 : vector<4x128xbf16> to vector<4x128xf32>
    %60 = vector.extract_strided_slice %1 {offsets = [8, 0], sizes = [1, 128], strides = [1, 1]} : vector<25x128xf32> to vector<1x128xf32>
    %61 = vector.broadcast %60 : vector<1x128xf32> to vector<4x128xf32>
    %62 = arith.mulf %59, %61 : vector<4x128xf32>
    %63 = arith.addf %56, %62 : vector<4x128xf32>
    %c0_20 = arith.constant 0 : index
    %c0_21 = arith.constant 0 : index
    %c1152 = arith.constant 1152 : index
    %64 = vector.load %arg2[%c0_20, %c0_21, %c1152] : memref<1x4x3200xbf16, #tpu.memory_space<vmem>>, vector<1x4x128xbf16>
    %65 = vector.shape_cast %64 : vector<1x4x128xbf16> to vector<4x128xbf16>
    %66 = arith.extf %65 : vector<4x128xbf16> to vector<4x128xf32>
    %67 = vector.extract_strided_slice %1 {offsets = [9, 0], sizes = [1, 128], strides = [1, 1]} : vector<25x128xf32> to vector<1x128xf32>
    %68 = vector.broadcast %67 : vector<1x128xf32> to vector<4x128xf32>
    %69 = arith.mulf %66, %68 : vector<4x128xf32>
    %70 = arith.addf %63, %69 : vector<4x128xf32>
    %c0_22 = arith.constant 0 : index
    %c0_23 = arith.constant 0 : index
    %c1280 = arith.constant 1280 : index
    %71 = vector.load %arg2[%c0_22, %c0_23, %c1280] : memref<1x4x3200xbf16, #tpu.memory_space<vmem>>, vector<1x4x128xbf16>
    %72 = vector.shape_cast %71 : vector<1x4x128xbf16> to vector<4x128xbf16>
    %73 = arith.extf %72 : vector<4x128xbf16> to vector<4x128xf32>
    %74 = vector.extract_strided_slice %1 {offsets = [10, 0], sizes = [1, 128], strides = [1, 1]} : vector<25x128xf32> to vector<1x128xf32>
    %75 = vector.broadcast %74 : vector<1x128xf32> to vector<4x128xf32>
    %76 = arith.mulf %73, %75 : vector<4x128xf32>
    %77 = arith.addf %70, %76 : vector<4x128xf32>
    %c0_24 = arith.constant 0 : index
    %c0_25 = arith.constant 0 : index
    %c1408 = arith.constant 1408 : index
    %78 = vector.load %arg2[%c0_24, %c0_25, %c1408] : memref<1x4x3200xbf16, #tpu.memory_space<vmem>>, vector<1x4x128xbf16>
    %79 = vector.shape_cast %78 : vector<1x4x128xbf16> to vector<4x128xbf16>
    %80 = arith.extf %79 : vector<4x128xbf16> to vector<4x128xf32>
    %81 = vector.extract_strided_slice %1 {offsets = [11, 0], sizes = [1, 128], strides = [1, 1]} : vector<25x128xf32> to vector<1x128xf32>
    %82 = vector.broadcast %81 : vector<1x128xf32> to vector<4x128xf32>
    %83 = arith.mulf %80, %82 : vector<4x128xf32>
    %84 = arith.addf %77, %83 : vector<4x128xf32>
    %c0_26 = arith.constant 0 : index
    %c0_27 = arith.constant 0 : index
    %c1536 = arith.constant 1536 : index
    %85 = vector.load %arg2[%c0_26, %c0_27, %c1536] : memref<1x4x3200xbf16, #tpu.memory_space<vmem>>, vector<1x4x128xbf16>
    %86 = vector.shape_cast %85 : vector<1x4x128xbf16> to vector<4x128xbf16>
    %87 = arith.extf %86 : vector<4x128xbf16> to vector<4x128xf32>
    %88 = vector.extract_strided_slice %1 {offsets = [12, 0], sizes = [1, 128], strides = [1, 1]} : vector<25x128xf32> to vector<1x128xf32>
    %89 = vector.broadcast %88 : vector<1x128xf32> to vector<4x128xf32>
    %90 = arith.mulf %87, %89 : vector<4x128xf32>
    %91 = arith.addf %84, %90 : vector<4x128xf32>
    %c0_28 = arith.constant 0 : index
    %c0_29 = arith.constant 0 : index
    %c1664 = arith.constant 1664 : index
    %92 = vector.load %arg2[%c0_28, %c0_29, %c1664] : memref<1x4x3200xbf16, #tpu.memory_space<vmem>>, vector<1x4x128xbf16>
    %93 = vector.shape_cast %92 : vector<1x4x128xbf16> to vector<4x128xbf16>
    %94 = arith.extf %93 : vector<4x128xbf16> to vector<4x128xf32>
    %95 = vector.extract_strided_slice %1 {offsets = [13, 0], sizes = [1, 128], strides = [1, 1]} : vector<25x128xf32> to vector<1x128xf32>
    %96 = vector.broadcast %95 : vector<1x128xf32> to vector<4x128xf32>
    %97 = arith.mulf %94, %96 : vector<4x128xf32>
    %98 = arith.addf %91, %97 : vector<4x128xf32>
    %c0_30 = arith.constant 0 : index
    %c0_31 = arith.constant 0 : index
    %c1792 = arith.constant 1792 : index
    %99 = vector.load %arg2[%c0_30, %c0_31, %c1792] : memref<1x4x3200xbf16, #tpu.memory_space<vmem>>, vector<1x4x128xbf16>
    %100 = vector.shape_cast %99 : vector<1x4x128xbf16> to vector<4x128xbf16>
    %101 = arith.extf %100 : vector<4x128xbf16> to vector<4x128xf32>
    %102 = vector.extract_strided_slice %1 {offsets = [14, 0], sizes = [1, 128], strides = [1, 1]} : vector<25x128xf32> to vector<1x128xf32>
    %103 = vector.broadcast %102 : vector<1x128xf32> to vector<4x128xf32>
    %104 = arith.mulf %101, %103 : vector<4x128xf32>
    %105 = arith.addf %98, %104 : vector<4x128xf32>
    %c0_32 = arith.constant 0 : index
    %c0_33 = arith.constant 0 : index
    %c1920 = arith.constant 1920 : index
    %106 = vector.load %arg2[%c0_32, %c0_33, %c1920] : memref<1x4x3200xbf16, #tpu.memory_space<vmem>>, vector<1x4x128xbf16>
    %107 = vector.shape_cast %106 : vector<1x4x128xbf16> to vector<4x128xbf16>
    %108 = arith.extf %107 : vector<4x128xbf16> to vector<4x128xf32>
    %109 = vector.extract_strided_slice %1 {offsets = [15, 0], sizes = [1, 128], strides = [1, 1]} : vector<25x128xf32> to vector<1x128xf32>
    %110 = vector.broadcast %109 : vector<1x128xf32> to vector<4x128xf32>
    %111 = arith.mulf %108, %110 : vector<4x128xf32>
    %112 = arith.addf %105, %111 : vector<4x128xf32>
    %c0_34 = arith.constant 0 : index
    %c0_35 = arith.constant 0 : index
    %c2048 = arith.constant 2048 : index
    %113 = vector.load %arg2[%c0_34, %c0_35, %c2048] : memref<1x4x3200xbf16, #tpu.memory_space<vmem>>, vector<1x4x128xbf16>
    %114 = vector.shape_cast %113 : vector<1x4x128xbf16> to vector<4x128xbf16>
    %115 = arith.extf %114 : vector<4x128xbf16> to vector<4x128xf32>
    %116 = vector.extract_strided_slice %1 {offsets = [16, 0], sizes = [1, 128], strides = [1, 1]} : vector<25x128xf32> to vector<1x128xf32>
    %117 = vector.broadcast %116 : vector<1x128xf32> to vector<4x128xf32>
    %118 = arith.mulf %115, %117 : vector<4x128xf32>
    %119 = arith.addf %112, %118 : vector<4x128xf32>
    %c0_36 = arith.constant 0 : index
    %c0_37 = arith.constant 0 : index
    %c2176 = arith.constant 2176 : index
    %120 = vector.load %arg2[%c0_36, %c0_37, %c2176] : memref<1x4x3200xbf16, #tpu.memory_space<vmem>>, vector<1x4x128xbf16>
    %121 = vector.shape_cast %120 : vector<1x4x128xbf16> to vector<4x128xbf16>
    %122 = arith.extf %121 : vector<4x128xbf16> to vector<4x128xf32>
    %123 = vector.extract_strided_slice %1 {offsets = [17, 0], sizes = [1, 128], strides = [1, 1]} : vector<25x128xf32> to vector<1x128xf32>
    %124 = vector.broadcast %123 : vector<1x128xf32> to vector<4x128xf32>
    %125 = arith.mulf %122, %124 : vector<4x128xf32>
    %126 = arith.addf %119, %125 : vector<4x128xf32>
    %c0_38 = arith.constant 0 : index
    %c0_39 = arith.constant 0 : index
    %c2304 = arith.constant 2304 : index
    %127 = vector.load %arg2[%c0_38, %c0_39, %c2304] : memref<1x4x3200xbf16, #tpu.memory_space<vmem>>, vector<1x4x128xbf16>
    %128 = vector.shape_cast %127 : vector<1x4x128xbf16> to vector<4x128xbf16>
    %129 = arith.extf %128 : vector<4x128xbf16> to vector<4x128xf32>
    %130 = vector.extract_strided_slice %1 {offsets = [18, 0], sizes = [1, 128], strides = [1, 1]} : vector<25x128xf32> to vector<1x128xf32>
    %131 = vector.broadcast %130 : vector<1x128xf32> to vector<4x128xf32>
    %132 = arith.mulf %129, %131 : vector<4x128xf32>
    %133 = arith.addf %126, %132 : vector<4x128xf32>
    %c0_40 = arith.constant 0 : index
    %c0_41 = arith.constant 0 : index
    %c2432 = arith.constant 2432 : index
    %134 = vector.load %arg2[%c0_40, %c0_41, %c2432] : memref<1x4x3200xbf16, #tpu.memory_space<vmem>>, vector<1x4x128xbf16>
    %135 = vector.shape_cast %134 : vector<1x4x128xbf16> to vector<4x128xbf16>
    %136 = arith.extf %135 : vector<4x128xbf16> to vector<4x128xf32>
    %137 = vector.extract_strided_slice %1 {offsets = [19, 0], sizes = [1, 128], strides = [1, 1]} : vector<25x128xf32> to vector<1x128xf32>
    %138 = vector.broadcast %137 : vector<1x128xf32> to vector<4x128xf32>
    %139 = arith.mulf %136, %138 : vector<4x128xf32>
    %140 = arith.addf %133, %139 : vector<4x128xf32>
    %c0_42 = arith.constant 0 : index
    %c0_43 = arith.constant 0 : index
    %c2560 = arith.constant 2560 : index
    %141 = vector.load %arg2[%c0_42, %c0_43, %c2560] : memref<1x4x3200xbf16, #tpu.memory_space<vmem>>, vector<1x4x128xbf16>
    %142 = vector.shape_cast %141 : vector<1x4x128xbf16> to vector<4x128xbf16>
    %143 = arith.extf %142 : vector<4x128xbf16> to vector<4x128xf32>
    %144 = vector.extract_strided_slice %1 {offsets = [20, 0], sizes = [1, 128], strides = [1, 1]} : vector<25x128xf32> to vector<1x128xf32>
    %145 = vector.broadcast %144 : vector<1x128xf32> to vector<4x128xf32>
    %146 = arith.mulf %143, %145 : vector<4x128xf32>
    %147 = arith.addf %140, %146 : vector<4x128xf32>
    %c0_44 = arith.constant 0 : index
    %c0_45 = arith.constant 0 : index
    %c2688 = arith.constant 2688 : index
    %148 = vector.load %arg2[%c0_44, %c0_45, %c2688] : memref<1x4x3200xbf16, #tpu.memory_space<vmem>>, vector<1x4x128xbf16>
    %149 = vector.shape_cast %148 : vector<1x4x128xbf16> to vector<4x128xbf16>
    %150 = arith.extf %149 : vector<4x128xbf16> to vector<4x128xf32>
    %151 = vector.extract_strided_slice %1 {offsets = [21, 0], sizes = [1, 128], strides = [1, 1]} : vector<25x128xf32> to vector<1x128xf32>
    %152 = vector.broadcast %151 : vector<1x128xf32> to vector<4x128xf32>
    %153 = arith.mulf %150, %152 : vector<4x128xf32>
    %154 = arith.addf %147, %153 : vector<4x128xf32>
    %c0_46 = arith.constant 0 : index
    %c0_47 = arith.constant 0 : index
    %c2816 = arith.constant 2816 : index
    %155 = vector.load %arg2[%c0_46, %c0_47, %c2816] : memref<1x4x3200xbf16, #tpu.memory_space<vmem>>, vector<1x4x128xbf16>
    %156 = vector.shape_cast %155 : vector<1x4x128xbf16> to vector<4x128xbf16>
    %157 = arith.extf %156 : vector<4x128xbf16> to vector<4x128xf32>
    %158 = vector.extract_strided_slice %1 {offsets = [22, 0], sizes = [1, 128], strides = [1, 1]} : vector<25x128xf32> to vector<1x128xf32>
    %159 = vector.broadcast %158 : vector<1x128xf32> to vector<4x128xf32>
    %160 = arith.mulf %157, %159 : vector<4x128xf32>
    %161 = arith.addf %154, %160 : vector<4x128xf32>
    %c0_48 = arith.constant 0 : index
    %c0_49 = arith.constant 0 : index
    %c2944 = arith.constant 2944 : index
    %162 = vector.load %arg2[%c0_48, %c0_49, %c2944] : memref<1x4x3200xbf16, #tpu.memory_space<vmem>>, vector<1x4x128xbf16>
    %163 = vector.shape_cast %162 : vector<1x4x128xbf16> to vector<4x128xbf16>
    %164 = arith.extf %163 : vector<4x128xbf16> to vector<4x128xf32>
    %165 = vector.extract_strided_slice %1 {offsets = [23, 0], sizes = [1, 128], strides = [1, 1]} : vector<25x128xf32> to vector<1x128xf32>
    %166 = vector.broadcast %165 : vector<1x128xf32> to vector<4x128xf32>
    %167 = arith.mulf %164, %166 : vector<4x128xf32>
    %168 = arith.addf %161, %167 : vector<4x128xf32>
    %c0_50 = arith.constant 0 : index
    %c0_51 = arith.constant 0 : index
    %c3072 = arith.constant 3072 : index
    %169 = vector.load %arg2[%c0_50, %c0_51, %c3072] : memref<1x4x3200xbf16, #tpu.memory_space<vmem>>, vector<1x4x128xbf16>
    %170 = vector.shape_cast %169 : vector<1x4x128xbf16> to vector<4x128xbf16>
    %171 = arith.extf %170 : vector<4x128xbf16> to vector<4x128xf32>
    %172 = vector.extract_strided_slice %1 {offsets = [24, 0], sizes = [1, 128], strides = [1, 1]} : vector<25x128xf32> to vector<1x128xf32>
    %173 = vector.broadcast %172 : vector<1x128xf32> to vector<4x128xf32>
    %174 = arith.mulf %171, %173 : vector<4x128xf32>
    %175 = arith.addf %168, %174 : vector<4x128xf32>
    %176 = arith.truncf %175 : vector<4x128xf32> to vector<4x128xbf16>
    %c0_52 = arith.constant 0 : index
    %c0_53 = arith.constant 0 : index
    %c0_54 = arith.constant 0 : index
    %177 = vector.load %arg4[%c0_52, %c0_53, %c0_54] : memref<1x4x128xbf16, #tpu.memory_space<vmem>>, vector<1x4x128xbf16>
    %178 = vector.shape_cast %177 : vector<1x4x128xbf16> to vector<4x128xbf16>
    %179 = vector.shape_cast %176 : vector<4x128xbf16> to vector<1x4x128xbf16>
    tpu.vector_store %arg4[%c0_52, %c0_53, %c0_54], %179 {strides = array<i32>} : memref<1x4x128xbf16, #tpu.memory_space<vmem>>, vector<1x4x128xbf16>,
    %cst = arith.constant dense<0.000000e+00> : vector<128xf32>
    %180 = vector.multi_reduction <add>, %175, %cst [0] : vector<4x128xf32> to vector<128xf32>
    %181 = vector.shape_cast %180 : vector<128xf32> to vector<1x128xf32>
    %182 = vector.shape_cast %181 : vector<1x128xf32> to vector<1x128xf32>
    %183 = vector.broadcast %182 : vector<1x128xf32> to vector<8x128xf32>
    %c0_55 = arith.constant 0 : index
    %c0_56 = arith.constant 0 : index
    %c0_57 = arith.constant 0 : index
    %c0_58 = arith.constant 0 : index
    %184 = vector.load %arg5[%c0_55, %c0_56, %c0_57, %c0_58] : memref<1x1x8x128xf32, #tpu.memory_space<vmem>>, vector<1x1x8x128xf32>
    %185 = vector.shape_cast %184 : vector<1x1x8x128xf32> to vector<8x128xf32>
    %186 = vector.shape_cast %183 : vector<8x128xf32> to vector<1x1x8x128xf32>
    tpu.vector_store %arg5[%c0_55, %c0_56, %c0_57, %c0_58], %186 {strides = array<i32>} : memref<1x1x8x128xf32, #tpu.memory_space<vmem>>, vector<1x1x8x128xf32>,
    %187 = arith.mulf %175, %175 : vector<4x128xf32>
    %cst_59 = arith.constant dense<0.000000e+00> : vector<128xf32>
    %188 = vector.multi_reduction <add>, %187, %cst_59 [0] : vector<4x128xf32> to vector<128xf32>
    %189 = vector.shape_cast %188 : vector<128xf32> to vector<1x128xf32>
    %190 = vector.shape_cast %189 : vector<1x128xf32> to vector<1x128xf32>
    %191 = vector.broadcast %190 : vector<1x128xf32> to vector<8x128xf32>
    %c0_60 = arith.constant 0 : index
    %c0_61 = arith.constant 0 : index
    %c0_62 = arith.constant 0 : index
    %c0_63 = arith.constant 0 : index
    %192 = vector.load %arg6[%c0_60, %c0_61, %c0_62, %c0_63] : memref<1x1x8x128xf32, #tpu.memory_space<vmem>>, vector<1x1x8x128xf32>
    %193 = vector.shape_cast %192 : vector<1x1x8x128xf32> to vector<8x128xf32>
    %194 = vector.shape_cast %191 : vector<8x128xf32> to vector<1x1x8x128xf32>
    tpu.vector_store %arg6[%c0_60, %c0_61, %c0_62, %c0_63], %194 {strides = array<i32>} : memref<1x1x8x128xf32, #tpu.memory_space<vmem>>, vector<1x1x8x128xf32>,
    return
  }
  func.func @transform_0(%arg0: i32, %arg1: i32) -> (i32, i32, i32) {
    %c0_i32 = arith.constant 0 : i32
    %c0_i32_0 = arith.constant 0 : i32
    return %arg0, %arg1, %c0_i32 : i32, i32, i32
  }
  func.func @transform_1(%arg0: i32, %arg1: i32) -> (i32, i32) {
    %c0_i32 = arith.constant 0 : i32
    %c0_i32_0 = arith.constant 0 : i32
    %c0_i32_1 = arith.constant 0 : i32
    return %c0_i32, %c0_i32_0 : i32, i32
  }
  func.func @transform_2(%arg0: i32, %arg1: i32) -> (i32, i32, i32) {
    %c0_i32 = arith.constant 0 : i32
    %c0_i32_0 = arith.constant 0 : i32
    return %arg0, %arg1, %c0_i32 : i32, i32, i32
  }
  func.func @transform_3(%arg0: i32, %arg1: i32) -> (i32, i32, i32, i32) {
    %c0_i32 = arith.constant 0 : i32
    %c0_i32_0 = arith.constant 0 : i32
    %c0_i32_1 = arith.constant 0 : i32
    return %arg0, %arg1, %c0_i32, %c0_i32_0 : i32, i32, i32, i32
  }
  func.func @transform_4(%arg0: i32, %arg1: i32) -> (i32, i32, i32, i32) {
    %c0_i32 = arith.constant 0 : i32
    %c0_i32_0 = arith.constant 0 : i32
    %c0_i32_1 = arith.constant 0 : i32
    return %arg0, %arg1, %c0_i32, %c0_i32_0 : i32, i32, i32, i32
  }
}

module attributes {stable_mosaic.version = 11 : i64} {
  func.func @_bn_act_kernel(%arg0: i32, %arg1: i32, %arg2: memref<1x4x128xbf16, #tpu.memory_space<vmem>>, %arg3: memref<1x128xf32, #tpu.memory_space<vmem>>, %arg4: memref<1x128xf32, #tpu.memory_space<vmem>>, %arg5: memref<1x4x128xbf16, #tpu.memory_space<vmem>>, %arg6: memref<1x1x8x128xf32, #tpu.memory_space<vmem>>) attributes {dimension_semantics = [#tpu.dimension_semantics<parallel>, #tpu.dimension_semantics<parallel>], iteration_bounds = array<i64: 2, 1>, scalar_prefetch = 0 : i64, scratch_operands = 0 : i64, tpu.core_type = #tpu.core_type<tc>, window_params = [{transform_indices = @transform_0, window_bounds = array<i64: 1, 4, 128>}, {pipeline_mode = #tpu.pipeline_mode<synchronous>, transform_indices = @transform_1, window_bounds = array<i64: 1, 128>}, {pipeline_mode = #tpu.pipeline_mode<synchronous>, transform_indices = @transform_2, window_bounds = array<i64: 1, 128>}, {transform_indices = @transform_3, window_bounds = array<i64: 1, 4, 128>}, {transform_indices = @transform_4, window_bounds = array<i64: 1, 1, 8, 128>}]} {
    %c0 = arith.constant 0 : index
    %c0_0 = arith.constant 0 : index
    %c0_1 = arith.constant 0 : index
    %0 = vector.load %arg2[%c0, %c0_0, %c0_1] : memref<1x4x128xbf16, #tpu.memory_space<vmem>>, vector<1x4x128xbf16>
    %1 = vector.shape_cast %0 : vector<1x4x128xbf16> to vector<4x128xbf16>
    %2 = arith.extf %1 : vector<4x128xbf16> to vector<4x128xf32>
    %c0_2 = arith.constant 0 : index
    %c0_3 = arith.constant 0 : index
    %3 = vector.load %arg3[%c0_2, %c0_3] : memref<1x128xf32, #tpu.memory_space<vmem>>, vector<1x128xf32>
    %4 = vector.broadcast %3 : vector<1x128xf32> to vector<4x128xf32>
    %5 = arith.mulf %2, %4 : vector<4x128xf32>
    %c0_4 = arith.constant 0 : index
    %c0_5 = arith.constant 0 : index
    %6 = vector.load %arg4[%c0_4, %c0_5] : memref<1x128xf32, #tpu.memory_space<vmem>>, vector<1x128xf32>
    %7 = vector.broadcast %6 : vector<1x128xf32> to vector<4x128xf32>
    %8 = arith.addf %5, %7 : vector<4x128xf32>
    %cst = arith.constant 3.000000e+00 : f32
    %9 = vector.broadcast %cst : f32 to vector<4x128xf32>
    %10 = arith.addf %8, %9 : vector<4x128xf32>
    %cst_6 = arith.constant 0.000000e+00 : f32
    %cst_7 = arith.constant 6.000000e+00 : f32
    %11 = vector.broadcast %cst_6 : f32 to vector<4x128xf32>
    %12 = arith.maximumf %11, %10 : vector<4x128xf32>
    %13 = vector.broadcast %cst_7 : f32 to vector<4x128xf32>
    %14 = arith.minimumf %13, %12 : vector<4x128xf32>
    %15 = arith.mulf %8, %14 : vector<4x128xf32>
    %cst_8 = arith.constant 0.166666672 : f32
    %16 = vector.broadcast %cst_8 : f32 to vector<4x128xf32>
    %17 = arith.mulf %15, %16 : vector<4x128xf32>
    %18 = arith.truncf %17 : vector<4x128xf32> to vector<4x128xbf16>
    %c0_9 = arith.constant 0 : index
    %c0_10 = arith.constant 0 : index
    %c0_11 = arith.constant 0 : index
    %19 = vector.load %arg5[%c0_9, %c0_10, %c0_11] : memref<1x4x128xbf16, #tpu.memory_space<vmem>>, vector<1x4x128xbf16>
    %20 = vector.shape_cast %19 : vector<1x4x128xbf16> to vector<4x128xbf16>
    %21 = vector.shape_cast %18 : vector<4x128xbf16> to vector<1x4x128xbf16>
    tpu.vector_store %arg5[%c0_9, %c0_10, %c0_11], %21 {strides = array<i32>} : memref<1x4x128xbf16, #tpu.memory_space<vmem>>, vector<1x4x128xbf16>,
    %cst_12 = arith.constant dense<0.000000e+00> : vector<128xf32>
    %22 = vector.multi_reduction <add>, %17, %cst_12 [0] : vector<4x128xf32> to vector<128xf32>
    %23 = vector.shape_cast %22 : vector<128xf32> to vector<1x128xf32>
    %24 = vector.shape_cast %23 : vector<1x128xf32> to vector<1x128xf32>
    %25 = vector.broadcast %24 : vector<1x128xf32> to vector<8x128xf32>
    %c0_13 = arith.constant 0 : index
    %c0_14 = arith.constant 0 : index
    %c0_15 = arith.constant 0 : index
    %c0_16 = arith.constant 0 : index
    %26 = vector.load %arg6[%c0_13, %c0_14, %c0_15, %c0_16] : memref<1x1x8x128xf32, #tpu.memory_space<vmem>>, vector<1x1x8x128xf32>
    %27 = vector.shape_cast %26 : vector<1x1x8x128xf32> to vector<8x128xf32>
    %28 = vector.shape_cast %25 : vector<8x128xf32> to vector<1x1x8x128xf32>
    tpu.vector_store %arg6[%c0_13, %c0_14, %c0_15, %c0_16], %28 {strides = array<i32>} : memref<1x1x8x128xf32, #tpu.memory_space<vmem>>, vector<1x1x8x128xf32>,
    return
  }
  func.func @transform_0(%arg0: i32, %arg1: i32) -> (i32, i32, i32) {
    %c0_i32 = arith.constant 0 : i32
    %c0_i32_0 = arith.constant 0 : i32
    return %arg0, %arg1, %c0_i32 : i32, i32, i32
  }
  func.func @transform_1(%arg0: i32, %arg1: i32) -> (i32, i32) {
    %c0_i32 = arith.constant 0 : i32
    %c0_i32_0 = arith.constant 0 : i32
    %c0_i32_1 = arith.constant 0 : i32
    return %c0_i32, %c0_i32_0 : i32, i32
  }
  func.func @transform_2(%arg0: i32, %arg1: i32) -> (i32, i32) {
    %c0_i32 = arith.constant 0 : i32
    %c0_i32_0 = arith.constant 0 : i32
    %c0_i32_1 = arith.constant 0 : i32
    return %c0_i32, %c0_i32_0 : i32, i32
  }
  func.func @transform_3(%arg0: i32, %arg1: i32) -> (i32, i32, i32) {
    %c0_i32 = arith.constant 0 : i32
    %c0_i32_0 = arith.constant 0 : i32
    return %arg0, %arg1, %c0_i32 : i32, i32, i32
  }
  func.func @transform_4(%arg0: i32, %arg1: i32) -> (i32, i32, i32, i32) {
    %c0_i32 = arith.constant 0 : i32
    %c0_i32_0 = arith.constant 0 : i32
    %c0_i32_1 = arith.constant 0 : i32
    return %arg0, %arg1, %c0_i32, %c0_i32_0 : i32, i32, i32, i32
  }
}

module attributes {stable_mosaic.version = 11 : i64} {
  func.func @_bn_act_kernel(%arg0: i32, %arg1: i32, %arg2: memref<1x4x128xbf16, #tpu.memory_space<vmem>>, %arg3: memref<1x128xf32, #tpu.memory_space<vmem>>, %arg4: memref<1x128xf32, #tpu.memory_space<vmem>>, %arg5: memref<1x4x128xbf16, #tpu.memory_space<vmem>>) attributes {dimension_semantics = [#tpu.dimension_semantics<parallel>, #tpu.dimension_semantics<parallel>], iteration_bounds = array<i64: 2, 1>, scalar_prefetch = 0 : i64, scratch_operands = 0 : i64, tpu.core_type = #tpu.core_type<tc>, window_params = [{transform_indices = @transform_0, window_bounds = array<i64: 1, 4, 128>}, {pipeline_mode = #tpu.pipeline_mode<synchronous>, transform_indices = @transform_1, window_bounds = array<i64: 1, 128>}, {pipeline_mode = #tpu.pipeline_mode<synchronous>, transform_indices = @transform_2, window_bounds = array<i64: 1, 128>}, {transform_indices = @transform_3, window_bounds = array<i64: 1, 4, 128>}]} {
    %c0 = arith.constant 0 : index
    %c0_0 = arith.constant 0 : index
    %c0_1 = arith.constant 0 : index
    %0 = vector.load %arg2[%c0, %c0_0, %c0_1] : memref<1x4x128xbf16, #tpu.memory_space<vmem>>, vector<1x4x128xbf16>
    %1 = vector.shape_cast %0 : vector<1x4x128xbf16> to vector<4x128xbf16>
    %2 = arith.extf %1 : vector<4x128xbf16> to vector<4x128xf32>
    %c0_2 = arith.constant 0 : index
    %c0_3 = arith.constant 0 : index
    %3 = vector.load %arg3[%c0_2, %c0_3] : memref<1x128xf32, #tpu.memory_space<vmem>>, vector<1x128xf32>
    %4 = vector.broadcast %3 : vector<1x128xf32> to vector<4x128xf32>
    %5 = arith.mulf %2, %4 : vector<4x128xf32>
    %c0_4 = arith.constant 0 : index
    %c0_5 = arith.constant 0 : index
    %6 = vector.load %arg4[%c0_4, %c0_5] : memref<1x128xf32, #tpu.memory_space<vmem>>, vector<1x128xf32>
    %7 = vector.broadcast %6 : vector<1x128xf32> to vector<4x128xf32>
    %8 = arith.addf %5, %7 : vector<4x128xf32>
    %9 = arith.truncf %8 : vector<4x128xf32> to vector<4x128xbf16>
    %c0_6 = arith.constant 0 : index
    %c0_7 = arith.constant 0 : index
    %c0_8 = arith.constant 0 : index
    %10 = vector.load %arg5[%c0_6, %c0_7, %c0_8] : memref<1x4x128xbf16, #tpu.memory_space<vmem>>, vector<1x4x128xbf16>
    %11 = vector.shape_cast %10 : vector<1x4x128xbf16> to vector<4x128xbf16>
    %12 = vector.shape_cast %9 : vector<4x128xbf16> to vector<1x4x128xbf16>
    tpu.vector_store %arg5[%c0_6, %c0_7, %c0_8], %12 {strides = array<i32>} : memref<1x4x128xbf16, #tpu.memory_space<vmem>>, vector<1x4x128xbf16>,
    return
  }
  func.func @transform_0(%arg0: i32, %arg1: i32) -> (i32, i32, i32) {
    %c0_i32 = arith.constant 0 : i32
    %c0_i32_0 = arith.constant 0 : i32
    return %arg0, %arg1, %c0_i32 : i32, i32, i32
  }
  func.func @transform_1(%arg0: i32, %arg1: i32) -> (i32, i32) {
    %c0_i32 = arith.constant 0 : i32
    %c0_i32_0 = arith.constant 0 : i32
    %c0_i32_1 = arith.constant 0 : i32
    return %c0_i32, %c0_i32_0 : i32, i32
  }
  func.func @transform_2(%arg0: i32, %arg1: i32) -> (i32, i32) {
    %c0_i32 = arith.constant 0 : i32
    %c0_i32_0 = arith.constant 0 : i32
    %c0_i32_1 = arith.constant 0 : i32
    return %c0_i32, %c0_i32_0 : i32, i32
  }
  func.func @transform_3(%arg0: i32, %arg1: i32) -> (i32, i32, i32) {
    %c0_i32 = arith.constant 0 : i32
    %c0_i32_0 = arith.constant 0 : i32
    return %arg0, %arg1, %c0_i32 : i32, i32, i32
  }
}

module attributes {stable_mosaic.version = 11 : i64} {
  func.func @_gemm_stats_kernel(%arg0: i32, %arg1: i32, %arg2: memref<1x4x128xbf16, #tpu.memory_space<vmem>>, %arg3: memref<128x128xbf16, #tpu.memory_space<vmem>>, %arg4: memref<1x8x128xf32, #tpu.memory_space<vmem>>, %arg5: memref<1x4x128xbf16, #tpu.memory_space<vmem>>, %arg6: memref<1x1x8x128xf32, #tpu.memory_space<vmem>>, %arg7: memref<1x1x8x128xf32, #tpu.memory_space<vmem>>) attributes {dimension_semantics = [#tpu.dimension_semantics<parallel>, #tpu.dimension_semantics<parallel>], iteration_bounds = array<i64: 2, 1>, scalar_prefetch = 0 : i64, scratch_operands = 0 : i64, tpu.core_type = #tpu.core_type<tc>, window_params = [{transform_indices = @transform_0, window_bounds = array<i64: 1, 4, 128>}, {pipeline_mode = #tpu.pipeline_mode<synchronous>, transform_indices = @transform_1, window_bounds = array<i64: 128, 128>}, {transform_indices = @transform_2, window_bounds = array<i64: 1, 8, 128>}, {transform_indices = @transform_3, window_bounds = array<i64: 1, 4, 128>}, {transform_indices = @transform_4, window_bounds = array<i64: 1, 1, 8, 128>}, {transform_indices = @transform_5, window_bounds = array<i64: 1, 1, 8, 128>}]} {
    %c0 = arith.constant 0 : index
    %c0_0 = arith.constant 0 : index
    %c0_1 = arith.constant 0 : index
    %0 = vector.load %arg2[%c0, %c0_0, %c0_1] : memref<1x4x128xbf16, #tpu.memory_space<vmem>>, vector<1x4x128xbf16>
    %1 = vector.shape_cast %0 : vector<1x4x128xbf16> to vector<4x128xbf16>
    %c0_2 = arith.constant 0 : index
    %c0_3 = arith.constant 0 : index
    %c0_4 = arith.constant 0 : index
    %2 = vector.load %arg4[%c0_2, %c0_3, %c0_4] : memref<1x8x128xf32, #tpu.memory_space<vmem>>, vector<1x8x128xf32>
    %3 = vector.shape_cast %2 : vector<1x8x128xf32> to vector<8x128xf32>
    %4 = vector.extract_strided_slice %3 {offsets = [0, 0], sizes = [1, 128], strides = [1, 1]} : vector<8x128xf32> to vector<1x128xf32>
    %5 = arith.extf %1 : vector<4x128xbf16> to vector<4x128xf32>
    %6 = vector.broadcast %4 : vector<1x128xf32> to vector<4x128xf32>
    %7 = arith.mulf %5, %6 : vector<4x128xf32>
    %8 = arith.truncf %7 : vector<4x128xf32> to vector<4x128xbf16>
    %c0_5 = arith.constant 0 : index
    %c0_6 = arith.constant 0 : index
    %9 = vector.load %arg3[%c0_5, %c0_6] : memref<128x128xbf16, #tpu.memory_space<vmem>>, vector<128x128xbf16>
    %cst = arith.constant dense<0.000000e+00> : vector<4x128xf32>
    %10 = tpu.matmul %8, %9, %cst {dimension_numbers = #tpu.dot_dimension_numbers<[1], [0], [0], [1], [0, 0, 1, 1], [], []>} : vector<4x128xbf16>, vector<128x128xbf16>, vector<4x128xf32> -> vector<4x128xf32>
    %11 = arith.truncf %10 : vector<4x128xf32> to vector<4x128xbf16>
    %c0_7 = arith.constant 0 : index
    %c0_8 = arith.constant 0 : index
    %c0_9 = arith.constant 0 : index
    %12 = vector.load %arg5[%c0_7, %c0_8, %c0_9] : memref<1x4x128xbf16, #tpu.memory_space<vmem>>, vector<1x4x128xbf16>
    %13 = vector.shape_cast %12 : vector<1x4x128xbf16> to vector<4x128xbf16>
    %14 = vector.shape_cast %11 : vector<4x128xbf16> to vector<1x4x128xbf16>
    tpu.vector_store %arg5[%c0_7, %c0_8, %c0_9], %14 {strides = array<i32>} : memref<1x4x128xbf16, #tpu.memory_space<vmem>>, vector<1x4x128xbf16>,
    %cst_10 = arith.constant dense<0.000000e+00> : vector<128xf32>
    %15 = vector.multi_reduction <add>, %10, %cst_10 [0] : vector<4x128xf32> to vector<128xf32>
    %16 = vector.shape_cast %15 : vector<128xf32> to vector<1x128xf32>
    %17 = vector.shape_cast %16 : vector<1x128xf32> to vector<1x128xf32>
    %18 = vector.broadcast %17 : vector<1x128xf32> to vector<8x128xf32>
    %c0_11 = arith.constant 0 : index
    %c0_12 = arith.constant 0 : index
    %c0_13 = arith.constant 0 : index
    %c0_14 = arith.constant 0 : index
    %19 = vector.load %arg6[%c0_11, %c0_12, %c0_13, %c0_14] : memref<1x1x8x128xf32, #tpu.memory_space<vmem>>, vector<1x1x8x128xf32>
    %20 = vector.shape_cast %19 : vector<1x1x8x128xf32> to vector<8x128xf32>
    %21 = vector.shape_cast %18 : vector<8x128xf32> to vector<1x1x8x128xf32>
    tpu.vector_store %arg6[%c0_11, %c0_12, %c0_13, %c0_14], %21 {strides = array<i32>} : memref<1x1x8x128xf32, #tpu.memory_space<vmem>>, vector<1x1x8x128xf32>,
    %22 = arith.mulf %10, %10 : vector<4x128xf32>
    %cst_15 = arith.constant dense<0.000000e+00> : vector<128xf32>
    %23 = vector.multi_reduction <add>, %22, %cst_15 [0] : vector<4x128xf32> to vector<128xf32>
    %24 = vector.shape_cast %23 : vector<128xf32> to vector<1x128xf32>
    %25 = vector.shape_cast %24 : vector<1x128xf32> to vector<1x128xf32>
    %26 = vector.broadcast %25 : vector<1x128xf32> to vector<8x128xf32>
    %c0_16 = arith.constant 0 : index
    %c0_17 = arith.constant 0 : index
    %c0_18 = arith.constant 0 : index
    %c0_19 = arith.constant 0 : index
    %27 = vector.load %arg7[%c0_16, %c0_17, %c0_18, %c0_19] : memref<1x1x8x128xf32, #tpu.memory_space<vmem>>, vector<1x1x8x128xf32>
    %28 = vector.shape_cast %27 : vector<1x1x8x128xf32> to vector<8x128xf32>
    %29 = vector.shape_cast %26 : vector<8x128xf32> to vector<1x1x8x128xf32>
    tpu.vector_store %arg7[%c0_16, %c0_17, %c0_18, %c0_19], %29 {strides = array<i32>} : memref<1x1x8x128xf32, #tpu.memory_space<vmem>>, vector<1x1x8x128xf32>,
    return
  }
  func.func @transform_0(%arg0: i32, %arg1: i32) -> (i32, i32, i32) {
    %c0_i32 = arith.constant 0 : i32
    %c0_i32_0 = arith.constant 0 : i32
    return %arg0, %arg1, %c0_i32 : i32, i32, i32
  }
  func.func @transform_1(%arg0: i32, %arg1: i32) -> (i32, i32) {
    %c0_i32 = arith.constant 0 : i32
    %c0_i32_0 = arith.constant 0 : i32
    %c0_i32_1 = arith.constant 0 : i32
    return %c0_i32, %c0_i32_0 : i32, i32
  }
  func.func @transform_2(%arg0: i32, %arg1: i32) -> (i32, i32, i32) {
    %c0_i32 = arith.constant 0 : i32
    %c0_i32_0 = arith.constant 0 : i32
    %c0_i32_1 = arith.constant 0 : i32
    return %arg0, %c0_i32, %c0_i32_0 : i32, i32, i32
  }
  func.func @transform_3(%arg0: i32, %arg1: i32) -> (i32, i32, i32) {
    %c0_i32 = arith.constant 0 : i32
    %c0_i32_0 = arith.constant 0 : i32
    return %arg0, %arg1, %c0_i32 : i32, i32, i32
  }
  func.func @transform_4(%arg0: i32, %arg1: i32) -> (i32, i32, i32, i32) {
    %c0_i32 = arith.constant 0 : i32
    %c0_i32_0 = arith.constant 0 : i32
    %c0_i32_1 = arith.constant 0 : i32
    return %arg0, %arg1, %c0_i32, %c0_i32_0 : i32, i32, i32, i32
  }
  func.func @transform_5(%arg0: i32, %arg1: i32) -> (i32, i32, i32, i32) {
    %c0_i32 = arith.constant 0 : i32
    %c0_i32_0 = arith.constant 0 : i32
    %c0_i32_1 = arith.constant 0 : i32
    return %arg0, %arg1, %c0_i32, %c0_i32_0 : i32, i32, i32, i32
  }
}

module attributes {stable_mosaic.version = 11 : i64} {
  func.func @_gemm_stats_kernel(%arg0: i32, %arg1: i32, %arg2: memref<1x4x128xbf16, #tpu.memory_space<vmem>>, %arg3: memref<128x128xbf16, #tpu.memory_space<vmem>>, %arg4: memref<1x4x128xbf16, #tpu.memory_space<vmem>>, %arg5: memref<1x1x8x128xf32, #tpu.memory_space<vmem>>, %arg6: memref<1x1x8x128xf32, #tpu.memory_space<vmem>>) attributes {dimension_semantics = [#tpu.dimension_semantics<parallel>, #tpu.dimension_semantics<parallel>], iteration_bounds = array<i64: 2, 1>, scalar_prefetch = 0 : i64, scratch_operands = 0 : i64, tpu.core_type = #tpu.core_type<tc>, window_params = [{transform_indices = @transform_0, window_bounds = array<i64: 1, 4, 128>}, {pipeline_mode = #tpu.pipeline_mode<synchronous>, transform_indices = @transform_1, window_bounds = array<i64: 128, 128>}, {transform_indices = @transform_2, window_bounds = array<i64: 1, 4, 128>}, {transform_indices = @transform_3, window_bounds = array<i64: 1, 1, 8, 128>}, {transform_indices = @transform_4, window_bounds = array<i64: 1, 1, 8, 128>}]} {
    %c0 = arith.constant 0 : index
    %c0_0 = arith.constant 0 : index
    %c0_1 = arith.constant 0 : index
    %0 = vector.load %arg2[%c0, %c0_0, %c0_1] : memref<1x4x128xbf16, #tpu.memory_space<vmem>>, vector<1x4x128xbf16>
    %1 = vector.shape_cast %0 : vector<1x4x128xbf16> to vector<4x128xbf16>
    %c0_2 = arith.constant 0 : index
    %c0_3 = arith.constant 0 : index
    %2 = vector.load %arg3[%c0_2, %c0_3] : memref<128x128xbf16, #tpu.memory_space<vmem>>, vector<128x128xbf16>
    %cst = arith.constant dense<0.000000e+00> : vector<4x128xf32>
    %3 = tpu.matmul %1, %2, %cst {dimension_numbers = #tpu.dot_dimension_numbers<[1], [0], [0], [1], [0, 0, 1, 1], [], []>} : vector<4x128xbf16>, vector<128x128xbf16>, vector<4x128xf32> -> vector<4x128xf32>
    %4 = arith.truncf %3 : vector<4x128xf32> to vector<4x128xbf16>
    %c0_4 = arith.constant 0 : index
    %c0_5 = arith.constant 0 : index
    %c0_6 = arith.constant 0 : index
    %5 = vector.load %arg4[%c0_4, %c0_5, %c0_6] : memref<1x4x128xbf16, #tpu.memory_space<vmem>>, vector<1x4x128xbf16>
    %6 = vector.shape_cast %5 : vector<1x4x128xbf16> to vector<4x128xbf16>
    %7 = vector.shape_cast %4 : vector<4x128xbf16> to vector<1x4x128xbf16>
    tpu.vector_store %arg4[%c0_4, %c0_5, %c0_6], %7 {strides = array<i32>} : memref<1x4x128xbf16, #tpu.memory_space<vmem>>, vector<1x4x128xbf16>,
    %cst_7 = arith.constant dense<0.000000e+00> : vector<128xf32>
    %8 = vector.multi_reduction <add>, %3, %cst_7 [0] : vector<4x128xf32> to vector<128xf32>
    %9 = vector.shape_cast %8 : vector<128xf32> to vector<1x128xf32>
    %10 = vector.shape_cast %9 : vector<1x128xf32> to vector<1x128xf32>
    %11 = vector.broadcast %10 : vector<1x128xf32> to vector<8x128xf32>
    %c0_8 = arith.constant 0 : index
    %c0_9 = arith.constant 0 : index
    %c0_10 = arith.constant 0 : index
    %c0_11 = arith.constant 0 : index
    %12 = vector.load %arg5[%c0_8, %c0_9, %c0_10, %c0_11] : memref<1x1x8x128xf32, #tpu.memory_space<vmem>>, vector<1x1x8x128xf32>
    %13 = vector.shape_cast %12 : vector<1x1x8x128xf32> to vector<8x128xf32>
    %14 = vector.shape_cast %11 : vector<8x128xf32> to vector<1x1x8x128xf32>
    tpu.vector_store %arg5[%c0_8, %c0_9, %c0_10, %c0_11], %14 {strides = array<i32>} : memref<1x1x8x128xf32, #tpu.memory_space<vmem>>, vector<1x1x8x128xf32>,
    %15 = arith.mulf %3, %3 : vector<4x128xf32>
    %cst_12 = arith.constant dense<0.000000e+00> : vector<128xf32>
    %16 = vector.multi_reduction <add>, %15, %cst_12 [0] : vector<4x128xf32> to vector<128xf32>
    %17 = vector.shape_cast %16 : vector<128xf32> to vector<1x128xf32>
    %18 = vector.shape_cast %17 : vector<1x128xf32> to vector<1x128xf32>
    %19 = vector.broadcast %18 : vector<1x128xf32> to vector<8x128xf32>
    %c0_13 = arith.constant 0 : index
    %c0_14 = arith.constant 0 : index
    %c0_15 = arith.constant 0 : index
    %c0_16 = arith.constant 0 : index
    %20 = vector.load %arg6[%c0_13, %c0_14, %c0_15, %c0_16] : memref<1x1x8x128xf32, #tpu.memory_space<vmem>>, vector<1x1x8x128xf32>
    %21 = vector.shape_cast %20 : vector<1x1x8x128xf32> to vector<8x128xf32>
    %22 = vector.shape_cast %19 : vector<8x128xf32> to vector<1x1x8x128xf32>
    tpu.vector_store %arg6[%c0_13, %c0_14, %c0_15, %c0_16], %22 {strides = array<i32>} : memref<1x1x8x128xf32, #tpu.memory_space<vmem>>, vector<1x1x8x128xf32>,
    return
  }
  func.func @transform_0(%arg0: i32, %arg1: i32) -> (i32, i32, i32) {
    %c0_i32 = arith.constant 0 : i32
    %c0_i32_0 = arith.constant 0 : i32
    return %arg0, %arg1, %c0_i32 : i32, i32, i32
  }
  func.func @transform_1(%arg0: i32, %arg1: i32) -> (i32, i32) {
    %c0_i32 = arith.constant 0 : i32
    %c0_i32_0 = arith.constant 0 : i32
    %c0_i32_1 = arith.constant 0 : i32
    return %c0_i32, %c0_i32_0 : i32, i32
  }
  func.func @transform_2(%arg0: i32, %arg1: i32) -> (i32, i32, i32) {
    %c0_i32 = arith.constant 0 : i32
    %c0_i32_0 = arith.constant 0 : i32
    return %arg0, %arg1, %c0_i32 : i32, i32, i32
  }
  func.func @transform_3(%arg0: i32, %arg1: i32) -> (i32, i32, i32, i32) {
    %c0_i32 = arith.constant 0 : i32
    %c0_i32_0 = arith.constant 0 : i32
    %c0_i32_1 = arith.constant 0 : i32
    return %arg0, %arg1, %c0_i32, %c0_i32_0 : i32, i32, i32, i32
  }
  func.func @transform_4(%arg0: i32, %arg1: i32) -> (i32, i32, i32, i32) {
    %c0_i32 = arith.constant 0 : i32
    %c0_i32_0 = arith.constant 0 : i32
    %c0_i32_1 = arith.constant 0 : i32
    return %arg0, %arg1, %c0_i32, %c0_i32_0 : i32, i32, i32, i32
  }
}

module attributes {stable_mosaic.version = 11 : i64} {
  func.func @_bn_act_kernel(%arg0: i32, %arg1: i32, %arg2: memref<1x4x128xbf16, #tpu.memory_space<vmem>>, %arg3: memref<1x128xf32, #tpu.memory_space<vmem>>, %arg4: memref<1x128xf32, #tpu.memory_space<vmem>>, %arg5: memref<1x4x128xbf16, #tpu.memory_space<vmem>>) attributes {dimension_semantics = [#tpu.dimension_semantics<parallel>, #tpu.dimension_semantics<parallel>], iteration_bounds = array<i64: 2, 1>, scalar_prefetch = 0 : i64, scratch_operands = 0 : i64, tpu.core_type = #tpu.core_type<tc>, window_params = [{transform_indices = @transform_0, window_bounds = array<i64: 1, 4, 128>}, {pipeline_mode = #tpu.pipeline_mode<synchronous>, transform_indices = @transform_1, window_bounds = array<i64: 1, 128>}, {pipeline_mode = #tpu.pipeline_mode<synchronous>, transform_indices = @transform_2, window_bounds = array<i64: 1, 128>}, {transform_indices = @transform_3, window_bounds = array<i64: 1, 4, 128>}]} {
    %c0 = arith.constant 0 : index
    %c0_0 = arith.constant 0 : index
    %c0_1 = arith.constant 0 : index
    %0 = vector.load %arg2[%c0, %c0_0, %c0_1] : memref<1x4x128xbf16, #tpu.memory_space<vmem>>, vector<1x4x128xbf16>
    %1 = vector.shape_cast %0 : vector<1x4x128xbf16> to vector<4x128xbf16>
    %2 = arith.extf %1 : vector<4x128xbf16> to vector<4x128xf32>
    %c0_2 = arith.constant 0 : index
    %c0_3 = arith.constant 0 : index
    %3 = vector.load %arg3[%c0_2, %c0_3] : memref<1x128xf32, #tpu.memory_space<vmem>>, vector<1x128xf32>
    %4 = vector.broadcast %3 : vector<1x128xf32> to vector<4x128xf32>
    %5 = arith.mulf %2, %4 : vector<4x128xf32>
    %c0_4 = arith.constant 0 : index
    %c0_5 = arith.constant 0 : index
    %6 = vector.load %arg4[%c0_4, %c0_5] : memref<1x128xf32, #tpu.memory_space<vmem>>, vector<1x128xf32>
    %7 = vector.broadcast %6 : vector<1x128xf32> to vector<4x128xf32>
    %8 = arith.addf %5, %7 : vector<4x128xf32>
    %cst = arith.constant 3.000000e+00 : f32
    %9 = vector.broadcast %cst : f32 to vector<4x128xf32>
    %10 = arith.addf %8, %9 : vector<4x128xf32>
    %cst_6 = arith.constant 0.000000e+00 : f32
    %cst_7 = arith.constant 6.000000e+00 : f32
    %11 = vector.broadcast %cst_6 : f32 to vector<4x128xf32>
    %12 = arith.maximumf %11, %10 : vector<4x128xf32>
    %13 = vector.broadcast %cst_7 : f32 to vector<4x128xf32>
    %14 = arith.minimumf %13, %12 : vector<4x128xf32>
    %15 = arith.mulf %8, %14 : vector<4x128xf32>
    %cst_8 = arith.constant 0.166666672 : f32
    %16 = vector.broadcast %cst_8 : f32 to vector<4x128xf32>
    %17 = arith.mulf %15, %16 : vector<4x128xf32>
    %18 = arith.truncf %17 : vector<4x128xf32> to vector<4x128xbf16>
    %c0_9 = arith.constant 0 : index
    %c0_10 = arith.constant 0 : index
    %c0_11 = arith.constant 0 : index
    %19 = vector.load %arg5[%c0_9, %c0_10, %c0_11] : memref<1x4x128xbf16, #tpu.memory_space<vmem>>, vector<1x4x128xbf16>
    %20 = vector.shape_cast %19 : vector<1x4x128xbf16> to vector<4x128xbf16>
    %21 = vector.shape_cast %18 : vector<4x128xbf16> to vector<1x4x128xbf16>
    tpu.vector_store %arg5[%c0_9, %c0_10, %c0_11], %21 {strides = array<i32>} : memref<1x4x128xbf16, #tpu.memory_space<vmem>>, vector<1x4x128xbf16>,
    return
  }
  func.func @transform_0(%arg0: i32, %arg1: i32) -> (i32, i32, i32) {
    %c0_i32 = arith.constant 0 : i32
    %c0_i32_0 = arith.constant 0 : i32
    return %arg0, %arg1, %c0_i32 : i32, i32, i32
  }
  func.func @transform_1(%arg0: i32, %arg1: i32) -> (i32, i32) {
    %c0_i32 = arith.constant 0 : i32
    %c0_i32_0 = arith.constant 0 : i32
    %c0_i32_1 = arith.constant 0 : i32
    return %c0_i32, %c0_i32_0 : i32, i32
  }
  func.func @transform_2(%arg0: i32, %arg1: i32) -> (i32, i32) {
    %c0_i32 = arith.constant 0 : i32
    %c0_i32_0 = arith.constant 0 : i32
    %c0_i32_1 = arith.constant 0 : i32
    return %c0_i32, %c0_i32_0 : i32, i32
  }
  func.func @transform_3(%arg0: i32, %arg1: i32) -> (i32, i32, i32) {
    %c0_i32 = arith.constant 0 : i32
    %c0_i32_0 = arith.constant 0 : i32
    return %arg0, %arg1, %c0_i32 : i32, i32, i32
  }
}

</mosaic_0001>

<bundles_post_ra>
// kernel: _lambda_.29
= control target key start
LH: loop header
LB: loop body
LE: loop exit
PB: predicated region body
PF: predicated region fallthrough
CT: control target
= control target key end

     0   :  { %s564_s12 = smov 0   ;;  %s566_s13 = smov 0   ;;  %s610_s0 = inlined_call_operand.vmem [shape: bf16[2,64,128], index: 0, kind: input, shape index: {}]   ;;  %s611_s1 = inlined_call_operand.vmem [shape: f32[1,128], index: 1, kind: input, shape index: {}]   ;;  %s612_s2 = inlined_call_operand.vmem [shape: f32[1,128], index: 2, kind: input, shape index: {}]   ;;  %s613_s3 = inlined_call_operand.vmem [shape: bf16[2,64,128], index: 3, kind: output, shape index: {}]  }
   0x1   :  { %s568_s14 = smov 0  }
   0x2 LB: > { %s25_s15 = sadd.s32 1, %s538_s13  ;;  %p427_p0 = scmp.ge.s32.totalorder %s542_s14, 1  ;;  %s542_s14 = sphi %s568_s14, %s13_s14   ;;  %s538_s13 = sphi %s566_s13, %s615_s13   ;;  %s534_s12 = sphi %s564_s12, %s614_s12  }
   0x3   : > { %p27_p1 = scmp.ge.s32.totalorder %s25_s15, 2  ;;  %p158_p2 = scmp.lt.s32.totalorder %s542_s14, 3 }
   0x5   : > { %s617_s15 = smov (%p27_p1, %s25_s15), 0  ;;  %p159_p3 = pnand %p427_p0, %p158_p2 }
   0x6   : > { %p191_p4 = scmp.lt.s32.totalorder (!%p159_p3), %s534_s12, 1 }
   0x7   : > { %162 = sbr.rel (%p159_p3) target bundleno = 37 (0x25), region = 32 }
   0xc   : > { %s619_s12 = smov (!%p191_p4, %s534_s12), 1  ;;  %v432_v0 = vld [vmem:[%s611_s1] ss:$0 sm:$0xff] }
   0xd   : > { %s444_s16 = sshll.u32 %s619_s12, 5  ;;  %v433_v9 = vld [vmem:[%s612_s2] ss:$0 sm:$0xff] }
   0xe   : > { %s198_s19 = scalar_lea.vmem %s610_s0, %s444_s16  ;;  %s208_s26 = scalar_lea.vmem %s613_s3, %s444_s16 }
   0xf   : > { %v455_v1 = vld [vmem:[%s198_s19] sm:$0xff]   ;;  %v490_v2 = vld [vmem:[%s198_s19 + $0x8] sm:$0xff]   ;;  %v491_v3 = vld [vmem:[%s198_s19 + $0x10] sm:$0xff]  }
  0x10   : > { %v456_v4 = vunpack.c.l.bf16 %v455_v1  ;;  %v457_v5 = vunpack.c.h.bf16 %v455_v1  ;;  %v492_v6 = vld [vmem:[%s198_s19 + $0x18] sm:$0xff]   ;;  %v460_v7 = vunpack.c.l.bf16 %v490_v2  ;;  %v461_v8 = vunpack.c.h.bf16 %v490_v2 }
  0x11   : > { %v464_v10 = vunpack.c.l.bf16 %v491_v3  ;;  %v465_v11 = vunpack.c.h.bf16 %v491_v3  ;;  %v468_v12 = vunpack.c.l.bf16 %v492_v6  ;;  %v469_v13 = vunpack.c.h.bf16 %v492_v6 }
  0x12   : > { %v233_v14 = vmul.f32 %v456_v4, %v432_v0  ;;  %v234_v15 = vmul.f32 %v457_v5, %v432_v0  ;;  %v235_v16 = vmul.f32 %v460_v7, %v432_v0  ;;  %v236_v17 = vmul.f32 %v461_v8, %v432_v0 }
  0x13   : > { %v237_v18 = vmul.f32 %v464_v10, %v432_v0  ;;  %v238_v19 = vmul.f32 %v465_v11, %v432_v0  ;;  %v239_v20 = vmul.f32 %v468_v12, %v432_v0  ;;  %v240_v21 = vmul.f32 %v469_v13, %v432_v0 }
  0x14   : > { %v248_v22 = vadd.f32 %v433_v9, %v233_v14  ;;  %v249_v23 = vadd.f32 %v433_v9, %v234_v15  ;;  %v250_v24 = vadd.f32 %v433_v9, %v235_v16  ;;  %v251_v25 = vadd.f32 %v433_v9, %v236_v17 }
  0x15   : > { %v252_v26 = vadd.f32 %v433_v9, %v237_v18  ;;  %v253_v27 = vadd.f32 %v433_v9, %v238_v19  ;;  %v254_v28 = vadd.f32 %v433_v9, %v239_v20  ;;  %v255_v29 = vadd.f32 %v433_v9, %v240_v21 }
  0x16   : > { %v256_v30 = vadd.f32 3.0, %v248_v22  ;;  %v257_v31 = vadd.f32 3.0, %v249_v23  ;;  %v258_v32 = vadd.f32 3.0, %v250_v24  ;;  %v259_v33 = vadd.f32 3.0, %v251_v25 }
  0x17   : > { %v260_v34 = vadd.f32 3.0, %v252_v26  ;;  %v261_v35 = vadd.f32 3.0, %v253_v27  ;;  %v262_v36 = vadd.f32 3.0, %v254_v28  ;;  %v263_v37 = vadd.f32 3.0, %v255_v29 }
  0x18   : > { %v264_v38 = vmax.f32 %v256_v30, 0.0  ;;  %v265_v39 = vmax.f32 %v257_v31, 0.0  ;;  %v266_v40 = vmax.f32 %v258_v32, 0.0  ;;  %v267_v41 = vmax.f32 %v259_v33, 0.0 }
  0x19   : > { %v268_v42 = vmax.f32 %v260_v34, 0.0  ;;  %v269_v43 = vmax.f32 %v261_v35, 0.0  ;;  %v270_v44 = vmax.f32 %v262_v36, 0.0  ;;  %v271_v45 = vmax.f32 %v263_v37, 0.0 }
  0x1a   : > { %v272_v46 = vmin.f32 %v264_v38, 6.0  ;;  %v273_v47 = vmin.f32 %v265_v39, 6.0  ;;  %v274_v48 = vmin.f32 %v266_v40, 6.0  ;;  %v275_v49 = vmin.f32 %v267_v41, 6.0 }
  0x1b   : > { %v276_v50 = vmin.f32 %v268_v42, 6.0  ;;  %v277_v51 = vmin.f32 %v269_v43, 6.0  ;;  %v278_v52 = vmin.f32 %v270_v44, 6.0  ;;  %v279_v53 = vmin.f32 %v271_v45, 6.0 }
  0x1c   : > { %v280_v54 = vmul.f32 %v272_v46, %v248_v22  ;;  %v281_v55 = vmul.f32 %v273_v47, %v249_v23  ;;  %v282_v56 = vmul.f32 %v274_v48, %v250_v24  ;;  %v283_v57 = vmul.f32 %v275_v49, %v251_v25 }
  0x1d   : > { %v284_v58 = vmul.f32 %v276_v50, %v252_v26  ;;  %v285_v59 = vmul.f32 %v277_v51, %v253_v27  ;;  %v286_v60 = vmul.f32 %v278_v52, %v254_v28  ;;  %v287_v61 = vmul.f32 %v279_v53, %v255_v29 }
  0x1e   : > { %v288_v62 = vmul.f32 0.16666667, %v280_v54  ;;  %v289_v63 = vmul.f32 0.16666667, %v281_v55  ;;  %v290_v0 = vmul.f32 0.16666667, %v282_v56 }
  0x1f   : > { %v291_v1 = vmul.f32 0.16666667, %v283_v57  ;;  %v292_v2 = vmul.f32 0.16666667, %v284_v58  ;;  %v293_v3 = vmul.f32 0.16666667, %v285_v59 }
  0x20   : > { %v473_v4 = vpack.c.bf16 %v289_v63, %v288_v62  ;;  %v294_v5 = vmul.f32 0.16666667, %v286_v60  ;;  %v295_v6 = vmul.f32 0.16666667, %v287_v61 }
  0x21   : > { %v478_v7 = vpack.c.bf16 %v291_v1, %v290_v0  ;;  %v483_v8 = vpack.c.bf16 %v293_v3, %v292_v2 }
  0x22   : > { %474 = vst [vmem:[%s208_s26] sm:$0xff] %v473_v4   ;;  %v488_v9 = vpack.c.bf16 %v295_v6, %v294_v5 }
  0x23   : > { %493 = vst [vmem:[%s208_s26 + $0x8] sm:$0xff] %v478_v7   ;;  %494 = vst [vmem:[%s208_s26 + $0x10] sm:$0xff] %v483_v8  }
  0x24   : > { %495 = vst [vmem:[%s208_s26 + $0x18] sm:$0xff] %v488_v9  }
  0x25 PF: > { %s13_s14 = sadd.s32 1, %s542_s14   ;;  %s614_s12 = smov %s538_s13 }
  0x26   : > { %p10_p5 = scmp.ge.s32.totalorder %s13_s14, 4   ;;  %s615_s13 = smov %s617_s15 }
  0x28   :  { %12 = sbr.rel (!%p10_p5) target bundleno = 2 (0x2), region = 62 }

// kernel: _lambda_.28
= control target key start
LH: loop header
LB: loop body
LE: loop exit
PB: predicated region body
PF: predicated region fallthrough
CT: control target
= control target key end

     0   :  { %s815_s15 = smov 0   ;;  %s817_s16 = smov 0   ;;  %s864_s0 = inlined_call_operand.vmem [shape: bf16[2,64,27], index: 0, kind: input, shape index: {}]   ;;  %s865_s1 = inlined_call_operand.vmem [shape: bf16[27,128], index: 1, kind: input, shape index: {}]   ;;  %s866_s2 = inlined_call_operand.vmem [shape: bf16[2,64,128], index: 2, kind: output, shape index: {0}]   ;;  %s867_s3 = inlined_call_operand.vmem [shape: f32[2,1,8,128], index: 3, kind: output, shape index: {1}]   ;;  %s868_s4 = inlined_call_operand.vmem [shape: f32[2,1,8,128], index: 4, kind: output, shape index: {2}]  }
   0x1   :  { %s819_s17 = smov 0  }
   0x2 LB: > { %s27_s18 = sadd.s32 1, %s783_s16  ;;  %p652_p0 = scmp.ge.s32.totalorder %s787_s17, 1  ;;  %s787_s17 = sphi %s819_s17, %s15_s17   ;;  %s783_s16 = sphi %s817_s16, %s870_s16   ;;  %s779_s15 = sphi %s815_s15, %s869_s15  }
   0x3   : > { %p29_p1 = scmp.ge.s32.totalorder %s27_s18, 2  ;;  %p192_p2 = scmp.lt.s32.totalorder %s787_s17, 3 }
   0x5   : > { %s872_s18 = smov (%p29_p1, %s27_s18), 0  ;;  %p193_p3 = pnand %p652_p0, %p192_p2 }
   0x6   : > { %p241_p4 = scmp.lt.s32.totalorder (!%p193_p3), %s779_s15, 1 }
   0x7   : > { %196 = sbr.rel (%p193_p3) target bundleno = 253 (0xfd), region = 28 }
   0xc   : > { %v759_v0 = vld [vmem:[%s865_s1 + $0x8] sm:$0x3f]   ;;  %vm331_vm0 = vcmask 1044480   ;;  %vm332_vm1 = vcmask 1045504   ;;  %v789_v1 = vmov 65535   ;;  %v760_v5 = vld [vmem:[%s865_s1] sm:$0xff]  }
   0xd   : > { %v333_v2 = vsel %vm331_vm0, 4294967295, %v789_v1  ;;  %s874_s15 = smov (!%p241_p4, %s779_s15), 1  ;;  %vm318_vm2 = vcmask 220160  }
   0xe   : > { %v334_v3 = vsel %vm332_vm1, %v333_v2, 0  ;;  %s679_s23 = sshll.u32 %s874_s15, 5  ;;  %s657_s30 = sshll.u32 %s874_s15, 3 }
   0xf   : > { %v336_v4 = vand.u32 %v759_v0, %v334_v3  ;;  %s248_s26 = scalar_lea.vmem %s864_s0, %s679_s23  ;;  %s258_s29 = scalar_lea.vmem %s866_s2, %s679_s23 }
  0x10   : > { %v761_v6 = vld [vmem:[%s248_s26] sm:$0xff]   ;;  %v762_v7 = vld [vmem:[%s248_s26 + $0x8] sm:$0xff]   ;;  %v763_v8 = vld [vmem:[%s248_s26 + $0x10] sm:$0xff]   ;;  %s266_s7 = scalar_lea.vmem %s867_s3, %s657_s30  ;;  %s273_s10 = scalar_lea.vmem %s868_s4, %s657_s30 }
  0x11   : > { %718 = vmatprep.subr.bf16.mxu0 %v336_v4  ;;  %730 = vmatprep.subr.bf16.mxu1 %v336_v4  ;;  %v764_v9 = vld [vmem:[%s248_s26 + $0x18] sm:$0xff]  }
  0x12   : > { %719 = vmatpush3.bf16.msra.mxu0 %v336_v4  ;;  %732 = vmatpush3.bf16.msra.mxu1 %v336_v4 }
  0x13   : > { %720 = vmatprep.subr.bf16.mxu0 %v760_v5  ;;  %731 = vmatprep.subr.bf16.mxu1 %v760_v5 }
  0x14   : > { %722 = vmatprep.mubr.msk.bf16.mxu0 %vm318_vm2, %v761_v6  ;;  %726 = vmatprep.mubr.msk.bf16.mxu1 %vm318_vm2, %v763_v8 }
  0x16   : > { %721 = vmatpush3.bf16.msra.mxu0 %v760_v5  ;;  %733 = vmatpush3.bf16.msra.mxu1 %v760_v5 }
  0x19   : > { %723 = vmatmul.mubr.msk.bf16.vlgmr.msra.gmra.mxu0 %vm318_vm2, %v762_v7  ;;  %727 = vmatmul.mubr.msk.bf16.vlgmr.msra.gmra.mxu1 %vm318_vm2, %v764_v9 }
  0xd9   : > { %v724_v10 = vpop.f32.mrf.mxu0  ;;  %v728_v11 = vpop.f32.mrf.mxu1 }
  0xda   : > { %v459_v25 = vmul.f32 %v724_v10, %v724_v10  ;;  %v463_v37 = vmul.f32 %v728_v11, %v728_v11 }
  0xdb   : > { %v372_v12 = vpop.f32.mrf.mxu0  ;;  %v388_v13 = vpop.f32.mrf.mxu1 }
  0xdc   : > { %v457_v18 = vmul.f32 %v372_v12, %v372_v12  ;;  %v461_v31 = vmul.f32 %v388_v13, %v388_v13 }
  0xdd   : > { %v725_v14 = vpop.f32.mrf.mxu0  ;;  %v729_v15 = vpop.f32.mrf.mxu1 }
  0xde   : > { %v697_v16 = vpack.c.bf16 %v725_v14, %v724_v10  ;;  %v707_v17 = vpack.c.bf16 %v729_v15, %v728_v11  ;;  %v460_v28 = vmul.f32 %v725_v14, %v725_v14  ;;  %v464_v40 = vmul.f32 %v729_v15, %v729_v15 }
  0xdf   : > { %v375_v19 = vpop.f32.mrf.mxu0  ;;  %v391_v20 = vpop.f32.mrf.mxu1 }
  0xe0   : > { %709 = vst [vmem:[%s258_s29 + $0x8] sm:$0xff] %v697_v16   ;;  %v692_v21 = vpack.c.bf16 %v375_v19, %v372_v12  ;;  %v443_v22 = vadd.f32 %v375_v19, %v372_v12  ;;  %v458_v23 = vmul.f32 %v375_v19, %v375_v19  ;;  %711 = vst [vmem:[%s258_s29 + $0x18] sm:$0xff] %v707_v17  }
  0xe1   : > { %v702_v24 = vpack.c.bf16 %v391_v20, %v388_v13  ;;  %v462_v35 = vmul.f32 %v391_v20, %v391_v20 }
  0xe2   : > { %693 = vst [vmem:[%s258_s29] sm:$0xff] %v692_v21   ;;  %v444_v26 = vadd.f32 %v724_v10, %v443_v22  ;;  %v465_v27 = vadd.f32 %v458_v23, %v457_v18 }
  0xe3   : > { %710 = vst [vmem:[%s258_s29 + $0x10] sm:$0xff] %v702_v24  }
  0xe4   : > { %v466_v29 = vadd.f32 %v465_v27, %v459_v25  ;;  %v445_v30 = vadd.f32 %v725_v14, %v444_v26 }
  0xe6   : > { %v446_v32 = vadd.f32 %v445_v30, %v388_v13  ;;  %v467_v33 = vadd.f32 %v466_v29, %v460_v28 }
  0xe8   : > { %v447_v34 = vadd.f32 %v446_v32, %v391_v20  ;;  %v468_v36 = vadd.f32 %v467_v33, %v461_v31 }
  0xea   : > { %v448_v38 = vadd.f32 %v728_v11, %v447_v34  ;;  %v469_v39 = vadd.f32 %v468_v36, %v462_v35 }
  0xec   : > { %v449_v41 = vadd.f32 %v729_v15, %v448_v38  ;;  %v470_v42 = vadd.f32 %v469_v39, %v463_v37 }
  0xee   : > { %v450_v43 = vrot.slane %v449_v41, 4  ;;  %v471_v44 = vadd.f32 %v470_v42, %v464_v40 }
  0xf0   : > { %v451_v45 = vadd.f32 %v450_v43, %v449_v41  ;;  %v472_v46 = vrot.slane %v471_v44, 4 }
  0xf2   : > { %v452_v47 = vrot.slane %v451_v45, 2  ;;  %v473_v48 = vadd.f32 %v472_v46, %v471_v44 }
  0xf4   : > { %v453_v49 = vadd.f32 %v452_v47, %v451_v45  ;;  %v474_v50 = vrot.slane %v473_v48, 2 }
  0xf6   : > { %v454_v51 = vrot.slane %v453_v49, 1  ;;  %v475_v52 = vadd.f32 %v474_v50, %v473_v48 }
  0xf8   : > { %v455_v53 = vadd.f32 %v454_v51, %v453_v49  ;;  %v476_v54 = vrot.slane %v475_v52, 1 }
  0xfa   : > { %456 = vst [vmem:[%s266_s7] sm:$0xff] %v455_v53  ;;  %v477_v55 = vadd.f32 %v476_v54, %v475_v52 }
  0xfc   : > { %478 = vst [vmem:[%s273_s10] sm:$0xff] %v477_v55 }
  0xfd PF: > { %s15_s17 = sadd.s32 1, %s787_s17   ;;  %s869_s15 = smov %s783_s16 }
  0xfe   : > { %p12_p5 = scmp.ge.s32.totalorder %s15_s17, 4   ;;  %s870_s16 = smov %s872_s18 }
 0x100   :  { %14 = sbr.rel (!%p12_p5) target bundleno = 2 (0x2), region = 82 }

// kernel: _lambda_.30
= control target key start
LH: loop header
LB: loop body
LE: loop exit
PB: predicated region body
PF: predicated region fallthrough
CT: control target
= control target key end

     0   :  { %s971_s15 = smov 0   ;;  %s973_s16 = smov 0   ;;  %s1187_s0 = inlined_call_operand.vmem [shape: bf16[2,64,1152], index: 0, kind: input, shape index: {}]   ;;  %s1188_s1 = inlined_call_operand.vmem [shape: bf16[9,128], index: 1, kind: input, shape index: {}]   ;;  %s1189_s2 = inlined_call_operand.vmem [shape: bf16[2,64,128], index: 2, kind: output, shape index: {0}]   ;;  %s1190_s3 = inlined_call_operand.vmem [shape: f32[2,1,8,128], index: 3, kind: output, shape index: {1}]   ;;  %s1191_s4 = inlined_call_operand.vmem [shape: f32[2,1,8,128], index: 4, kind: output, shape index: {2}]  }
   0x1   :  { %s975_s17 = smov 0  }
   0x2 LB: > { %s27_s18 = sadd.s32 1, %s940_s16  ;;  %p849_p0 = scmp.ge.s32.totalorder %s944_s17, 1  ;;  %s944_s17 = sphi %s975_s17, %s15_s17   ;;  %s940_s16 = sphi %s973_s16, %s1193_s16   ;;  %s936_s15 = sphi %s971_s15, %s1192_s15  }
   0x3   : > { %p29_p1 = scmp.ge.s32.totalorder %s27_s18, 2  ;;  %p193_p2 = scmp.lt.s32.totalorder %s944_s17, 3 }
   0x5   : > { %s1195_s18 = smov (%p29_p1, %s27_s18), 0  ;;  %p194_p3 = pnand %p849_p0, %p193_p2 }
   0x6   : > { %p243_p4 = scmp.lt.s32.totalorder (!%p194_p3), %s936_s15, 1 }
   0x7   : > { %197 = sbr.rel (%p194_p3) target bundleno = 100 (0x64), region = 28 }
   0xc   : > { %v277_v0 = vld [vmem:[%s1188_s1] sm:$0xf]  ;;  %v995_v1 = vld [vmem:[%s1188_s1 + $0x4] sm:$0x1]  ;;  %v297_v2 = vlaneseq  ;;  %s1197_s15 = smov (!%p243_p4, %s936_s15), 1 }
   0xd   : > { %v279_v3 = vunpack.c.l.bf16 %v277_v0  ;;  %v280_v5 = vunpack.c.l.bf16 %v995_v1  ;;  %s897_s23 = smul.u32 288, %s1197_s15  ;;  %s865_s27 = sshll.u32 %s1197_s15, 5 }
   0xe   : > { %v999_v4 = vshrl.u32 %v297_v2, 7  ;;  %s1089_s30 = scalar_lea.vmem %s1189_s2, %s865_s27  ;;  %s853_s5 = sshll.u32 %s1197_s15, 3 }
   0xf   : > { %s1014_s26 = scalar_lea.vmem %s1187_s0, %s897_s23  ;;  %s269_s8 = scalar_lea.vmem %s1190_s3, %s853_s5 }
  0x10   : > { %v299_v6 = vsub.s32 0, %v999_v4  ;;  %v327_v7 = vsub.s32 1, %v999_v4  ;;  %v363_v8 = vsub.s32 2, %v999_v4  ;;  %v399_v9 = vsub.s32 3, %v999_v4  ;;  %v281_v18 = vld [vmem:[%s1014_s26] sm:$0xff]   ;;  %v345_v20 = vld [vmem:[%s1014_s26 + $0x8] sm:$0xff]   ;;  %s276_s11 = scalar_lea.vmem %s1191_s4, %s853_s5 }
  0x11   : > { %v435_v10 = vsub.s32 4, %v999_v4  ;;  %v471_v11 = vsub.s32 5, %v999_v4  ;;  %v507_v12 = vsub.s32 6, %v999_v4  ;;  %v543_v13 = vsub.s32 7, %v999_v4  ;;  %v282_v19 = vld [vmem:[%s1014_s26 + $0x24] sm:$0xff]   ;;  %v346_v29 = vld [vmem:[%s1014_s26 + $0x2c] sm:$0xff]  }
  0x12   : > { %v1018_v14 = vrot.slane %v279_v3, %v299_v6  ;;  %v1020_v15 = vrot.slane %v279_v3, %v327_v7  ;;  %v1022_v16 = vrot.slane %v279_v3, %v363_v8  ;;  %v1024_v17 = vrot.slane %v279_v3, %v399_v9  ;;  %v417_v34 = vld [vmem:[%s1014_s26 + $0x10] sm:$0xff]   ;;  %v489_v40 = vld [vmem:[%s1014_s26 + $0x18] sm:$0xff]   ;;  %v562_v59 = vld [vmem:[%s1014_s26 + $0x44] sm:$0xff]  }
  0x13   : > { %v1029_v21 = vrot.slane %v279_v3, %v435_v10  ;;  %v1031_v22 = vrot.slane %v279_v3, %v471_v11  ;;  %v1033_v23 = vrot.slane %v279_v3, %v507_v12  ;;  %v1035_v24 = vrot.slane %v279_v3, %v543_v13  ;;  %v418_v35 = vld [vmem:[%s1014_s26 + $0x34] sm:$0xff]   ;;  %v490_v41 = vld [vmem:[%s1014_s26 + $0x3c] sm:$0xff]   ;;  %v284_v8 = vld [vmem:[%s1014_s26 + $0x6c] sm:$0xff]  }
  0x14   : > { %v289_v25 = vunpack.c.l.bf16 %v281_v18  ;;  %v290_v26 = vunpack.c.l.bf16 %v282_v19  ;;  %v317_v27 = vunpack.c.h.bf16 %v281_v18  ;;  %v318_v28 = vunpack.c.h.bf16 %v282_v19  ;;  %v1053_v58 = vld [vmem:[%s1014_s26 + $0x20] ss:$252 sps:$4 sm:$0xff]   ;;  %v311_v13 = vld [vmem:[%s1014_s26 + $0x4c] sm:$0xff]  }
  0x15   : > { %v353_v30 = vunpack.c.l.bf16 %v345_v20  ;;  %v354_v31 = vunpack.c.l.bf16 %v346_v29  ;;  %v389_v32 = vunpack.c.h.bf16 %v345_v20  ;;  %v390_v33 = vunpack.c.h.bf16 %v346_v29 }
  0x16   : > { %v301_v36 = vmul.f32 %v1018_v14, %v289_v25  ;;  %v302_v37 = vmul.f32 %v1018_v14, %v290_v26  ;;  %v329_v38 = vmul.f32 %v1020_v15, %v317_v27  ;;  %v330_v39 = vmul.f32 %v1020_v15, %v318_v28  ;;  %v348_v26 = vld [vmem:[%s1014_s26 + $0x74] sm:$0xff]  }
  0x17   : > { %v365_v42 = vmul.f32 %v1022_v16, %v353_v30  ;;  %v366_v43 = vmul.f32 %v1022_v16, %v354_v31  ;;  %v401_v44 = vmul.f32 %v1024_v17, %v389_v32  ;;  %v402_v45 = vmul.f32 %v1024_v17, %v390_v33  ;;  %v383_v27 = vld [vmem:[%s1014_s26 + $0x54] sm:$0xff]  }
  0x18   : > { %v337_v46 = vadd.f32 %v329_v38, %v301_v36  ;;  %v338_v47 = vadd.f32 %v330_v39, %v302_v37  ;;  %v425_v48 = vunpack.c.l.bf16 %v417_v34  ;;  %v426_v49 = vunpack.c.l.bf16 %v418_v35 }
  0x19   : > { %v461_v50 = vunpack.c.h.bf16 %v417_v34  ;;  %v462_v51 = vunpack.c.h.bf16 %v418_v35  ;;  %v497_v52 = vunpack.c.l.bf16 %v489_v40  ;;  %v498_v53 = vunpack.c.l.bf16 %v490_v41 }
  0x1a   : > { %v373_v54 = vadd.f32 %v365_v42, %v337_v46  ;;  %v374_v55 = vadd.f32 %v366_v43, %v338_v47  ;;  %v437_v56 = vmul.f32 %v1029_v21, %v425_v48  ;;  %v438_v57 = vmul.f32 %v1029_v21, %v426_v49 }
  0x1b   : > { %v473_v60 = vmul.f32 %v1031_v22, %v461_v50  ;;  %v474_v61 = vmul.f32 %v1031_v22, %v462_v51  ;;  %v509_v62 = vmul.f32 %v1033_v23, %v497_v52  ;;  %v510_v63 = vmul.f32 %v1033_v23, %v498_v53 }
  0x1c   : > { %v409_v0 = vadd.f32 %v401_v44, %v373_v54  ;;  %v410_v2 = vadd.f32 %v402_v45, %v374_v55  ;;  %v533_v3 = vunpack.c.h.bf16 %v489_v40  ;;  %v534_v7 = vunpack.c.h.bf16 %v490_v41  ;;  %v420_v40 = vld [vmem:[%s1014_s26 + $0x7c] sm:$0xff]  }
  0x1d   : > { %v569_v9 = vunpack.c.l.bf16 %v1053_v58  ;;  %v570_v10 = vunpack.c.l.bf16 %v562_v59  ;;  %v1066_v11 = vrot.slane %v280_v5, %v299_v6  ;;  %v291_v12 = vunpack.c.h.bf16 %v562_v59  ;;  %v455_v41 = vld [vmem:[%s1014_s26 + $0x5c] sm:$0xff]  }
  0x1e   : > { %v445_v18 = vadd.f32 %v437_v56, %v409_v0  ;;  %v446_v19 = vadd.f32 %v438_v57, %v410_v2  ;;  %v545_v20 = vmul.f32 %v1035_v24, %v533_v3  ;;  %v546_v25 = vmul.f32 %v1035_v24, %v534_v7 }
  0x1f   : > { %v581_v28 = vmul.f32 %v1066_v11, %v569_v9  ;;  %v582_v29 = vmul.f32 %v1066_v11, %v570_v10  ;;  %v292_v4 = vunpack.c.l.bf16 %v284_v8  ;;  %v303_v1 = vmul.f32 %v1018_v14, %v291_v12 }
  0x20   : > { %v481_v5 = vadd.f32 %v473_v60, %v445_v18  ;;  %v482_v6 = vadd.f32 %v474_v61, %v446_v19  ;;  %v319_v30 = vunpack.c.l.bf16 %v311_v13  ;;  %v320_v31 = vunpack.c.h.bf16 %v284_v8 }
  0x21   : > { %v304_v32 = vmul.f32 %v1018_v14, %v292_v4  ;;  %v355_v33 = vunpack.c.h.bf16 %v311_v13  ;;  %v356_v34 = vunpack.c.l.bf16 %v348_v26  ;;  %v391_v35 = vunpack.c.l.bf16 %v383_v27  ;;  %v286_v4 = vld [vmem:[%s1014_s26 + $0xb4] sm:$0xff]  }
  0x22   : > { %v517_v36 = vadd.f32 %v509_v62, %v481_v5  ;;  %v518_v37 = vadd.f32 %v510_v63, %v482_v6  ;;  %v331_v38 = vmul.f32 %v1020_v15, %v319_v30  ;;  %v332_v39 = vmul.f32 %v1020_v15, %v320_v31  ;;  %v492_v62 = vld [vmem:[%s1014_s26 + $0x84] sm:$0xff]  }
  0x23   : > { %v367_v42 = vmul.f32 %v1022_v16, %v355_v33  ;;  %v368_v43 = vmul.f32 %v1022_v16, %v356_v34  ;;  %v392_v44 = vunpack.c.h.bf16 %v348_v26  ;;  %v403_v45 = vmul.f32 %v1024_v17, %v391_v35  ;;  %v527_v63 = vld [vmem:[%s1014_s26 + $0x64] sm:$0xff]  }
  0x24   : > { %v553_v46 = vadd.f32 %v545_v20, %v517_v36  ;;  %v554_v47 = vadd.f32 %v546_v25, %v518_v37  ;;  %v339_v48 = vadd.f32 %v331_v38, %v303_v1  ;;  %v340_v49 = vadd.f32 %v332_v39, %v304_v32  ;;  %v564_v25 = vld [vmem:[%s1014_s26 + $0x8c] sm:$0xff]   ;;  %v313_v1 = vld [vmem:[%s1014_s26 + $0x94] sm:$0xff]   ;;  %v350_v36 = vld [vmem:[%s1014_s26 + $0xbc] sm:$0xff]  }
  0x25   : > { %v404_v50 = vmul.f32 %v1024_v17, %v392_v44  ;;  %v427_v51 = vunpack.c.h.bf16 %v383_v27  ;;  %v428_v52 = vunpack.c.l.bf16 %v420_v40  ;;  %v463_v53 = vunpack.c.l.bf16 %v455_v41 }
  0x26   : > { %v589_v54 = vadd.f32 %v581_v28, %v553_v46  ;;  %v590_v55 = vadd.f32 %v582_v29, %v554_v47  ;;  %v375_v56 = vadd.f32 %v367_v42, %v339_v48  ;;  %v376_v57 = vadd.f32 %v368_v43, %v340_v49 }
  0x27   : > { %v439_v59 = vmul.f32 %v1029_v21, %v427_v51  ;;  %v440_v60 = vmul.f32 %v1029_v21, %v428_v52  ;;  %v464_v61 = vunpack.c.h.bf16 %v420_v40  ;;  %v475_v7 = vmul.f32 %v1031_v22, %v463_v53 }
  0x28   : > { %v877_v0 = vpack.c.bf16 %v590_v55, %v589_v54  ;;  %v1095_v2 = vadd.f32 %v590_v55, %v589_v54  ;;  %v651_v3 = vmul.f32 %v589_v54, %v589_v54  ;;  %v411_v8 = vadd.f32 %v403_v45, %v375_v56  ;;  %v422_v54 = vld [vmem:[%s1014_s26 + $0xc4] sm:$0xff]  }
  0x29   : > { %v412_v9 = vadd.f32 %v404_v50, %v376_v57  ;;  %v476_v10 = vmul.f32 %v1031_v22, %v464_v61  ;;  %v499_v12 = vunpack.c.h.bf16 %v455_v41  ;;  %v652_v13 = vmul.f32 %v590_v55, %v590_v55  ;;  %v385_v41 = vld [vmem:[%s1014_s26 + $0x9c] sm:$0xff]  }
  0x2a   : > { %878 = vst [vmem:[%s1089_s30] sm:$0xff] %v877_v0   ;;  %v500_v18 = vunpack.c.l.bf16 %v492_v62  ;;  %v535_v19 = vunpack.c.l.bf16 %v527_v63  ;;  %v536_v20 = vunpack.c.h.bf16 %v492_v62  ;;  %v447_v26 = vadd.f32 %v439_v59, %v411_v8 }
  0x2b   : > { %v448_v27 = vadd.f32 %v440_v60, %v412_v9  ;;  %v511_v28 = vmul.f32 %v1033_v23, %v499_v12  ;;  %v571_v29 = vunpack.c.h.bf16 %v527_v63  ;;  %v572_v31 = vunpack.c.l.bf16 %v564_v25 }
  0x2c   : > { %v512_v5 = vmul.f32 %v1033_v23, %v500_v18  ;;  %v547_v6 = vmul.f32 %v1035_v24, %v535_v19  ;;  %v548_v30 = vmul.f32 %v1035_v24, %v536_v20  ;;  %v483_v32 = vadd.f32 %v475_v7, %v447_v26  ;;  %v494_v20 = vld [vmem:[%s1014_s26 + $0xcc] sm:$0xff]  }
  0x2d   : > { %v484_v33 = vadd.f32 %v476_v10, %v448_v27  ;;  %v583_v34 = vmul.f32 %v1066_v11, %v571_v29  ;;  %v293_v35 = vunpack.c.h.bf16 %v564_v25  ;;  %v584_v37 = vmul.f32 %v1066_v11, %v572_v31  ;;  %v457_v10 = vld [vmem:[%s1014_s26 + $0xa4] sm:$0xff]   ;;  %v529_v29 = vld [vmem:[%s1014_s26 + $0xac] sm:$0xff]  }
  0x2e   : > { %v294_v38 = vunpack.c.l.bf16 %v286_v4  ;;  %v321_v39 = vunpack.c.l.bf16 %v313_v1  ;;  %v322_v40 = vunpack.c.h.bf16 %v286_v4  ;;  %v519_v42 = vadd.f32 %v511_v28, %v483_v32 }
  0x2f   : > { %v520_v43 = vadd.f32 %v512_v5, %v484_v33  ;;  %v305_v44 = vmul.f32 %v1018_v14, %v293_v35  ;;  %v357_v45 = vunpack.c.h.bf16 %v313_v1  ;;  %v358_v49 = vunpack.c.l.bf16 %v350_v36 }
  0x30   : > { %v306_v46 = vmul.f32 %v1018_v14, %v294_v38  ;;  %v333_v47 = vmul.f32 %v1020_v15, %v321_v39  ;;  %v334_v48 = vmul.f32 %v1020_v15, %v322_v40  ;;  %v555_v50 = vadd.f32 %v547_v6, %v519_v42 }
  0x31   : > { %v556_v51 = vadd.f32 %v548_v30, %v520_v43  ;;  %v369_v52 = vmul.f32 %v1022_v16, %v357_v45  ;;  %v393_v53 = vunpack.c.l.bf16 %v385_v41  ;;  %v370_v57 = vmul.f32 %v1022_v16, %v358_v49 }
  0x32   : > { %v341_v55 = vadd.f32 %v333_v47, %v305_v44  ;;  %v342_v56 = vadd.f32 %v334_v48, %v306_v46  ;;  %v394_v59 = vunpack.c.h.bf16 %v350_v36  ;;  %v591_v60 = vadd.f32 %v583_v34, %v555_v50  ;;  %v566_v36 = vld [vmem:[%s1014_s26 + $0xd4] sm:$0xff]   ;;  %v352_v50 = vld [vmem:[%s1014_s26 + $0x104] sm:$0xff]  }
  0x33   : > { %v1118_v61 = vadd.f32 %v584_v37, %v556_v51  ;;  %v405_v62 = vmul.f32 %v1024_v17, %v393_v53  ;;  %v429_v63 = vunpack.c.h.bf16 %v385_v41  ;;  %v430_v9 = vunpack.c.l.bf16 %v422_v54  ;;  %v288_v37 = vld [vmem:[%s1014_s26 + $0xfc] sm:$0xff]  }
  0x34   : > { %v377_v0 = vadd.f32 %v369_v52, %v341_v55  ;;  %v378_v7 = vadd.f32 %v370_v57, %v342_v56  ;;  %v406_v8 = vmul.f32 %v1024_v17, %v394_v59  ;;  %v659_v12 = vadd.f32 %v652_v13, %v651_v3  ;;  %v315_v41 = vld [vmem:[%s1014_s26 + $0xdc] sm:$0xff]   ;;  %v387_v55 = vld [vmem:[%s1014_s26 + $0xe4] sm:$0xff]  }
  0x35   : > { %v882_v18 = vpack.c.bf16 %v1118_v61, %v591_v60  ;;  %v653_v19 = vmul.f32 %v591_v60, %v591_v60  ;;  %v441_v27 = vmul.f32 %v1029_v21, %v429_v63  ;;  %v442_v28 = vmul.f32 %v1029_v21, %v430_v9 }
  0x36   : > { %v413_v25 = vadd.f32 %v405_v62, %v377_v0  ;;  %v414_v26 = vadd.f32 %v406_v8, %v378_v7  ;;  %v638_v4 = vadd.f32 %v1095_v2, %v591_v60  ;;  %v654_v1 = vmul.f32 %v1118_v61, %v1118_v61 }
  0x37   : > { %894 = vst [vmem:[%s1089_s30 + $0x8] sm:$0xff] %v882_v18   ;;  %v465_v3 = vunpack.c.l.bf16 %v457_v10  ;;  %v466_v13 = vunpack.c.h.bf16 %v422_v54  ;;  %v501_v30 = vunpack.c.h.bf16 %v457_v10  ;;  %v502_v31 = vunpack.c.l.bf16 %v494_v20 }
  0x38   : > { %v449_v5 = vadd.f32 %v441_v27, %v413_v25  ;;  %v450_v6 = vadd.f32 %v442_v28, %v414_v26  ;;  %v660_v32 = vadd.f32 %v659_v12, %v653_v19  ;;  %v537_v35 = vunpack.c.l.bf16 %v529_v29  ;;  %v424_v25 = vld [vmem:[%s1014_s26 + $0x10c] sm:$0xff]  }
  0x39   : > { %v477_v33 = vmul.f32 %v1031_v22, %v465_v3  ;;  %v478_v34 = vmul.f32 %v1031_v22, %v466_v13  ;;  %v513_v2 = vmul.f32 %v1033_v23, %v501_v30  ;;  %v514_v38 = vmul.f32 %v1033_v23, %v502_v31 }
  0x3a   : > { %v538_v39 = vunpack.c.h.bf16 %v494_v20  ;;  %v573_v40 = vunpack.c.h.bf16 %v529_v29  ;;  %v549_v44 = vmul.f32 %v1035_v24, %v537_v35  ;;  %v574_v45 = vunpack.c.l.bf16 %v566_v36 }
  0x3b   : > { %v485_v42 = vadd.f32 %v477_v33, %v449_v5  ;;  %v486_v43 = vadd.f32 %v478_v34, %v450_v6  ;;  %v295_v48 = vunpack.c.h.bf16 %v566_v36  ;;  %v296_v49 = vunpack.c.l.bf16 %v288_v37  ;;  %v496_v33 = vld [vmem:[%s1014_s26 + $0x114] sm:$0xff]  }
  0x3c   : > { %v550_v46 = vmul.f32 %v1035_v24, %v538_v39  ;;  %v585_v47 = vmul.f32 %v1066_v11, %v573_v40  ;;  %v586_v53 = vmul.f32 %v1066_v11, %v574_v45  ;;  %v323_v54 = vunpack.c.l.bf16 %v315_v41  ;;  %v531_v34 = vld [vmem:[%s1014_s26 + $0xf4] sm:$0xff]  }
  0x3d   : > { %v521_v51 = vadd.f32 %v513_v2, %v485_v42  ;;  %v522_v52 = vadd.f32 %v514_v38, %v486_v43  ;;  %v307_v56 = vmul.f32 %v1018_v14, %v295_v48  ;;  %v308_v57 = vmul.f32 %v1018_v14, %v296_v49 }
  0x3e   : > { %v324_v59 = vunpack.c.h.bf16 %v288_v37  ;;  %v359_v60 = vunpack.c.h.bf16 %v315_v41  ;;  %v335_v0 = vmul.f32 %v1020_v15, %v323_v54  ;;  %v360_v7 = vunpack.c.l.bf16 %v352_v50 }
  0x3f   : > { %v557_v62 = vadd.f32 %v549_v44, %v521_v51  ;;  %v558_v63 = vadd.f32 %v550_v46, %v522_v52  ;;  %v395_v10 = vunpack.c.l.bf16 %v387_v55  ;;  %v396_v12 = vunpack.c.h.bf16 %v352_v50 }
  0x40   : > { %v336_v8 = vmul.f32 %v1020_v15, %v324_v59  ;;  %v371_v9 = vmul.f32 %v1022_v16, %v359_v60  ;;  %v343_v20 = vadd.f32 %v335_v0, %v307_v56  ;;  %v372_v14 = vmul.f32 %v1022_v16, %v360_v7  ;;  %v459_v15 = vld [vmem:[%s1014_s26 + $0xec] sm:$0xff]  }
  0x41   : > { %v593_v18 = vadd.f32 %v585_v47, %v557_v62  ;;  %v594_v19 = vadd.f32 %v586_v53, %v558_v63  ;;  %v407_v27 = vmul.f32 %v1024_v17, %v395_v10  ;;  %v408_v28 = vmul.f32 %v1024_v17, %v396_v12 }
  0x42   : > { %v344_v26 = vadd.f32 %v336_v8, %v308_v57  ;;  %v431_v29 = vunpack.c.h.bf16 %v387_v55  ;;  %v639_v3 = vadd.f32 %v638_v4, %v1118_v61  ;;  %v379_v5 = vadd.f32 %v371_v9, %v343_v20 }
  0x43   : > { %v887_v13 = vpack.c.bf16 %v594_v19, %v593_v18  ;;  %v432_v30 = vunpack.c.l.bf16 %v424_v25  ;;  %v661_v16 = vadd.f32 %v660_v32, %v654_v1  ;;  %v655_v35 = vmul.f32 %v593_v18, %v593_v18 }
  0x44   : > { %v380_v6 = vadd.f32 %v372_v14, %v344_v26  ;;  %v443_v31 = vmul.f32 %v1029_v21, %v431_v29  ;;  %v467_v36 = vunpack.c.l.bf16 %v459_v15  ;;  %v468_v37 = vunpack.c.h.bf16 %v424_v25 }
  0x45   : > { %895 = vst [vmem:[%s1089_s30 + $0x10] sm:$0xff] %v887_v13   ;;  %v415_v2 = vadd.f32 %v407_v27, %v379_v5  ;;  %v444_v17 = vmul.f32 %v1029_v21, %v432_v30  ;;  %v503_v39 = vunpack.c.h.bf16 %v459_v15  ;;  %v504_v40 = vunpack.c.l.bf16 %v496_v33 }
  0x46   : > { %v416_v38 = vadd.f32 %v408_v28, %v380_v6  ;;  %v479_v61 = vmul.f32 %v1031_v22, %v467_v36  ;;  %v480_v4 = vmul.f32 %v1031_v22, %v468_v37  ;;  %v539_v41 = vunpack.c.l.bf16 %v531_v34 }
  0x47   : > { %v451_v42 = vadd.f32 %v443_v31, %v415_v2  ;;  %v515_v44 = vmul.f32 %v1033_v23, %v503_v39  ;;  %v540_v1 = vunpack.c.h.bf16 %v496_v33  ;;  %v640_v32 = vadd.f32 %v639_v3, %v593_v18 }
  0x48   : > { %v452_v43 = vadd.f32 %v444_v17, %v416_v38  ;;  %v516_v45 = vmul.f32 %v1033_v23, %v504_v40  ;;  %v575_v46 = vunpack.c.h.bf16 %v531_v34  ;;  %v576_v47 = vunpack.c.h.bf16 %v1053_v58 }
  0x49   : > { %v487_v48 = vadd.f32 %v479_v61, %v451_v42  ;;  %v551_v49 = vmul.f32 %v1035_v24, %v539_v41  ;;  %v552_v50 = vmul.f32 %v1035_v24, %v540_v1  ;;  %v656_v22 = vmul.f32 %v594_v19, %v594_v19 }
  0x4a   : > { %v488_v21 = vadd.f32 %v480_v4, %v452_v43  ;;  %v662_v51 = vadd.f32 %v661_v16, %v655_v35  ;;  %v587_v54 = vmul.f32 %v1066_v11, %v575_v46  ;;  %v588_v55 = vmul.f32 %v1066_v11, %v576_v47 }
  0x4b   : > { %v523_v52 = vadd.f32 %v515_v44, %v487_v48  ;;  %v641_v56 = vadd.f32 %v640_v32, %v594_v19 }
  0x4c   : > { %v524_v53 = vadd.f32 %v516_v45, %v488_v21  ;;  %v663_v60 = vadd.f32 %v662_v51, %v656_v22 }
  0x4d   : > { %v559_v23 = vadd.f32 %v551_v49, %v523_v52 }
  0x4e   : > { %v560_v57 = vadd.f32 %v552_v50, %v524_v53 }
  0x4f   : > { %v595_v59 = vadd.f32 %v587_v54, %v559_v23 }
  0x50   : > { %v596_v58 = vadd.f32 %v588_v55, %v560_v57 }
  0x51   : > { %v657_v63 = vmul.f32 %v595_v59, %v595_v59  ;;  %v642_v0 = vadd.f32 %v641_v56, %v595_v59 }
  0x52   : > { %v892_v62 = vpack.c.bf16 %v596_v58, %v595_v59  ;;  %v658_v24 = vmul.f32 %v596_v58, %v596_v58 }
  0x53   : > { %v643_v7 = vadd.f32 %v642_v0, %v596_v58  ;;  %v664_v8 = vadd.f32 %v663_v60, %v657_v63 }
  0x54   : > { %896 = vst [vmem:[%s1089_s30 + $0x18] sm:$0xff] %v892_v62  }
  0x55   : > { %v644_v9 = vrot.slane %v643_v7, 4  ;;  %v665_v10 = vadd.f32 %v664_v8, %v658_v24 }
  0x57   : > { %v645_v12 = vadd.f32 %v644_v9, %v643_v7  ;;  %v666_v18 = vrot.slane %v665_v10, 4 }
  0x59   : > { %v646_v20 = vrot.slane %v645_v12, 2  ;;  %v667_v11 = vadd.f32 %v666_v18, %v665_v10 }
  0x5b   : > { %v647_v19 = vadd.f32 %v646_v20, %v645_v12  ;;  %v668_v14 = vrot.slane %v667_v11, 2 }
  0x5d   : > { %v648_v25 = vrot.slane %v647_v19, 1  ;;  %v669_v26 = vadd.f32 %v668_v14, %v667_v11 }
  0x5f   : > { %v649_v27 = vadd.f32 %v648_v25, %v647_v19  ;;  %v670_v28 = vrot.slane %v669_v26, 1 }
  0x61   : > { %650 = vst [vmem:[%s269_s8] sm:$0xff] %v649_v27  ;;  %v671_v29 = vadd.f32 %v670_v28, %v669_v26 }
  0x63   : > { %672 = vst [vmem:[%s276_s11] sm:$0xff] %v671_v29 }
  0x64 PF: > { %s15_s17 = sadd.s32 1, %s944_s17   ;;  %s1192_s15 = smov %s940_s16 }
  0x65   : > { %p12_p5 = scmp.ge.s32.totalorder %s15_s17, 4   ;;  %s1193_s16 = smov %s1195_s18 }
  0x67   :  { %14 = sbr.rel (!%p12_p5) target bundleno = 2 (0x2), region = 82 }

// kernel: _lambda_.31
= control target key start
LH: loop header
LB: loop body
LE: loop exit
PB: predicated region body
PF: predicated region fallthrough
CT: control target
= control target key end

     0   :  { %s532_s12 = smov 0   ;;  %s534_s13 = smov 0   ;;  %s578_s0 = inlined_call_operand.vmem [shape: bf16[2,64,128], index: 0, kind: input, shape index: {}]   ;;  %s579_s1 = inlined_call_operand.vmem [shape: f32[1,128], index: 1, kind: input, shape index: {}]   ;;  %s580_s2 = inlined_call_operand.vmem [shape: f32[1,128], index: 2, kind: input, shape index: {}]   ;;  %s581_s3 = inlined_call_operand.vmem [shape: bf16[2,64,128], index: 3, kind: output, shape index: {}]  }
   0x1   :  { %s536_s14 = smov 0  }
   0x2 LB: > { %s25_s15 = sadd.s32 1, %s506_s13  ;;  %p395_p0 = scmp.ge.s32.totalorder %s510_s14, 1  ;;  %s510_s14 = sphi %s536_s14, %s13_s14   ;;  %s506_s13 = sphi %s534_s13, %s583_s13   ;;  %s502_s12 = sphi %s532_s12, %s582_s12  }
   0x3   : > { %p27_p1 = scmp.ge.s32.totalorder %s25_s15, 2  ;;  %p158_p2 = scmp.lt.s32.totalorder %s510_s14, 3 }
   0x5   : > { %s585_s15 = smov (%p27_p1, %s25_s15), 0  ;;  %p159_p3 = pnand %p395_p0, %p158_p2 }
   0x6   : > { %p191_p4 = scmp.lt.s32.totalorder (!%p159_p3), %s502_s12, 1 }
   0x7   : > { %162 = sbr.rel (%p159_p3) target bundleno = 28 (0x1c), region = 32 }
   0xc   : > { %s587_s12 = smov (!%p191_p4, %s502_s12), 1  ;;  %v400_v0 = vld [vmem:[%s579_s1] ss:$0 sm:$0xff] }
   0xd   : > { %s412_s16 = sshll.u32 %s587_s12, 5  ;;  %v401_v9 = vld [vmem:[%s580_s2] ss:$0 sm:$0xff] }
   0xe   : > { %s198_s19 = scalar_lea.vmem %s578_s0, %s412_s16  ;;  %s208_s26 = scalar_lea.vmem %s581_s3, %s412_s16 }
   0xf   : > { %v423_v1 = vld [vmem:[%s198_s19] sm:$0xff]   ;;  %v458_v2 = vld [vmem:[%s198_s19 + $0x8] sm:$0xff]   ;;  %v459_v3 = vld [vmem:[%s198_s19 + $0x10] sm:$0xff]  }
  0x10   : > { %v424_v4 = vunpack.c.l.bf16 %v423_v1  ;;  %v425_v5 = vunpack.c.h.bf16 %v423_v1  ;;  %v428_v6 = vunpack.c.l.bf16 %v458_v2  ;;  %v429_v7 = vunpack.c.h.bf16 %v458_v2  ;;  %v460_v8 = vld [vmem:[%s198_s19 + $0x18] sm:$0xff]  }
  0x11   : > { %v432_v10 = vunpack.c.l.bf16 %v459_v3  ;;  %v433_v11 = vunpack.c.h.bf16 %v459_v3  ;;  %v436_v12 = vunpack.c.l.bf16 %v460_v8  ;;  %v437_v13 = vunpack.c.h.bf16 %v460_v8 }
  0x12   : > { %v233_v14 = vmul.f32 %v424_v4, %v400_v0  ;;  %v234_v15 = vmul.f32 %v425_v5, %v400_v0  ;;  %v235_v16 = vmul.f32 %v428_v6, %v400_v0  ;;  %v236_v17 = vmul.f32 %v429_v7, %v400_v0 }
  0x13   : > { %v237_v18 = vmul.f32 %v432_v10, %v400_v0  ;;  %v238_v19 = vmul.f32 %v433_v11, %v400_v0  ;;  %v239_v20 = vmul.f32 %v436_v12, %v400_v0  ;;  %v240_v21 = vmul.f32 %v437_v13, %v400_v0 }
  0x14   : > { %v248_v22 = vadd.f32 %v401_v9, %v233_v14  ;;  %v249_v23 = vadd.f32 %v401_v9, %v234_v15  ;;  %v250_v24 = vadd.f32 %v401_v9, %v235_v16  ;;  %v251_v25 = vadd.f32 %v401_v9, %v236_v17 }
  0x15   : > { %v252_v26 = vadd.f32 %v401_v9, %v237_v18  ;;  %v253_v27 = vadd.f32 %v401_v9, %v238_v19  ;;  %v254_v28 = vadd.f32 %v401_v9, %v239_v20  ;;  %v255_v29 = vadd.f32 %v401_v9, %v240_v21 }
  0x16   : > { %v256_v30 = vmax.f32 %v248_v22, 0.0  ;;  %v257_v31 = vmax.f32 %v249_v23, 0.0  ;;  %v258_v32 = vmax.f32 %v250_v24, 0.0  ;;  %v259_v33 = vmax.f32 %v251_v25, 0.0 }
  0x17   : > { %v260_v34 = vmax.f32 %v252_v26, 0.0  ;;  %v261_v35 = vmax.f32 %v253_v27, 0.0  ;;  %v262_v36 = vmax.f32 %v254_v28, 0.0  ;;  %v263_v37 = vmax.f32 %v255_v29, 0.0 }
  0x18   : > { %v441_v38 = vpack.c.bf16 %v257_v31, %v256_v30  ;;  %v446_v39 = vpack.c.bf16 %v259_v33, %v258_v32 }
  0x19   : > { %v451_v40 = vpack.c.bf16 %v261_v35, %v260_v34  ;;  %v456_v41 = vpack.c.bf16 %v263_v37, %v262_v36 }
  0x1a   : > { %442 = vst [vmem:[%s208_s26] sm:$0xff] %v441_v38   ;;  %461 = vst [vmem:[%s208_s26 + $0x8] sm:$0xff] %v446_v39  }
  0x1b   : > { %462 = vst [vmem:[%s208_s26 + $0x10] sm:$0xff] %v451_v40   ;;  %463 = vst [vmem:[%s208_s26 + $0x18] sm:$0xff] %v456_v41  }
  0x1c PF: > { %s13_s14 = sadd.s32 1, %s510_s14   ;;  %s582_s12 = smov %s506_s13 }
  0x1d   : > { %p10_p5 = scmp.ge.s32.totalorder %s13_s14, 4   ;;  %s583_s13 = smov %s585_s15 }
  0x1f   :  { %12 = sbr.rel (!%p10_p5) target bundleno = 2 (0x2), region = 62 }

// kernel: _lambda_.33
= control target key start
LH: loop header
LB: loop body
LE: loop exit
PB: predicated region body
PF: predicated region fallthrough
CT: control target
= control target key end

     0   :  { %s656_s15 = smov 0   ;;  %s658_s16 = smov 0   ;;  %s709_s0 = inlined_call_operand.vmem [shape: bf16[2,64,128], index: 0, kind: input, shape index: {}]   ;;  %s710_s1 = inlined_call_operand.vmem [shape: f32[1,128], index: 1, kind: input, shape index: {}]   ;;  %s711_s2 = inlined_call_operand.vmem [shape: f32[1,128], index: 2, kind: input, shape index: {}]   ;;  %s712_s3 = inlined_call_operand.vmem [shape: bf16[2,64,128], index: 3, kind: input, shape index: {}]   ;;  %s713_s4 = inlined_call_operand.vmem [shape: bf16[2,64,128], index: 4, kind: output, shape index: {}]  }
   0x1   :  { %s660_s17 = smov 0  }
   0x2 LB: > { %s26_s18 = sadd.s32 1, %s625_s16  ;;  %p492_p0 = scmp.ge.s32.totalorder %s629_s17, 1  ;;  %s629_s17 = sphi %s660_s17, %s14_s17   ;;  %s625_s16 = sphi %s658_s16, %s715_s16   ;;  %s621_s15 = sphi %s656_s15, %s714_s15  }
   0x3   : > { %p28_p1 = scmp.ge.s32.totalorder %s26_s18, 2  ;;  %p200_p2 = scmp.lt.s32.totalorder %s629_s17, 3 }
   0x5   : > { %s717_s18 = smov (%p28_p1, %s26_s18), 0  ;;  %p201_p3 = pnand %p492_p0, %p200_p2 }
   0x6   : > { %p244_p4 = scmp.lt.s32.totalorder (!%p201_p3), %s621_s15, 1 }
   0x7   : > { %204 = sbr.rel (%p201_p3) target bundleno = 32 (0x20), region = 36 }
   0xc   : > { %s719_s15 = smov (!%p244_p4, %s621_s15), 1  ;;  %v499_v0 = vld [vmem:[%s710_s1] ss:$0 sm:$0xff] }
   0xd   : > { %s674_s19 = sshll.u32 %s719_s15, 5  ;;  %v500_v11 = vld [vmem:[%s711_s2] ss:$0 sm:$0xff] }
   0xe   : > { %s251_s22 = scalar_lea.vmem %s709_s0, %s674_s19  ;;  %s684_s25 = scalar_lea.vmem %s712_s3, %s674_s19 }
   0xf   : > { %v523_v1 = vld [vmem:[%s251_s22] sm:$0xff]   ;;  %v574_v3 = vld [vmem:[%s251_s22 + $0x8] sm:$0xff]   ;;  %v575_v9 = vld [vmem:[%s251_s22 + $0x10] sm:$0xff]   ;;  %s271_s6 = scalar_lea.vmem %s713_s4, %s674_s19 }
  0x10   : > { %v539_v2 = vld [vmem:[%s684_s25] sm:$0xff]   ;;  %v524_v4 = vunpack.c.l.bf16 %v523_v1  ;;  %v525_v5 = vunpack.c.h.bf16 %v523_v1  ;;  %v577_v8 = vld [vmem:[%s684_s25 + $0x8] sm:$0xff]   ;;  %v578_v10 = vld [vmem:[%s684_s25 + $0x10] sm:$0xff]   ;;  %v528_v12 = vunpack.c.l.bf16 %v574_v3  ;;  %v529_v13 = vunpack.c.h.bf16 %v574_v3 }
  0x11   : > { %v540_v6 = vunpack.c.l.bf16 %v539_v2  ;;  %v541_v7 = vunpack.c.h.bf16 %v539_v2  ;;  %v544_v14 = vunpack.c.l.bf16 %v577_v8  ;;  %v545_v15 = vunpack.c.h.bf16 %v577_v8  ;;  %v576_v20 = vld [vmem:[%s251_s22 + $0x18] sm:$0xff]  }
  0x12   : > { %v296_v16 = vmul.f32 %v524_v4, %v499_v0  ;;  %v297_v17 = vmul.f32 %v525_v5, %v499_v0  ;;  %v532_v18 = vunpack.c.l.bf16 %v575_v9  ;;  %v533_v19 = vunpack.c.h.bf16 %v575_v9  ;;  %v579_v33 = vld [vmem:[%s684_s25 + $0x18] sm:$0xff]  }
  0x13   : > { %v298_v21 = vmul.f32 %v528_v12, %v499_v0  ;;  %v299_v22 = vmul.f32 %v529_v13, %v499_v0  ;;  %v548_v23 = vunpack.c.l.bf16 %v578_v10  ;;  %v549_v24 = vunpack.c.h.bf16 %v578_v10 }
  0x14   : > { %v311_v25 = vadd.f32 %v500_v11, %v296_v16  ;;  %v312_v26 = vadd.f32 %v500_v11, %v297_v17  ;;  %v300_v27 = vmul.f32 %v532_v18, %v499_v0  ;;  %v301_v28 = vmul.f32 %v533_v19, %v499_v0 }
  0x15   : > { %v313_v29 = vadd.f32 %v500_v11, %v298_v21  ;;  %v314_v30 = vadd.f32 %v500_v11, %v299_v22  ;;  %v536_v31 = vunpack.c.l.bf16 %v576_v20  ;;  %v537_v32 = vunpack.c.h.bf16 %v576_v20 }
  0x16   : > { %v335_v34 = vadd.f32 %v540_v6, %v311_v25  ;;  %v336_v35 = vadd.f32 %v541_v7, %v312_v26  ;;  %v315_v36 = vadd.f32 %v500_v11, %v300_v27  ;;  %v316_v37 = vadd.f32 %v500_v11, %v301_v28 }
  0x17   : > { %v337_v38 = vadd.f32 %v544_v14, %v313_v29  ;;  %v338_v39 = vadd.f32 %v545_v15, %v314_v30  ;;  %v302_v40 = vmul.f32 %v536_v31, %v499_v0  ;;  %v303_v41 = vmul.f32 %v537_v32, %v499_v0 }
  0x18   : > { %v557_v42 = vpack.c.bf16 %v336_v35, %v335_v34  ;;  %v339_v43 = vadd.f32 %v548_v23, %v315_v36  ;;  %v340_v44 = vadd.f32 %v549_v24, %v316_v37  ;;  %v552_v45 = vunpack.c.l.bf16 %v579_v33 }
  0x19   : > { %v562_v46 = vpack.c.bf16 %v338_v39, %v337_v38  ;;  %v317_v47 = vadd.f32 %v500_v11, %v302_v40  ;;  %v318_v48 = vadd.f32 %v500_v11, %v303_v41  ;;  %v553_v49 = vunpack.c.h.bf16 %v579_v33 }
  0x1a   : > { %558 = vst [vmem:[%s271_s6] sm:$0xff] %v557_v42   ;;  %v567_v50 = vpack.c.bf16 %v340_v44, %v339_v43 }
  0x1b   : > { %580 = vst [vmem:[%s271_s6 + $0x8] sm:$0xff] %v562_v46   ;;  %v341_v51 = vadd.f32 %v552_v45, %v317_v47  ;;  %v342_v52 = vadd.f32 %v553_v49, %v318_v48 }
  0x1c   : > { %581 = vst [vmem:[%s271_s6 + $0x10] sm:$0xff] %v567_v50  }
  0x1d   : > { %v572_v53 = vpack.c.bf16 %v342_v52, %v341_v51 }
  0x1f   : > { %582 = vst [vmem:[%s271_s6 + $0x18] sm:$0xff] %v572_v53  }
  0x20 PF: > { %s14_s17 = sadd.s32 1, %s629_s17   ;;  %s714_s15 = smov %s625_s16 }
  0x21   : > { %p11_p5 = scmp.ge.s32.totalorder %s14_s17, 4   ;;  %s715_s16 = smov %s717_s18 }
  0x23   :  { %13 = sbr.rel (!%p11_p5) target bundleno = 2 (0x2), region = 69 }

// kernel: _lambda_.32
= control target key start
LH: loop header
LB: loop body
LE: loop exit
PB: predicated region body
PF: predicated region fallthrough
CT: control target
= control target key end

     0   :  { %s884_s15 = smov 0   ;;  %s886_s16 = smov 0   ;;  %s961_s0 = inlined_call_operand.vmem [shape: bf16[2,64,128], index: 0, kind: input, shape index: {}]   ;;  %s962_s1 = inlined_call_operand.vmem [shape: bf16[128,128], index: 1, kind: input, shape index: {}]   ;;  %s963_s2 = inlined_call_operand.vmem [shape: bf16[2,64,128], index: 2, kind: output, shape index: {0}]   ;;  %s964_s3 = inlined_call_operand.vmem [shape: f32[2,1,8,128], index: 3, kind: output, shape index: {1}]   ;;  %s965_s4 = inlined_call_operand.vmem [shape: f32[2,1,8,128], index: 4, kind: output, shape index: {2}]  }
   0x1   :  { %s888_s17 = smov 0  }
   0x2 LB: > { %s27_s18 = sadd.s32 1, %s853_s16  ;;  %p685_p0 = scmp.ge.s32.totalorder %s857_s17, 1  ;;  %s857_s17 = sphi %s888_s17, %s15_s17   ;;  %s853_s16 = sphi %s886_s16, %s967_s16   ;;  %s849_s15 = sphi %s884_s15, %s966_s15  }
   0x3   : > { %p29_p1 = scmp.ge.s32.totalorder %s27_s18, 2  ;;  %p192_p2 = scmp.lt.s32.totalorder %s857_s17, 3 }
   0x5   : > { %s969_s18 = smov (%p29_p1, %s27_s18), 0  ;;  %p193_p3 = pnand %p685_p0, %p192_p2 }
   0x6   : > { %p241_p4 = scmp.lt.s32.totalorder (!%p193_p3), %s849_s15, 1 }
   0x7   : > { %196 = sbr.rel (%p193_p3) target bundleno = 273 (0x111), region = 28 }
   0xc   : > { %v823_v0 = vld [vmem:[%s962_s1 + $0x38] sm:$0xff]   ;;  %v824_v1 = vld [vmem:[%s962_s1 + $0x30] sm:$0xff]   ;;  %s971_s15 = smov (!%p241_p4, %s849_s15), 1  ;;  %v825_v2 = vld [vmem:[%s962_s1 + $0x28] sm:$0xff]  }
   0xd   : > { %759 = vmatprep.subr.bf16.mxu0 %v823_v0  ;;  %783 = vmatprep.subr.bf16.mxu1 %v823_v0  ;;  %s714_s25 = sshll.u32 %s971_s15, 5  ;;  %v826_v3 = vld [vmem:[%s962_s1 + $0x20] sm:$0xff]   ;;  %v827_v6 = vld [vmem:[%s962_s1 + $0x18] sm:$0xff]   ;;  %v828_v7 = vld [vmem:[%s962_s1 + $0x10] sm:$0xff]   ;;  %s690_s20 = sshll.u32 %s971_s15, 3 }
   0xe   : > { %760 = vmatpush3.bf16.msra.mxu0 %v823_v0  ;;  %791 = vmatpush3.bf16.msra.mxu1 %v823_v0  ;;  %s919_s28 = scalar_lea.vmem %s961_s0, %s714_s25  ;;  %v829_v8 = vld [vmem:[%s962_s1 + $0x8] sm:$0xff]   ;;  %v830_v9 = vld [vmem:[%s962_s1] sm:$0xff]   ;;  %s258_s19 = scalar_lea.vmem %s963_s2, %s714_s25 }
   0xf   : > { %761 = vmatprep.subr.bf16.mxu0 %v824_v1  ;;  %784 = vmatprep.subr.bf16.mxu1 %v824_v1  ;;  %v831_v4 = vld [vmem:[%s919_s28] sm:$0xff]   ;;  %v833_v5 = vld [vmem:[%s919_s28 + $0x10] sm:$0xff]   ;;  %v832_v10 = vld [vmem:[%s919_s28 + $0x8] sm:$0xff]   ;;  %s266_s23 = scalar_lea.vmem %s964_s3, %s690_s20  ;;  %s273_s26 = scalar_lea.vmem %s965_s4, %s690_s20 }
  0x10   : > { %775 = vmatprep.mubr.bf16.mxu0 %v831_v4  ;;  %779 = vmatprep.mubr.bf16.mxu1 %v833_v5  ;;  %v834_v11 = vld [vmem:[%s919_s28 + $0x18] sm:$0xff]  }
  0x12   : > { %762 = vmatpush3.bf16.msra.mxu0 %v824_v1  ;;  %792 = vmatpush3.bf16.msra.mxu1 %v824_v1 }
  0x13   : > { %763 = vmatprep.subr.bf16.mxu0 %v825_v2  ;;  %785 = vmatprep.subr.bf16.mxu1 %v825_v2 }
  0x16   : > { %764 = vmatpush3.bf16.msra.mxu0 %v825_v2  ;;  %793 = vmatpush3.bf16.msra.mxu1 %v825_v2 }
  0x17   : > { %765 = vmatprep.subr.bf16.mxu0 %v826_v3  ;;  %786 = vmatprep.subr.bf16.mxu1 %v826_v3 }
  0x1a   : > { %766 = vmatpush3.bf16.msra.mxu0 %v826_v3  ;;  %794 = vmatpush3.bf16.msra.mxu1 %v826_v3 }
  0x1b   : > { %767 = vmatprep.subr.bf16.mxu0 %v827_v6  ;;  %787 = vmatprep.subr.bf16.mxu1 %v827_v6 }
  0x1e   : > { %768 = vmatpush3.bf16.msra.mxu0 %v827_v6  ;;  %795 = vmatpush3.bf16.msra.mxu1 %v827_v6 }
  0x1f   : > { %769 = vmatprep.subr.bf16.mxu0 %v828_v7  ;;  %788 = vmatprep.subr.bf16.mxu1 %v828_v7 }
  0x22   : > { %770 = vmatpush3.bf16.msra.mxu0 %v828_v7  ;;  %796 = vmatpush3.bf16.msra.mxu1 %v828_v7 }
  0x23   : > { %771 = vmatprep.subr.bf16.mxu0 %v829_v8  ;;  %789 = vmatprep.subr.bf16.mxu1 %v829_v8 }
  0x26   : > { %772 = vmatpush3.bf16.msra.mxu0 %v829_v8  ;;  %797 = vmatpush3.bf16.msra.mxu1 %v829_v8 }
  0x27   : > { %773 = vmatprep.subr.bf16.mxu0 %v830_v9  ;;  %790 = vmatprep.subr.bf16.mxu1 %v830_v9 }
  0x2a   : > { %774 = vmatpush3.bf16.msra.mxu0 %v830_v9  ;;  %798 = vmatpush3.bf16.msra.mxu1 %v830_v9 }
  0x2d   : > { %776 = vmatmul.mubr.bf16.vlgmr.msra.gmra.mxu0 %v832_v10  ;;  %780 = vmatmul.mubr.bf16.vlgmr.msra.gmra.mxu1 %v834_v11 }
  0xed   : > { %v777_v12 = vpop.f32.mrf.mxu0  ;;  %v781_v13 = vpop.f32.mrf.mxu1 }
  0xee   : > { %v492_v27 = vmul.f32 %v777_v12, %v777_v12  ;;  %v496_v39 = vmul.f32 %v781_v13, %v781_v13 }
  0xef   : > { %v405_v14 = vpop.f32.mrf.mxu0  ;;  %v421_v15 = vpop.f32.mrf.mxu1 }
  0xf0   : > { %v490_v20 = vmul.f32 %v405_v14, %v405_v14  ;;  %v494_v33 = vmul.f32 %v421_v15, %v421_v15 }
  0xf1   : > { %v778_v16 = vpop.f32.mrf.mxu0  ;;  %v782_v17 = vpop.f32.mrf.mxu1 }
  0xf2   : > { %v732_v18 = vpack.c.bf16 %v778_v16, %v777_v12  ;;  %v742_v19 = vpack.c.bf16 %v782_v17, %v781_v13  ;;  %v493_v30 = vmul.f32 %v778_v16, %v778_v16  ;;  %v497_v42 = vmul.f32 %v782_v17, %v782_v17 }
  0xf3   : > { %v408_v21 = vpop.f32.mrf.mxu0  ;;  %v424_v22 = vpop.f32.mrf.mxu1 }
  0xf4   : > { %744 = vst [vmem:[%s258_s19 + $0x8] sm:$0xff] %v732_v18   ;;  %v727_v23 = vpack.c.bf16 %v408_v21, %v405_v14  ;;  %v476_v24 = vadd.f32 %v408_v21, %v405_v14  ;;  %v491_v25 = vmul.f32 %v408_v21, %v408_v21  ;;  %746 = vst [vmem:[%s258_s19 + $0x18] sm:$0xff] %v742_v19  }
  0xf5   : > { %v737_v26 = vpack.c.bf16 %v424_v22, %v421_v15  ;;  %v495_v37 = vmul.f32 %v424_v22, %v424_v22 }
  0xf6   : > { %728 = vst [vmem:[%s258_s19] sm:$0xff] %v727_v23   ;;  %v477_v28 = vadd.f32 %v777_v12, %v476_v24  ;;  %v498_v29 = vadd.f32 %v491_v25, %v490_v20 }
  0xf7   : > { %745 = vst [vmem:[%s258_s19 + $0x10] sm:$0xff] %v737_v26  }
  0xf8   : > { %v499_v31 = vadd.f32 %v498_v29, %v492_v27  ;;  %v478_v32 = vadd.f32 %v778_v16, %v477_v28 }
  0xfa   : > { %v479_v34 = vadd.f32 %v478_v32, %v421_v15  ;;  %v500_v35 = vadd.f32 %v499_v31, %v493_v30 }
  0xfc   : > { %v480_v36 = vadd.f32 %v479_v34, %v424_v22  ;;  %v501_v38 = vadd.f32 %v500_v35, %v494_v33 }
  0xfe   : > { %v481_v40 = vadd.f32 %v781_v13, %v480_v36  ;;  %v502_v41 = vadd.f32 %v501_v38, %v495_v37 }
 0x100   : > { %v482_v43 = vadd.f32 %v782_v17, %v481_v40  ;;  %v503_v44 = vadd.f32 %v502_v41, %v496_v39 }
 0x102   : > { %v483_v45 = vrot.slane %v482_v43, 4  ;;  %v504_v46 = vadd.f32 %v503_v44, %v497_v42 }
 0x104   : > { %v484_v47 = vadd.f32 %v483_v45, %v482_v43  ;;  %v505_v48 = vrot.slane %v504_v46, 4 }
 0x106   : > { %v485_v49 = vrot.slane %v484_v47, 2  ;;  %v506_v50 = vadd.f32 %v505_v48, %v504_v46 }
 0x108   : > { %v486_v51 = vadd.f32 %v485_v49, %v484_v47  ;;  %v507_v52 = vrot.slane %v506_v50, 2 }
 0x10a   : > { %v487_v53 = vrot.slane %v486_v51, 1  ;;  %v508_v54 = vadd.f32 %v507_v52, %v506_v50 }
 0x10c   : > { %v488_v55 = vadd.f32 %v487_v53, %v486_v51  ;;  %v509_v56 = vrot.slane %v508_v54, 1 }
 0x10e   : > { %489 = vst [vmem:[%s266_s23] sm:$0xff] %v488_v55  ;;  %v510_v57 = vadd.f32 %v509_v56, %v508_v54 }
 0x110   : > { %511 = vst [vmem:[%s273_s26] sm:$0xff] %v510_v57 }
 0x111 PF: > { %s15_s17 = sadd.s32 1, %s857_s17   ;;  %s966_s15 = smov %s853_s16 }
 0x112   : > { %p12_p5 = scmp.ge.s32.totalorder %s15_s17, 4   ;;  %s967_s16 = smov %s969_s18 }
 0x114   :  { %14 = sbr.rel (!%p12_p5) target bundleno = 2 (0x2), region = 82 }

// kernel: _lambda_.37
= control target key start
LH: loop header
LB: loop body
LE: loop exit
PB: predicated region body
PF: predicated region fallthrough
CT: control target
= control target key end

     0   :  { %s427_s12 = smov 0   ;;  %s429_s13 = smov 0   ;;  %s463_s0 = inlined_call_operand.vmem [shape: bf16[2,16,128], index: 0, kind: input, shape index: {}]   ;;  %s464_s1 = inlined_call_operand.vmem [shape: f32[1,128], index: 1, kind: input, shape index: {}]   ;;  %s465_s2 = inlined_call_operand.vmem [shape: f32[1,128], index: 2, kind: input, shape index: {}]   ;;  %s466_s3 = inlined_call_operand.vmem [shape: bf16[2,16,128], index: 3, kind: output, shape index: {}]  }
   0x1   :  { %s431_s14 = smov 0  }
   0x2 LB: > { %s25_s15 = sadd.s32 1, %s401_s13  ;;  %p335_p0 = scmp.ge.s32.totalorder %s405_s14, 1  ;;  %s405_s14 = sphi %s431_s14, %s13_s14   ;;  %s401_s13 = sphi %s429_s13, %s468_s13   ;;  %s397_s12 = sphi %s427_s12, %s467_s12  }
   0x3   : > { %p27_p1 = scmp.ge.s32.totalorder %s25_s15, 2  ;;  %p158_p2 = scmp.lt.s32.totalorder %s405_s14, 3 }
   0x5   : > { %s470_s15 = smov (%p27_p1, %s25_s15), 0  ;;  %p159_p3 = pnand %p335_p0, %p158_p2 }
   0x6   : > { %p191_p4 = scmp.lt.s32.totalorder (!%p159_p3), %s397_s12, 1 }
   0x7   : > { %162 = sbr.rel (%p159_p3) target bundleno = 27 (0x1b), region = 32 }
   0xc   : > { %s472_s12 = smov (!%p191_p4, %s397_s12), 1  ;;  %v340_v1 = vld [vmem:[%s464_s1] ss:$0 sm:$0xff] }
   0xd   : > { %s346_s16 = sshll.u32 %s472_s12, 3  ;;  %v341_v4 = vld [vmem:[%s465_s2] ss:$0 sm:$0xff] }
   0xe   : > { %s198_s19 = scalar_lea.vmem %s463_s0, %s346_s16  ;;  %s208_s26 = scalar_lea.vmem %s466_s3, %s346_s16 }
   0xf   : > { %v351_v0 = vld [vmem:[%s198_s19] sm:$0xff]  }
  0x10   : > { %v352_v2 = vunpack.c.l.bf16 %v351_v0  ;;  %v353_v3 = vunpack.c.h.bf16 %v351_v0 }
  0x12   : > { %v221_v5 = vmul.f32 %v352_v2, %v340_v1  ;;  %v222_v6 = vmul.f32 %v353_v3, %v340_v1 }
  0x14   : > { %v230_v7 = vadd.f32 %v341_v4, %v221_v5  ;;  %v231_v8 = vadd.f32 %v341_v4, %v222_v6 }
  0x16   : > { %v232_v9 = vmax.f32 %v230_v7, 0.0  ;;  %v233_v10 = vmax.f32 %v231_v8, 0.0 }
  0x18   : > { %v357_v11 = vpack.c.bf16 %v233_v10, %v232_v9 }
  0x1a   : > { %358 = vst [vmem:[%s208_s26] sm:$0xff] %v357_v11  }
  0x1b PF: > { %s13_s14 = sadd.s32 1, %s405_s14   ;;  %s467_s12 = smov %s401_s13 }
  0x1c   : > { %p10_p5 = scmp.ge.s32.totalorder %s13_s14, 4   ;;  %s468_s13 = smov %s470_s15 }
  0x1e   :  { %12 = sbr.rel (!%p10_p5) target bundleno = 2 (0x2), region = 62 }

// kernel: _lambda_.36
= control target key start
LH: loop header
LB: loop body
LE: loop exit
PB: predicated region body
PF: predicated region fallthrough
CT: control target
= control target key end

     0   :  { %s683_s15 = smov 0   ;;  %s685_s16 = smov 0   ;;  %s762_s0 = inlined_call_operand.vmem [shape: bf16[2,16,1152], index: 0, kind: input, shape index: {}]   ;;  %s763_s1 = inlined_call_operand.vmem [shape: bf16[9,128], index: 1, kind: input, shape index: {}]   ;;  %s764_s2 = inlined_call_operand.vmem [shape: bf16[2,16,128], index: 2, kind: output, shape index: {0}]   ;;  %s765_s3 = inlined_call_operand.vmem [shape: f32[2,1,8,128], index: 3, kind: output, shape index: {1}]   ;;  %s766_s4 = inlined_call_operand.vmem [shape: f32[2,1,8,128], index: 4, kind: output, shape index: {2}]  }
   0x1   :  { %s687_s17 = smov 0  }
   0x2 LB: > { %s27_s18 = sadd.s32 1, %s652_s16  ;;  %p591_p0 = scmp.ge.s32.totalorder %s656_s17, 1  ;;  %s656_s17 = sphi %s687_s17, %s15_s17   ;;  %s652_s16 = sphi %s685_s16, %s768_s16   ;;  %s648_s15 = sphi %s683_s15, %s767_s15  }
   0x3   : > { %p29_p1 = scmp.ge.s32.totalorder %s27_s18, 2  ;;  %p193_p2 = scmp.lt.s32.totalorder %s656_s17, 3 }
   0x5   : > { %s770_s18 = smov (%p29_p1, %s27_s18), 0  ;;  %p194_p3 = pnand %p591_p0, %p193_p2 }
   0x6   : > { %p243_p4 = scmp.lt.s32.totalorder (!%p194_p3), %s648_s15, 1 }
   0x7   : > { %197 = sbr.rel (%p194_p3) target bundleno = 57 (0x39), region = 28 }
   0xc   : > { %v277_v0 = vld [vmem:[%s763_s1] sm:$0xf]  ;;  %v285_v1 = vlaneseq  ;;  %s772_s15 = smov (!%p243_p4, %s648_s15), 1  ;;  %v709_v2 = vld [vmem:[%s763_s1 + $0x4] sm:$0x1] }
   0xd   : > { %v279_v3 = vunpack.c.l.bf16 %v277_v0  ;;  %s609_s23 = smul.u32 72, %s772_s15  ;;  %v280_v9 = vunpack.c.l.bf16 %v709_v2  ;;  %s601_s27 = sshll.u32 %s772_s15, 3 }
   0xe   : > { %v711_v4 = vshrl.u32 %v285_v1, 7  ;;  %s261_s30 = scalar_lea.vmem %s764_s2, %s601_s27  ;;  %s269_s7 = scalar_lea.vmem %s765_s3, %s601_s27 }
   0xf   : > { %s725_s26 = scalar_lea.vmem %s762_s0, %s609_s23  ;;  %s276_s10 = scalar_lea.vmem %s766_s4, %s601_s27 }
  0x10   : > { %v287_v5 = vsub.s32 0, %v711_v4  ;;  %v297_v6 = vsub.s32 1, %v711_v4  ;;  %v309_v7 = vsub.s32 2, %v711_v4  ;;  %v321_v8 = vsub.s32 3, %v711_v4  ;;  %v281_v17 = vld [vmem:[%s725_s26] sm:$0xff]   ;;  %v303_v19 = vld [vmem:[%s725_s26 + $0x8] sm:$0xff]  }
  0x11   : > { %v333_v10 = vsub.s32 4, %v711_v4  ;;  %v345_v11 = vsub.s32 5, %v711_v4  ;;  %v357_v12 = vsub.s32 6, %v711_v4  ;;  %v369_v16 = vsub.s32 7, %v711_v4  ;;  %v282_v18 = vld [vmem:[%s725_s26 + $0x24] sm:$0xff]   ;;  %v304_v28 = vld [vmem:[%s725_s26 + $0x2c] sm:$0xff]  }
  0x12   : > { %v288_v13 = vrot.slane %v279_v3, %v287_v5  ;;  %v298_v14 = vrot.slane %v279_v3, %v297_v6  ;;  %v310_v15 = vrot.slane %v279_v3, %v309_v7  ;;  %v322_v20 = vrot.slane %v279_v3, %v321_v8  ;;  %v327_v33 = vld [vmem:[%s725_s26 + $0x10] sm:$0xff]   ;;  %v351_v39 = vld [vmem:[%s725_s26 + $0x18] sm:$0xff]   ;;  %v375_v57 = vld [vmem:[%s725_s26 + $0x20] ss:$36 sps:$4 sm:$0xff]  }
  0x13   : > { %v334_v21 = vrot.slane %v279_v3, %v333_v10  ;;  %v346_v22 = vrot.slane %v279_v3, %v345_v11  ;;  %v358_v23 = vrot.slane %v279_v3, %v357_v12  ;;  %v283_v24 = vunpack.c.l.bf16 %v281_v17  ;;  %v328_v34 = vld [vmem:[%s725_s26 + $0x34] sm:$0xff]   ;;  %v352_v40 = vld [vmem:[%s725_s26 + $0x3c] sm:$0xff]  }
  0x14   : > { %v284_v25 = vunpack.c.l.bf16 %v282_v18  ;;  %v293_v26 = vunpack.c.h.bf16 %v281_v17  ;;  %v294_v27 = vunpack.c.h.bf16 %v282_v18  ;;  %v305_v29 = vunpack.c.l.bf16 %v303_v19 }
  0x15   : > { %v306_v30 = vunpack.c.l.bf16 %v304_v28  ;;  %v317_v31 = vunpack.c.h.bf16 %v303_v19  ;;  %v318_v32 = vunpack.c.h.bf16 %v304_v28  ;;  %v289_v35 = vmul.f32 %v288_v13, %v283_v24 }
  0x16   : > { %v290_v36 = vmul.f32 %v288_v13, %v284_v25  ;;  %v299_v37 = vmul.f32 %v298_v14, %v293_v26  ;;  %v300_v38 = vmul.f32 %v298_v14, %v294_v27  ;;  %v311_v41 = vmul.f32 %v310_v15, %v305_v29 }
  0x17   : > { %v312_v42 = vmul.f32 %v310_v15, %v306_v30  ;;  %v323_v43 = vmul.f32 %v322_v20, %v317_v31  ;;  %v324_v44 = vmul.f32 %v322_v20, %v318_v32  ;;  %v329_v47 = vunpack.c.l.bf16 %v327_v33 }
  0x18   : > { %v301_v45 = vadd.f32 %v299_v37, %v289_v35  ;;  %v302_v46 = vadd.f32 %v300_v38, %v290_v36  ;;  %v330_v48 = vunpack.c.l.bf16 %v328_v34  ;;  %v341_v49 = vunpack.c.h.bf16 %v327_v33 }
  0x19   : > { %v342_v50 = vunpack.c.h.bf16 %v328_v34  ;;  %v353_v51 = vunpack.c.l.bf16 %v351_v39  ;;  %v354_v52 = vunpack.c.l.bf16 %v352_v40  ;;  %v335_v55 = vmul.f32 %v334_v21, %v329_v47 }
  0x1a   : > { %v313_v53 = vadd.f32 %v311_v41, %v301_v45  ;;  %v314_v54 = vadd.f32 %v312_v42, %v302_v46  ;;  %v336_v56 = vmul.f32 %v334_v21, %v330_v48  ;;  %v347_v58 = vmul.f32 %v346_v22, %v341_v49 }
  0x1b   : > { %v348_v59 = vmul.f32 %v346_v22, %v342_v50  ;;  %v370_v60 = vrot.slane %v279_v3, %v369_v16  ;;  %v365_v63 = vunpack.c.h.bf16 %v351_v39  ;;  %v366_v0 = vunpack.c.h.bf16 %v352_v40 }
  0x1c   : > { %v325_v61 = vadd.f32 %v323_v43, %v313_v53  ;;  %v326_v62 = vadd.f32 %v324_v44, %v314_v54  ;;  %v359_v1 = vmul.f32 %v358_v23, %v353_v51  ;;  %v360_v6 = vmul.f32 %v358_v23, %v354_v52 }
  0x1d   : > { %v377_v7 = vunpack.c.l.bf16 %v375_v57  ;;  %v378_v11 = vunpack.c.h.bf16 %v375_v57  ;;  %v382_v12 = vrot.slane %v280_v9, %v287_v5  ;;  %v371_v15 = vmul.f32 %v370_v60, %v365_v63 }
  0x1e   : > { %v337_v8 = vadd.f32 %v335_v55, %v325_v61  ;;  %v338_v10 = vadd.f32 %v336_v56, %v326_v62  ;;  %v372_v3 = vmul.f32 %v370_v60, %v366_v0 }
  0x1f   : > { %v383_v18 = vmul.f32 %v382_v12, %v377_v7  ;;  %v384_v19 = vmul.f32 %v382_v12, %v378_v11 }
  0x20   : > { %v349_v13 = vadd.f32 %v347_v58, %v337_v8  ;;  %v350_v14 = vadd.f32 %v348_v59, %v338_v10 }
  0x22   : > { %v361_v16 = vadd.f32 %v359_v1, %v349_v13  ;;  %v362_v17 = vadd.f32 %v360_v6, %v350_v14 }
  0x24   : > { %v373_v20 = vadd.f32 %v371_v15, %v361_v16  ;;  %v374_v21 = vadd.f32 %v372_v3, %v362_v17 }
  0x26   : > { %v385_v22 = vadd.f32 %v383_v18, %v373_v20  ;;  %v386_v23 = vadd.f32 %v384_v19, %v374_v21 }
  0x28   : > { %v607_v4 = vpack.c.bf16 %v386_v23, %v385_v22  ;;  %v397_v2 = vadd.f32 %v386_v23, %v385_v22  ;;  %v405_v5 = vmul.f32 %v385_v22, %v385_v22  ;;  %v406_v9 = vmul.f32 %v386_v23, %v386_v23 }
  0x2a   : > { %608 = vst [vmem:[%s261_s30] sm:$0xff] %v607_v4   ;;  %v398_v24 = vrot.slane %v397_v2, 4  ;;  %v407_v25 = vadd.f32 %v406_v9, %v405_v5 }
  0x2c   : > { %v399_v26 = vadd.f32 %v398_v24, %v397_v2  ;;  %v408_v27 = vrot.slane %v407_v25, 4 }
  0x2e   : > { %v400_v28 = vrot.slane %v399_v26, 2  ;;  %v409_v29 = vadd.f32 %v408_v27, %v407_v25 }
  0x30   : > { %v401_v30 = vadd.f32 %v400_v28, %v399_v26  ;;  %v410_v31 = vrot.slane %v409_v29, 2 }
  0x32   : > { %v402_v32 = vrot.slane %v401_v30, 1  ;;  %v411_v33 = vadd.f32 %v410_v31, %v409_v29 }
  0x34   : > { %v403_v34 = vadd.f32 %v402_v32, %v401_v30  ;;  %v412_v35 = vrot.slane %v411_v33, 1 }
  0x36   : > { %404 = vst [vmem:[%s269_s7] sm:$0xff] %v403_v34  ;;  %v413_v36 = vadd.f32 %v412_v35, %v411_v33 }
  0x38   : > { %414 = vst [vmem:[%s276_s10] sm:$0xff] %v413_v36 }
  0x39 PF: > { %s15_s17 = sadd.s32 1, %s656_s17   ;;  %s767_s15 = smov %s652_s16 }
  0x3a   : > { %p12_p5 = scmp.ge.s32.totalorder %s15_s17, 4   ;;  %s768_s16 = smov %s770_s18 }
  0x3c   :  { %14 = sbr.rel (!%p12_p5) target bundleno = 2 (0x2), region = 82 }

// kernel: _lambda_.39
= control target key start
LH: loop header
LB: loop body
LE: loop exit
PB: predicated region body
PF: predicated region fallthrough
CT: control target
= control target key end

     0   :  { %s425_s12 = smov 0   ;;  %s427_s13 = smov 0   ;;  %s457_s0 = inlined_call_operand.vmem [shape: bf16[2,16,128], index: 0, kind: input, shape index: {}]   ;;  %s458_s1 = inlined_call_operand.vmem [shape: f32[1,128], index: 1, kind: input, shape index: {}]   ;;  %s459_s2 = inlined_call_operand.vmem [shape: f32[1,128], index: 2, kind: input, shape index: {}]   ;;  %s460_s3 = inlined_call_operand.vmem [shape: bf16[2,16,128], index: 3, kind: output, shape index: {}]  }
   0x1   :  { %s429_s14 = smov 0  }
   0x2 LB: > { %s25_s15 = sadd.s32 1, %s399_s13  ;;  %p333_p0 = scmp.ge.s32.totalorder %s403_s14, 1  ;;  %s403_s14 = sphi %s429_s14, %s13_s14   ;;  %s399_s13 = sphi %s427_s13, %s462_s13   ;;  %s395_s12 = sphi %s425_s12, %s461_s12  }
   0x3   : > { %p27_p1 = scmp.ge.s32.totalorder %s25_s15, 2  ;;  %p158_p2 = scmp.lt.s32.totalorder %s403_s14, 3 }
   0x5   : > { %s464_s15 = smov (%p27_p1, %s25_s15), 0  ;;  %p159_p3 = pnand %p333_p0, %p158_p2 }
   0x6   : > { %p191_p4 = scmp.lt.s32.totalorder (!%p159_p3), %s395_s12, 1 }
   0x7   : > { %162 = sbr.rel (%p159_p3) target bundleno = 25 (0x19), region = 32 }
   0xc   : > { %s466_s12 = smov (!%p191_p4, %s395_s12), 1  ;;  %v338_v1 = vld [vmem:[%s458_s1] ss:$0 sm:$0xff] }
   0xd   : > { %s344_s16 = sshll.u32 %s466_s12, 3  ;;  %v339_v4 = vld [vmem:[%s459_s2] ss:$0 sm:$0xff] }
   0xe   : > { %s198_s19 = scalar_lea.vmem %s457_s0, %s344_s16  ;;  %s208_s26 = scalar_lea.vmem %s460_s3, %s344_s16 }
   0xf   : > { %v349_v0 = vld [vmem:[%s198_s19] sm:$0xff]  }
  0x10   : > { %v350_v2 = vunpack.c.l.bf16 %v349_v0  ;;  %v351_v3 = vunpack.c.h.bf16 %v349_v0 }
  0x12   : > { %v221_v5 = vmul.f32 %v350_v2, %v338_v1  ;;  %v222_v6 = vmul.f32 %v351_v3, %v338_v1 }
  0x14   : > { %v230_v7 = vadd.f32 %v339_v4, %v221_v5  ;;  %v231_v8 = vadd.f32 %v339_v4, %v222_v6 }
  0x16   : > { %v355_v9 = vpack.c.bf16 %v231_v8, %v230_v7 }
  0x18   : > { %356 = vst [vmem:[%s208_s26] sm:$0xff] %v355_v9  }
  0x19 PF: > { %s13_s14 = sadd.s32 1, %s403_s14   ;;  %s461_s12 = smov %s399_s13 }
  0x1a   : > { %p10_p5 = scmp.ge.s32.totalorder %s13_s14, 4   ;;  %s462_s13 = smov %s464_s15 }
  0x1c   :  { %12 = sbr.rel (!%p10_p5) target bundleno = 2 (0x2), region = 62 }

// kernel: _lambda_.38
= control target key start
LH: loop header
LB: loop body
LE: loop exit
PB: predicated region body
PF: predicated region fallthrough
CT: control target
= control target key end

     0   :  { %s733_s15 = smov 0   ;;  %s735_s16 = smov 0   ;;  %s802_s0 = inlined_call_operand.vmem [shape: bf16[2,16,128], index: 0, kind: input, shape index: {}]   ;;  %s803_s1 = inlined_call_operand.vmem [shape: bf16[128,128], index: 1, kind: input, shape index: {}]   ;;  %s804_s2 = inlined_call_operand.vmem [shape: bf16[2,16,128], index: 2, kind: output, shape index: {0}]   ;;  %s805_s3 = inlined_call_operand.vmem [shape: f32[2,1,8,128], index: 3, kind: output, shape index: {1}]   ;;  %s806_s4 = inlined_call_operand.vmem [shape: f32[2,1,8,128], index: 4, kind: output, shape index: {2}]  }
   0x1   :  { %s737_s17 = smov 0  }
   0x2 LB: > { %s27_s18 = sadd.s32 1, %s700_s16  ;;  %p589_p0 = scmp.ge.s32.totalorder %s704_s17, 1  ;;  %s704_s17 = sphi %s737_s17, %s15_s17   ;;  %s700_s16 = sphi %s735_s16, %s808_s16   ;;  %s696_s15 = sphi %s733_s15, %s807_s15  }
   0x3   : > { %p29_p1 = scmp.ge.s32.totalorder %s27_s18, 2  ;;  %p192_p2 = scmp.lt.s32.totalorder %s704_s17, 3 }
   0x5   : > { %s810_s18 = smov (%p29_p1, %s27_s18), 0  ;;  %p193_p3 = pnand %p589_p0, %p192_p2 }
   0x6   : > { %p241_p4 = scmp.lt.s32.totalorder (!%p193_p3), %s696_s15, 1 }
   0x7   : > { %196 = sbr.rel (%p193_p3) target bundleno = 259 (0x103), region = 28 }
   0xc   : > { %v673_v0 = vld [vmem:[%s803_s1 + $0x38] sm:$0xff]   ;;  %v706_v1 = vmov 0.0   ;;  %v674_v2 = vld [vmem:[%s803_s1 + $0x30] sm:$0xff]   ;;  %vm707_vm0 = vmmov 0   ;;  %s812_s15 = smov (!%p241_p4, %s696_s15), 1  ;;  %v675_v3 = vld [vmem:[%s803_s1 + $0x28] sm:$0xff]  }
   0xd   : > { %627 = vmatprep.subr.bf16.mxu0 %v706_v1  ;;  %643 = vmatprep.mubr.msk.bf16.mxu0 %vm707_vm0, %v706_v1  ;;  %s760_s25 = sshll.u32 %s812_s15, 3  ;;  %v676_v4 = vld [vmem:[%s803_s1 + $0x20] sm:$0xff]   ;;  %v677_v5 = vld [vmem:[%s803_s1 + $0x18] sm:$0xff]   ;;  %v678_v6 = vld [vmem:[%s803_s1 + $0x10] sm:$0xff]  }
   0xe   : > { %628 = vmatpush3.bf16.msra.mxu0 %v673_v0  ;;  %s248_s28 = scalar_lea.vmem %s802_s0, %s760_s25  ;;  %v679_v7 = vld [vmem:[%s803_s1 + $0x8] sm:$0xff]   ;;  %v680_v8 = vld [vmem:[%s803_s1] sm:$0xff]   ;;  %s258_s15 = scalar_lea.vmem %s804_s2, %s760_s25 }
   0xf   : > { %629 = vmatprep.subr.bf16.mxu0 %v706_v1  ;;  %v681_v9 = vld [vmem:[%s248_s28] sm:$0xff]   ;;  %s266_s21 = scalar_lea.vmem %s805_s3, %s760_s25  ;;  %s273_s24 = scalar_lea.vmem %s806_s4, %s760_s25 }
  0x12   : > { %630 = vmatpush3.bf16.msra.mxu0 %v674_v2 }
  0x13   : > { %631 = vmatprep.subr.bf16.mxu0 %v706_v1 }
  0x16   : > { %632 = vmatpush3.bf16.msra.mxu0 %v675_v3 }
  0x17   : > { %633 = vmatprep.subr.bf16.mxu0 %v706_v1 }
  0x1a   : > { %634 = vmatpush3.bf16.msra.mxu0 %v676_v4 }
  0x1b   : > { %635 = vmatprep.subr.bf16.mxu0 %v706_v1 }
  0x1e   : > { %636 = vmatpush3.bf16.msra.mxu0 %v677_v5 }
  0x1f   : > { %637 = vmatprep.subr.bf16.mxu0 %v706_v1 }
  0x22   : > { %638 = vmatpush3.bf16.msra.mxu0 %v678_v6 }
  0x23   : > { %639 = vmatprep.subr.bf16.mxu0 %v706_v1 }
  0x26   : > { %640 = vmatpush3.bf16.msra.mxu0 %v679_v7 }
  0x27   : > { %641 = vmatprep.subr.bf16.mxu0 %v706_v1 }
  0x2a   : > { %642 = vmatpush3.bf16.msra.mxu0 %v680_v8 }
  0x2d   : > { %644 = vmatmul.mubr.bf16.vlgmr.msra.gmra.mxu0 %v681_v9 }
  0xed   : > { %v381_v10 = vpop.f32.mrf.mxu0 }
  0xee   : > { %v406_v13 = vmul.f32 %v381_v10, %v381_v10 }
  0xef   : > { %v645_v11 = vpop.f32.mrf.mxu0 }
  0xf1   : > { %v384_v12 = vpop.f32.mrf.mxu0 }
  0xf2   : > { %v616_v14 = vpack.c.bf16 %v384_v12, %v381_v10  ;;  %v398_v15 = vadd.f32 %v384_v12, %v381_v10  ;;  %v407_v16 = vmul.f32 %v384_v12, %v384_v12 }
  0xf3   : > { %v646_v17 = vpop.f32.mrf.mxu0 }
  0xf4   : > { %617 = vst [vmem:[%s258_s15] sm:$0xff] %v616_v14   ;;  %v399_v18 = vrot.slane %v398_v15, 4  ;;  %v408_v19 = vadd.f32 %v407_v16, %v406_v13 }
  0xf6   : > { %v400_v20 = vadd.f32 %v399_v18, %v398_v15  ;;  %v409_v21 = vrot.slane %v408_v19, 4 }
  0xf8   : > { %v401_v22 = vrot.slane %v400_v20, 2  ;;  %v410_v23 = vadd.f32 %v409_v21, %v408_v19 }
  0xfa   : > { %v402_v24 = vadd.f32 %v401_v22, %v400_v20  ;;  %v411_v25 = vrot.slane %v410_v23, 2 }
  0xfc   : > { %v403_v26 = vrot.slane %v402_v24, 1  ;;  %v412_v27 = vadd.f32 %v411_v25, %v410_v23 }
  0xfe   : > { %v404_v28 = vadd.f32 %v403_v26, %v402_v24  ;;  %v413_v29 = vrot.slane %v412_v27, 1 }
 0x100   : > { %405 = vst [vmem:[%s266_s21] sm:$0xff] %v404_v28  ;;  %v414_v30 = vadd.f32 %v413_v29, %v412_v27 }
 0x102   : > { %415 = vst [vmem:[%s273_s24] sm:$0xff] %v414_v30 }
 0x103 PF: > { %s15_s17 = sadd.s32 1, %s704_s17   ;;  %s807_s15 = smov %s700_s16 }
 0x104   : > { %p12_p5 = scmp.ge.s32.totalorder %s15_s17, 4   ;;  %s808_s16 = smov %s810_s18 }
 0x106   :  { %14 = sbr.rel (!%p12_p5) target bundleno = 2 (0x2), region = 82 }

// kernel: _lambda_.41
= control target key start
LH: loop header
LB: loop body
LE: loop exit
PB: predicated region body
PF: predicated region fallthrough
CT: control target
= control target key end

     0   :  { %s435_s12 = smov 0   ;;  %s437_s13 = smov 0   ;;  %s474_s0 = inlined_call_operand.vmem [shape: bf16[2,16,128], index: 0, kind: input, shape index: {}]   ;;  %s475_s1 = inlined_call_operand.vmem [shape: f32[1,128], index: 1, kind: input, shape index: {}]   ;;  %s476_s2 = inlined_call_operand.vmem [shape: f32[1,128], index: 2, kind: input, shape index: {}]   ;;  %s477_s3 = inlined_call_operand.vmem [shape: bf16[2,16,128], index: 3, kind: output, shape index: {}]  }
   0x1   :  { %s439_s14 = smov 0  }
   0x2 LB: > { %s25_s15 = sadd.s32 1, %s409_s13  ;;  %p343_p0 = scmp.ge.s32.totalorder %s413_s14, 1  ;;  %s413_s14 = sphi %s439_s14, %s13_s14   ;;  %s409_s13 = sphi %s437_s13, %s479_s13   ;;  %s405_s12 = sphi %s435_s12, %s478_s12  }
   0x3   : > { %p27_p1 = scmp.ge.s32.totalorder %s25_s15, 2  ;;  %p158_p2 = scmp.lt.s32.totalorder %s413_s14, 3 }
   0x5   : > { %s481_s15 = smov (%p27_p1, %s25_s15), 0  ;;  %p159_p3 = pnand %p343_p0, %p158_p2 }
   0x6   : > { %p191_p4 = scmp.lt.s32.totalorder (!%p159_p3), %s405_s12, 1 }
   0x7   : > { %162 = sbr.rel (%p159_p3) target bundleno = 35 (0x23), region = 32 }
   0xc   : > { %s483_s12 = smov (!%p191_p4, %s405_s12), 1  ;;  %v348_v1 = vld [vmem:[%s475_s1] ss:$0 sm:$0xff] }
   0xd   : > { %s354_s16 = sshll.u32 %s483_s12, 3  ;;  %v349_v4 = vld [vmem:[%s476_s2] ss:$0 sm:$0xff] }
   0xe   : > { %s198_s19 = scalar_lea.vmem %s474_s0, %s354_s16  ;;  %s208_s26 = scalar_lea.vmem %s477_s3, %s354_s16 }
   0xf   : > { %v359_v0 = vld [vmem:[%s198_s19] sm:$0xff]  }
  0x10   : > { %v360_v2 = vunpack.c.l.bf16 %v359_v0  ;;  %v361_v3 = vunpack.c.h.bf16 %v359_v0 }
  0x12   : > { %v221_v5 = vmul.f32 %v360_v2, %v348_v1  ;;  %v222_v6 = vmul.f32 %v361_v3, %v348_v1 }
  0x14   : > { %v230_v7 = vadd.f32 %v349_v4, %v221_v5  ;;  %v231_v8 = vadd.f32 %v349_v4, %v222_v6 }
  0x16   : > { %v232_v9 = vadd.f32 3.0, %v230_v7  ;;  %v233_v10 = vadd.f32 3.0, %v231_v8 }
  0x18   : > { %v234_v11 = vmax.f32 %v232_v9, 0.0  ;;  %v235_v12 = vmax.f32 %v233_v10, 0.0 }
  0x1a   : > { %v236_v13 = vmin.f32 %v234_v11, 6.0  ;;  %v237_v14 = vmin.f32 %v235_v12, 6.0 }
  0x1c   : > { %v238_v15 = vmul.f32 %v236_v13, %v230_v7  ;;  %v239_v16 = vmul.f32 %v237_v14, %v231_v8 }
  0x1e   : > { %v240_v17 = vmul.f32 0.16666667, %v238_v15  ;;  %v241_v18 = vmul.f32 0.16666667, %v239_v16 }
  0x20   : > { %v365_v19 = vpack.c.bf16 %v241_v18, %v240_v17 }
  0x22   : > { %366 = vst [vmem:[%s208_s26] sm:$0xff] %v365_v19  }
  0x23 PF: > { %s13_s14 = sadd.s32 1, %s413_s14   ;;  %s478_s12 = smov %s409_s13 }
  0x24   : > { %p10_p5 = scmp.ge.s32.totalorder %s13_s14, 4   ;;  %s479_s13 = smov %s481_s15 }
  0x26   :  { %12 = sbr.rel (!%p10_p5) target bundleno = 2 (0x2), region = 62 }

// kernel: _lambda_.43
= control target key start
LH: loop header
LB: loop body
LE: loop exit
PB: predicated region body
PF: predicated region fallthrough
CT: control target
= control target key end

     0   :  { %s536_s15 = smov 0   ;;  %s538_s16 = smov 0   ;;  %s583_s0 = inlined_call_operand.vmem [shape: bf16[2,16,128], index: 0, kind: input, shape index: {}]   ;;  %s584_s1 = inlined_call_operand.vmem [shape: f32[1,128], index: 1, kind: input, shape index: {}]   ;;  %s585_s2 = inlined_call_operand.vmem [shape: f32[1,128], index: 2, kind: input, shape index: {}]   ;;  %s586_s3 = inlined_call_operand.vmem [shape: bf16[2,16,128], index: 3, kind: output, shape index: {0}]   ;;  %s587_s4 = inlined_call_operand.vmem [shape: f32[2,1,8,128], index: 4, kind: output, shape index: {1}]  }
   0x1   :  { %s540_s17 = smov 0  }
   0x2 LB: > { %s27_s18 = sadd.s32 1, %s505_s16  ;;  %p438_p0 = scmp.ge.s32.totalorder %s509_s17, 1  ;;  %s509_s17 = sphi %s540_s17, %s15_s17   ;;  %s505_s16 = sphi %s538_s16, %s589_s16   ;;  %s501_s15 = sphi %s536_s15, %s588_s15  }
   0x3   : > { %p29_p1 = scmp.ge.s32.totalorder %s27_s18, 2  ;;  %p188_p2 = scmp.lt.s32.totalorder %s509_s17, 3 }
   0x5   : > { %s591_s18 = smov (%p29_p1, %s27_s18), 0  ;;  %p189_p3 = pnand %p438_p0, %p188_p2 }
   0x6   : > { %p230_p4 = scmp.lt.s32.totalorder (!%p189_p3), %s501_s15, 1 }
   0x7   : > { %192 = sbr.rel (%p189_p3) target bundleno = 47 (0x2f), region = 32 }
   0xc   : > { %s593_s15 = smov (!%p230_p4, %s501_s15), 1  ;;  %v444_v1 = vld [vmem:[%s584_s1] ss:$0 sm:$0xff] }
   0xd   : > { %s554_s19 = sshll.u32 %s593_s15, 3  ;;  %v445_v4 = vld [vmem:[%s585_s2] ss:$0 sm:$0xff] }
   0xe   : > { %s237_s22 = scalar_lea.vmem %s583_s0, %s554_s19  ;;  %s247_s29 = scalar_lea.vmem %s586_s3, %s554_s19 }
   0xf   : > { %v455_v0 = vld [vmem:[%s237_s22] sm:$0xff]   ;;  %s255_s6 = scalar_lea.vmem %s587_s4, %s554_s19 }
  0x10   : > { %v456_v2 = vunpack.c.l.bf16 %v455_v0  ;;  %v457_v3 = vunpack.c.h.bf16 %v455_v0 }
  0x12   : > { %v267_v5 = vmul.f32 %v456_v2, %v444_v1  ;;  %v268_v6 = vmul.f32 %v457_v3, %v444_v1 }
  0x14   : > { %v276_v7 = vadd.f32 %v445_v4, %v267_v5  ;;  %v277_v8 = vadd.f32 %v445_v4, %v268_v6 }
  0x16   : > { %v278_v9 = vadd.f32 3.0, %v276_v7  ;;  %v279_v10 = vadd.f32 3.0, %v277_v8 }
  0x18   : > { %v280_v11 = vmax.f32 %v278_v9, 0.0  ;;  %v281_v12 = vmax.f32 %v279_v10, 0.0 }
  0x1a   : > { %v282_v13 = vmin.f32 %v280_v11, 6.0  ;;  %v283_v14 = vmin.f32 %v281_v12, 6.0 }
  0x1c   : > { %v284_v15 = vmul.f32 %v282_v13, %v276_v7  ;;  %v285_v16 = vmul.f32 %v283_v14, %v277_v8 }
  0x1e   : > { %v286_v17 = vmul.f32 0.16666667, %v284_v15  ;;  %v287_v18 = vmul.f32 0.16666667, %v285_v16 }
  0x20   : > { %v461_v19 = vpack.c.bf16 %v287_v18, %v286_v17  ;;  %v298_v20 = vadd.f32 %v287_v18, %v286_v17 }
  0x22   : > { %462 = vst [vmem:[%s247_s29] sm:$0xff] %v461_v19   ;;  %v299_v21 = vrot.slane %v298_v20, 4 }
  0x24   : > { %v300_v22 = vadd.f32 %v299_v21, %v298_v20 }
  0x26   : > { %v301_v23 = vrot.slane %v300_v22, 2 }
  0x28   : > { %v302_v24 = vadd.f32 %v301_v23, %v300_v22 }
  0x2a   : > { %v303_v25 = vrot.slane %v302_v24, 1 }
  0x2c   : > { %v304_v26 = vadd.f32 %v303_v25, %v302_v24 }
  0x2e   : > { %305 = vst [vmem:[%s255_s6] sm:$0xff] %v304_v26 }
  0x2f PF: > { %s15_s17 = sadd.s32 1, %s509_s17   ;;  %s588_s15 = smov %s505_s16 }
  0x30   : > { %p12_p5 = scmp.ge.s32.totalorder %s15_s17, 4   ;;  %s589_s16 = smov %s591_s18 }
  0x32   :  { %14 = sbr.rel (!%p12_p5) target bundleno = 2 (0x2), region = 74 }

// kernel: _lambda_.45
= control target key start
LH: loop header
LB: loop body
LE: loop exit
PB: predicated region body
PF: predicated region fallthrough
CT: control target
= control target key end

     0   :  { %s801_s18 = smov 0   ;;  %s803_s19 = smov 0   ;;  %s874_s0 = inlined_call_operand.vmem [shape: bf16[2,16,128], index: 0, kind: input, shape index: {}]   ;;  %s875_s1 = inlined_call_operand.vmem [shape: bf16[128,128], index: 1, kind: input, shape index: {}]   ;;  %s876_s2 = inlined_call_operand.vmem [shape: f32[2,8,128], index: 2, kind: input, shape index: {}]   ;;  %s877_s3 = inlined_call_operand.vmem [shape: bf16[2,16,128], index: 3, kind: output, shape index: {0}]   ;;  %s878_s4 = inlined_call_operand.vmem [shape: f32[2,1,8,128], index: 4, kind: output, shape index: {1}]   ;;  %s879_s5 = inlined_call_operand.vmem [shape: f32[2,1,8,128], index: 5, kind: output, shape index: {2}]  }
   0x1   :  { %s805_s20 = smov 0  }
   0x2 LB: > { %s28_s21 = sadd.s32 1, %s763_s19  ;;  %p649_p0 = scmp.ge.s32.totalorder %s767_s20, 1  ;;  %s767_s20 = sphi %s805_s20, %s16_s20   ;;  %s763_s19 = sphi %s803_s19, %s881_s19   ;;  %s759_s18 = sphi %s801_s18, %s880_s18  }
   0x3   : > { %p30_p1 = scmp.ge.s32.totalorder %s28_s21, 2  ;;  %p226_p2 = scmp.lt.s32.totalorder %s767_s20, 3 }
   0x5   : > { %s883_s21 = smov (%p30_p1, %s28_s21), 0  ;;  %p227_p3 = pnand %p649_p0, %p226_p2 }
   0x6   : > { %p281_p4 = scmp.lt.s32.totalorder (!%p227_p3), %s759_s18, 1 }
   0x7   : > { %230 = sbr.rel (%p227_p3) target bundleno = 259 (0x103), region = 32 }
   0xc   : > { %v737_v0 = vld [vmem:[%s875_s1 + $0x38] sm:$0xff]   ;;  %v769_v1 = vmov 0.0   ;;  %v738_v2 = vld [vmem:[%s875_s1 + $0x30] sm:$0xff]   ;;  %vm770_vm0 = vmmov 0   ;;  %v739_v3 = vld [vmem:[%s875_s1 + $0x28] sm:$0xff]   ;;  %s885_s18 = smov (!%p281_p4, %s759_s18), 1  ;;  %v324_v4 = vlaneseq }
   0xd   : > { %691 = vmatprep.subr.bf16.mxu0 %v769_v1  ;;  %707 = vmatprep.mubr.msk.bf16.mxu0 %vm770_vm0, %v769_v1  ;;  %v740_v5 = vld [vmem:[%s875_s1 + $0x20] sm:$0xff]   ;;  %s831_s30 = sshll.u32 %s885_s18, 3  ;;  %v741_v7 = vld [vmem:[%s875_s1 + $0x18] sm:$0xff]   ;;  %v742_v9 = vld [vmem:[%s875_s1 + $0x10] sm:$0xff]  }
   0xe   : > { %692 = vmatpush3.bf16.msra.mxu0 %v737_v0  ;;  %v325_v6 = vshrl.u32 %v324_v4, 7  ;;  %s288_s10 = scalar_lea.vmem %s874_s0, %s831_s30  ;;  %s293_s13 = scalar_lea.vmem %s876_s2, %s831_s30  ;;  %v743_v15 = vld [vmem:[%s875_s1 + $0x8] sm:$0xff]   ;;  %v744_v18 = vld [vmem:[%s875_s1] sm:$0xff]  }
   0xf   : > { %693 = vmatprep.subr.bf16.mxu0 %v769_v1  ;;  %v674_v10 = vld [vmem:[%s288_s10] sm:$0xff]   ;;  %s302_s25 = scalar_lea.vmem %s877_s3, %s831_s30  ;;  %s310_s28 = scalar_lea.vmem %s878_s4, %s831_s30 }
  0x10   : > { %v326_v8 = vsub.s32 0, %v325_v6  ;;  %v321_v11 = vld [vmem:[%s293_s13] sm:$0xff]  ;;  %v675_v12 = vunpack.c.l.bf16 %v674_v10  ;;  %v676_v13 = vunpack.c.h.bf16 %v674_v10  ;;  %s317_s7 = scalar_lea.vmem %s879_s5, %s831_s30 }
  0x12   : > { %694 = vmatpush3.bf16.msra.mxu0 %v738_v2  ;;  %v327_v14 = vrot.slane %v321_v11, %v326_v8 }
  0x13   : > { %695 = vmatprep.subr.bf16.mxu0 %v769_v1 }
  0x14   : > { %v328_v16 = vmul.f32 %v675_v12, %v327_v14  ;;  %v329_v17 = vmul.f32 %v676_v13, %v327_v14 }
  0x16   : > { %696 = vmatpush3.bf16.msra.mxu0 %v739_v3  ;;  %v330_v19 = vpack.c.bf16 %v329_v17, %v328_v16 }
  0x17   : > { %697 = vmatprep.subr.bf16.mxu0 %v769_v1 }
  0x1a   : > { %698 = vmatpush3.bf16.msra.mxu0 %v740_v5 }
  0x1b   : > { %699 = vmatprep.subr.bf16.mxu0 %v769_v1 }
  0x1e   : > { %700 = vmatpush3.bf16.msra.mxu0 %v741_v7 }
  0x1f   : > { %701 = vmatprep.subr.bf16.mxu0 %v769_v1 }
  0x22   : > { %702 = vmatpush3.bf16.msra.mxu0 %v742_v9 }
  0x23   : > { %703 = vmatprep.subr.bf16.mxu0 %v769_v1 }
  0x26   : > { %704 = vmatpush3.bf16.msra.mxu0 %v743_v15 }
  0x27   : > { %705 = vmatprep.subr.bf16.mxu0 %v769_v1 }
  0x2a   : > { %706 = vmatpush3.bf16.msra.mxu0 %v744_v18 }
  0x2d   : > { %708 = vmatmul.mubr.bf16.vlgmr.msra.gmra.mxu0 %v330_v19 }
  0xed   : > { %v429_v20 = vpop.f32.mrf.mxu0 }
  0xee   : > { %v454_v23 = vmul.f32 %v429_v20, %v429_v20 }
  0xef   : > { %v709_v21 = vpop.f32.mrf.mxu0 }
  0xf1   : > { %v432_v22 = vpop.f32.mrf.mxu0 }
  0xf2   : > { %v680_v24 = vpack.c.bf16 %v432_v22, %v429_v20  ;;  %v446_v25 = vadd.f32 %v432_v22, %v429_v20  ;;  %v455_v26 = vmul.f32 %v432_v22, %v432_v22 }
  0xf3   : > { %v710_v27 = vpop.f32.mrf.mxu0 }
  0xf4   : > { %681 = vst [vmem:[%s302_s25] sm:$0xff] %v680_v24   ;;  %v447_v28 = vrot.slane %v446_v25, 4  ;;  %v456_v29 = vadd.f32 %v455_v26, %v454_v23 }
  0xf6   : > { %v448_v30 = vadd.f32 %v447_v28, %v446_v25  ;;  %v457_v31 = vrot.slane %v456_v29, 4 }
  0xf8   : > { %v449_v32 = vrot.slane %v448_v30, 2  ;;  %v458_v33 = vadd.f32 %v457_v31, %v456_v29 }
  0xfa   : > { %v450_v34 = vadd.f32 %v449_v32, %v448_v30  ;;  %v459_v35 = vrot.slane %v458_v33, 2 }
  0xfc   : > { %v451_v36 = vrot.slane %v450_v34, 1  ;;  %v460_v37 = vadd.f32 %v459_v35, %v458_v33 }
  0xfe   : > { %v452_v38 = vadd.f32 %v451_v36, %v450_v34  ;;  %v461_v39 = vrot.slane %v460_v37, 1 }
 0x100   : > { %453 = vst [vmem:[%s310_s28] sm:$0xff] %v452_v38  ;;  %v462_v40 = vadd.f32 %v461_v39, %v460_v37 }
 0x102   : > { %463 = vst [vmem:[%s317_s7] sm:$0xff] %v462_v40 }
 0x103 PF: > { %s16_s20 = sadd.s32 1, %s767_s20   ;;  %s880_s18 = smov %s763_s19 }
 0x104   : > { %p13_p5 = scmp.ge.s32.totalorder %s16_s20, 4   ;;  %s881_s19 = smov %s883_s21 }
 0x106   :  { %15 = sbr.rel (!%p13_p5) target bundleno = 2 (0x2), region = 89 }

// kernel: _lambda_.46
= control target key start
LH: loop header
LB: loop body
LE: loop exit
PB: predicated region body
PF: predicated region fallthrough
CT: control target
= control target key end

     0   :  { %s524_s15 = smov 0   ;;  %s526_s16 = smov 0   ;;  %s563_s0 = inlined_call_operand.vmem [shape: bf16[2,16,128], index: 0, kind: input, shape index: {}]   ;;  %s564_s1 = inlined_call_operand.vmem [shape: f32[1,128], index: 1, kind: input, shape index: {}]   ;;  %s565_s2 = inlined_call_operand.vmem [shape: f32[1,128], index: 2, kind: input, shape index: {}]   ;;  %s566_s3 = inlined_call_operand.vmem [shape: bf16[2,16,128], index: 3, kind: input, shape index: {}]   ;;  %s567_s4 = inlined_call_operand.vmem [shape: bf16[2,16,128], index: 4, kind: output, shape index: {}]  }
   0x1   :  { %s528_s17 = smov 0  }
   0x2 LB: > { %s26_s18 = sadd.s32 1, %s493_s16  ;;  %p420_p0 = scmp.ge.s32.totalorder %s497_s17, 1  ;;  %s497_s17 = sphi %s528_s17, %s14_s17   ;;  %s493_s16 = sphi %s526_s16, %s569_s16   ;;  %s489_s15 = sphi %s524_s15, %s568_s15  }
   0x3   : > { %p28_p1 = scmp.ge.s32.totalorder %s26_s18, 2  ;;  %p200_p2 = scmp.lt.s32.totalorder %s497_s17, 3 }
   0x5   : > { %s571_s18 = smov (%p28_p1, %s26_s18), 0  ;;  %p201_p3 = pnand %p420_p0, %p200_p2 }
   0x6   : > { %p244_p4 = scmp.lt.s32.totalorder (!%p201_p3), %s489_s15, 1 }
   0x7   : > { %204 = sbr.rel (%p201_p3) target bundleno = 27 (0x1b), region = 36 }
   0xc   : > { %s573_s15 = smov (!%p244_p4, %s489_s15), 1  ;;  %v427_v1 = vld [vmem:[%s564_s1] ss:$0 sm:$0xff] }
   0xd   : > { %s433_s19 = sshll.u32 %s573_s15, 3  ;;  %v428_v5 = vld [vmem:[%s565_s2] ss:$0 sm:$0xff] }
   0xe   : > { %s251_s22 = scalar_lea.vmem %s563_s0, %s433_s19  ;;  %s261_s25 = scalar_lea.vmem %s566_s3, %s433_s19 }
   0xf   : > { %v439_v0 = vld [vmem:[%s251_s22] sm:$0xff]   ;;  %s271_s6 = scalar_lea.vmem %s567_s4, %s433_s19 }
  0x10   : > { %v443_v2 = vld [vmem:[%s261_s25] sm:$0xff]   ;;  %v440_v3 = vunpack.c.l.bf16 %v439_v0  ;;  %v441_v4 = vunpack.c.h.bf16 %v439_v0 }
  0x11   : > { %v444_v8 = vunpack.c.l.bf16 %v443_v2  ;;  %v445_v9 = vunpack.c.h.bf16 %v443_v2 }
  0x12   : > { %v284_v6 = vmul.f32 %v440_v3, %v427_v1  ;;  %v285_v7 = vmul.f32 %v441_v4, %v427_v1 }
  0x14   : > { %v293_v10 = vadd.f32 %v428_v5, %v284_v6  ;;  %v294_v11 = vadd.f32 %v428_v5, %v285_v7 }
  0x16   : > { %v299_v12 = vadd.f32 %v444_v8, %v293_v10  ;;  %v300_v13 = vadd.f32 %v445_v9, %v294_v11 }
  0x18   : > { %v449_v14 = vpack.c.bf16 %v300_v13, %v299_v12 }
  0x1a   : > { %450 = vst [vmem:[%s271_s6] sm:$0xff] %v449_v14  }
  0x1b PF: > { %s14_s17 = sadd.s32 1, %s497_s17   ;;  %s568_s15 = smov %s493_s16 }
  0x1c   : > { %p11_p5 = scmp.ge.s32.totalorder %s14_s17, 4   ;;  %s569_s16 = smov %s571_s18 }
  0x1e   :  { %13 = sbr.rel (!%p11_p5) target bundleno = 2 (0x2), region = 69 }

// kernel: _lambda_.44
= control target key start
LH: loop header
LB: loop body
LE: loop exit
PB: predicated region body
PF: predicated region fallthrough
CT: control target
= control target key end

     0   :  { %v361_v0 = vmov 0.0   ;;  %vm362_vm0 = vmmov 0   ;;  %v251_v28 = vlaneseq  ;;  %s456_s1 = inlined_call_operand.vmem [shape: bf16[128,128], index: 1, kind: input, shape index: {}]   ;;  %s457_s3 = inlined_call_operand.vmem [shape: bf16[128,128], index: 3, kind: input, shape index: {}]   ;;  %s458_s0 = inlined_call_operand.vmem [shape: f32[2,128], index: 0, kind: input, shape index: {}]   ;;  %s459_s2 = inlined_call_operand.vmem [shape: f32[1,128], index: 2, kind: input, shape index: {}]   ;;  %s460_s4 = inlined_call_operand.vmem [shape: f32[1,128], index: 4, kind: input, shape index: {}]   ;;  %s461_s5 = inlined_call_operand.vmem [shape: f32[2,8,128], index: 5, kind: output, shape index: {}]  }
   0x1   :  { %303 = vmatprep.subr.bf16.mxu0 %v361_v0  ;;  %v345_v1 = vld [vmem:[%s456_s1 + $0x38] sm:$0xff]   ;;  %319 = vmatprep.mubr.msk.bf16.mxu0 %vm362_vm0, %v361_v0  ;;  %v346_v2 = vld [vmem:[%s456_s1 + $0x30] sm:$0xff]   ;;  %v347_v3 = vld [vmem:[%s456_s1 + $0x28] sm:$0xff]  }
   0x2   :  { %323 = vmatprep.subr.bf16.mxu1 %v361_v0  ;;  %339 = vmatprep.mubr.msk.bf16.mxu1 %vm362_vm0, %v361_v0  ;;  %v353_v4 = vld [vmem:[%s457_s3 + $0x38] sm:$0xff]   ;;  %v348_v5 = vld [vmem:[%s456_s1 + $0x20] sm:$0xff]   ;;  %v354_v6 = vld [vmem:[%s457_s3 + $0x30] sm:$0xff]   ;;  %v252_v33 = vshrl.u32 %v251_v28, 7 }
   0x3   :  { %304 = vmatpush3.bf16.msra.mxu0 %v345_v1  ;;  %324 = vmatpush3.bf16.msra.mxu1 %v353_v4  ;;  %v349_v7 = vld [vmem:[%s456_s1 + $0x18] sm:$0xff]   ;;  %v355_v8 = vld [vmem:[%s457_s3 + $0x28] sm:$0xff]   ;;  %v350_v9 = vld [vmem:[%s456_s1 + $0x10] sm:$0xff]  }
   0x4   :  { %305 = vmatprep.subr.bf16.mxu0 %v361_v0  ;;  %325 = vmatprep.subr.bf16.mxu1 %v361_v0  ;;  %v356_v10 = vld [vmem:[%s457_s3 + $0x20] sm:$0xff]   ;;  %v351_v11 = vld [vmem:[%s456_s1 + $0x8] sm:$0xff]   ;;  %v357_v12 = vld [vmem:[%s457_s3 + $0x18] sm:$0xff]   ;;  %v253_v38 = vsub.s32 0, %v252_v33  ;;  %v258_v39 = vsub.s32 1, %v252_v33 }
   0x5   :  { %v352_v13 = vld [vmem:[%s456_s1] sm:$0xff]   ;;  %v358_v15 = vld [vmem:[%s457_s3 + $0x10] sm:$0xff]   ;;  %v359_v17 = vld [vmem:[%s457_s3 + $0x8] sm:$0xff]  }
   0x6   :  { %v21_v14 = vld [vmem:[%s458_s0] sm:$0x3] }
   0x7   :  { %306 = vmatpush3.bf16.msra.mxu0 %v346_v2  ;;  %326 = vmatpush3.bf16.msra.mxu1 %v354_v6  ;;  %v22_v16 = vpack.c.bf16 %v21_v14, %v21_v14  ;;  %v360_v18 = vld [vmem:[%s457_s3] sm:$0xff]  }
   0x8   :  { %307 = vmatprep.subr.bf16.mxu0 %v361_v0  ;;  %327 = vmatprep.subr.bf16.mxu1 %v361_v0  ;;  %v266_v19 = vld [vmem:[%s459_s2] ss:$0 sm:$0xff] }
   0x9   :  { %v275_v27 = vld [vmem:[%s460_s4] ss:$0 sm:$0xff] }
   0xb   :  { %308 = vmatpush3.bf16.msra.mxu0 %v347_v3  ;;  %328 = vmatpush3.bf16.msra.mxu1 %v355_v8 }
   0xc   :  { %309 = vmatprep.subr.bf16.mxu0 %v361_v0  ;;  %329 = vmatprep.subr.bf16.mxu1 %v361_v0 }
   0xf   :  { %310 = vmatpush3.bf16.msra.mxu0 %v348_v5  ;;  %330 = vmatpush3.bf16.msra.mxu1 %v356_v10 }
  0x10   :  { %311 = vmatprep.subr.bf16.mxu0 %v361_v0  ;;  %331 = vmatprep.subr.bf16.mxu1 %v361_v0 }
  0x13   :  { %312 = vmatpush3.bf16.msra.mxu0 %v349_v7  ;;  %332 = vmatpush3.bf16.msra.mxu1 %v357_v12 }
  0x14   :  { %313 = vmatprep.subr.bf16.mxu0 %v361_v0  ;;  %333 = vmatprep.subr.bf16.mxu1 %v361_v0 }
  0x17   :  { %314 = vmatpush3.bf16.msra.mxu0 %v350_v9  ;;  %334 = vmatpush3.bf16.msra.mxu1 %v358_v15 }
  0x18   :  { %315 = vmatprep.subr.bf16.mxu0 %v361_v0  ;;  %335 = vmatprep.subr.bf16.mxu1 %v361_v0 }
  0x1b   :  { %316 = vmatpush3.bf16.msra.mxu0 %v351_v11  ;;  %336 = vmatpush3.bf16.msra.mxu1 %v359_v17 }
  0x1c   :  { %317 = vmatprep.subr.bf16.mxu0 %v361_v0  ;;  %337 = vmatprep.subr.bf16.mxu1 %v361_v0 }
  0x1f   :  { %318 = vmatpush3.bf16.msra.mxu0 %v352_v13  ;;  %338 = vmatpush3.bf16.msra.mxu1 %v360_v18 }
  0x22   :  { %320 = vmatmul.mubr.bf16.vlgmr.msra.gmra.mxu0 %v22_v16 }
  0xe2   :  { %v128_v20 = vpop.f32.mrf.mxu0 }
  0xe3   :  { %v129_v21 = vadd.f32 %v266_v19, %v128_v20 }
  0xe4   :  { %v321_v22 = vpop.f32.mrf.mxu0 }
  0xe5   :  { %v134_v23 = vmax.f32 %v129_v21, 0.0 }
  0xe6   :  { %v131_v24 = vpop.f32.mrf.mxu0 }
  0xe7   :  { %v135_v25 = vpack.c.bf16 %v134_v23, %v134_v23 }
  0xe8   :  { %v322_v26 = vpop.f32.mrf.mxu0 }
  0xe9   :  { %340 = vmatmul.mubr.bf16.vlgmr.msra.gmra.mxu1 %v135_v25 }
 0x1a9   :  { %v241_v29 = vpop.f32.mrf.mxu1 }
 0x1aa   :  { %v242_v30 = vadd.f32 %v275_v27, %v241_v29 }
 0x1ab   :  { %v341_v31 = vpop.f32.mrf.mxu1 }
 0x1ac   :  { %v247_v32 = vadd.f32 3.0, %v242_v30 }
 0x1ad   :  { %v244_v34 = vpop.f32.mrf.mxu1 }
 0x1ae   :  { %v248_v35 = vmax.f32 %v247_v32, 0.0 }
 0x1af   :  { %v342_v36 = vpop.f32.mrf.mxu1 }
 0x1b0   :  { %v249_v37 = vmin.f32 %v248_v35, 6.0 }
 0x1b2   :  { %v250_v40 = vmul.f32 0.16666667, %v249_v37 }
 0x1b4   :  { %v254_v41 = vrot.slane %v250_v40, %v253_v38  ;;  %v259_v42 = vrot.slane %v250_v40, %v258_v39 }
 0x1b6   :  { %255 = vst [vmem:[%s461_s5] sm:$0xff] %v254_v41  ;;  %284 = vst [vmem:[%s461_s5 + $0x8] sm:$0xff] %v259_v42 }

// kernel: _lambda_.50
= control target key start
LH: loop header
LB: loop body
LE: loop exit
PB: predicated region body
PF: predicated region fallthrough
CT: control target
= control target key end

     0   :  { %s477_s15 = smov 0   ;;  %s479_s16 = smov 0   ;;  %s519_s0 = inlined_call_operand.vmem [shape: bf16[2,4,128], index: 0, kind: input, shape index: {}]   ;;  %s520_s1 = inlined_call_operand.vmem [shape: f32[1,128], index: 1, kind: input, shape index: {}]   ;;  %s521_s2 = inlined_call_operand.vmem [shape: f32[1,128], index: 2, kind: input, shape index: {}]   ;;  %s522_s3 = inlined_call_operand.vmem [shape: bf16[2,4,128], index: 3, kind: output, shape index: {0}]   ;;  %s523_s4 = inlined_call_operand.vmem [shape: f32[2,1,8,128], index: 4, kind: output, shape index: {1}]  }
   0x1   :  { %s481_s17 = smov 0  }
   0x2 LB: > { %s27_s18 = sadd.s32 1, %s446_s16  ;;  %p396_p0 = scmp.ge.s32.totalorder %s450_s17, 1  ;;  %s450_s17 = sphi %s481_s17, %s15_s17   ;;  %s446_s16 = sphi %s479_s16, %s525_s16   ;;  %s442_s15 = sphi %s477_s15, %s524_s15  }
   0x3   : > { %p29_p1 = scmp.ge.s32.totalorder %s27_s18, 2  ;;  %p185_p2 = scmp.lt.s32.totalorder %s450_s17, 3 }
   0x5   : > { %s527_s18 = smov (%p29_p1, %s27_s18), 0  ;;  %p186_p3 = pnand %p396_p0, %p185_p2 }
   0x6   : > { %p222_p4 = scmp.lt.s32.totalorder (!%p186_p3), %s442_s15, 1 }
   0x7   : > { %189 = sbr.rel (%p186_p3) target bundleno = 46 (0x2e), region = 32 }
   0xc   : > { %s529_s15 = smov (!%p222_p4, %s442_s15), 1  ;;  %v400_v1 = vld [vmem:[%s520_s1] ss:$0 sm:$0xff]  ;;  %vm268_vm0 = vcmask 1043456  }
   0xd   : > { %s397_s19 = sshll.u32 %s529_s15, 1  ;;  %v401_v3 = vld [vmem:[%s521_s2] ss:$0 sm:$0xff]  ;;  %s399_s30 = sshll.u32 %s529_s15, 3 }
   0xe   : > { %s228_s22 = scalar_lea.vmem %s519_s0, %s397_s19  ;;  %s235_s29 = scalar_lea.vmem %s522_s3, %s397_s19 }
   0xf   : > { %v243_v0 = vld [vmem:[%s228_s22] sm:$0x3]  ;;  %s242_s7 = scalar_lea.vmem %s523_s4, %s399_s30 }
  0x10   : > { %v244_v2 = vunpack.c.l.bf16 %v243_v0 }
  0x12   : > { %v252_v4 = vmul.f32 %v400_v1, %v244_v2 }
  0x14   : > { %v260_v5 = vadd.f32 %v401_v3, %v252_v4 }
  0x16   : > { %v261_v6 = vadd.f32 3.0, %v260_v5 }
  0x18   : > { %v262_v7 = vmax.f32 %v261_v6, 0.0 }
  0x1a   : > { %v263_v8 = vmin.f32 %v262_v7, 6.0 }
  0x1c   : > { %v264_v9 = vmul.f32 %v263_v8, %v260_v5 }
  0x1e   : > { %v265_v10 = vmul.f32 0.16666667, %v264_v9 }
  0x20   : > { %v266_v11 = vpack.c.bf16 %v265_v10, %v265_v10  ;;  %v269_v12 = vsel %vm268_vm0, %v265_v10, 0.0 }
  0x21   : > { %v270_v13 = vrot.slane %v269_v12, 4 }
  0x22   : > { %267 = vst [vmem:[%s235_s29] sm:$0x3] %v266_v11 }
  0x23   : > { %v271_v14 = vadd.f32 %v270_v13, %v269_v12 }
  0x25   : > { %v272_v15 = vrot.slane %v271_v14, 2 }
  0x27   : > { %v273_v16 = vadd.f32 %v272_v15, %v271_v14 }
  0x29   : > { %v274_v17 = vrot.slane %v273_v16, 1 }
  0x2b   : > { %v275_v18 = vadd.f32 %v274_v17, %v273_v16 }
  0x2d   : > { %276 = vst [vmem:[%s242_s7] sm:$0xff] %v275_v18 }
  0x2e PF: > { %s15_s17 = sadd.s32 1, %s450_s17   ;;  %s524_s15 = smov %s446_s16 }
  0x2f   : > { %p12_p5 = scmp.ge.s32.totalorder %s15_s17, 4   ;;  %s525_s16 = smov %s527_s18 }
  0x31   :  { %14 = sbr.rel (!%p12_p5) target bundleno = 2 (0x2), region = 74 }

// kernel: _lambda_.53
= control target key start
LH: loop header
LB: loop body
LE: loop exit
PB: predicated region body
PF: predicated region fallthrough
CT: control target
= control target key end

     0   :  { %s370_s12 = smov 0   ;;  %s372_s13 = smov 0   ;;  %s397_s0 = inlined_call_operand.vmem [shape: bf16[2,4,128], index: 0, kind: input, shape index: {}]   ;;  %s398_s1 = inlined_call_operand.vmem [shape: f32[1,128], index: 1, kind: input, shape index: {}]   ;;  %s399_s2 = inlined_call_operand.vmem [shape: f32[1,128], index: 2, kind: input, shape index: {}]   ;;  %s400_s3 = inlined_call_operand.vmem [shape: bf16[2,4,128], index: 3, kind: output, shape index: {}]  }
   0x1   :  { %s374_s14 = smov 0  }
   0x2 LB: > { %s25_s15 = sadd.s32 1, %s344_s13  ;;  %p295_p0 = scmp.ge.s32.totalorder %s348_s14, 1  ;;  %s348_s14 = sphi %s374_s14, %s13_s14   ;;  %s344_s13 = sphi %s372_s13, %s402_s13   ;;  %s340_s12 = sphi %s370_s12, %s401_s12  }
   0x3   : > { %p27_p1 = scmp.ge.s32.totalorder %s25_s15, 2  ;;  %p155_p2 = scmp.lt.s32.totalorder %s348_s14, 3 }
   0x5   : > { %s404_s15 = smov (%p27_p1, %s25_s15), 0  ;;  %p156_p3 = pnand %p295_p0, %p155_p2 }
   0x6   : > { %p183_p4 = scmp.lt.s32.totalorder (!%p156_p3), %s340_s12, 1 }
   0x7   : > { %159 = sbr.rel (%p156_p3) target bundleno = 25 (0x19), region = 32 }
   0xc   : > { %s406_s12 = smov (!%p183_p4, %s340_s12), 1  ;;  %v298_v1 = vld [vmem:[%s398_s1] ss:$0 sm:$0xff] }
   0xd   : > { %s296_s16 = sshll.u32 %s406_s12, 1  ;;  %v299_v3 = vld [vmem:[%s399_s2] ss:$0 sm:$0xff] }
   0xe   : > { %s189_s19 = scalar_lea.vmem %s397_s0, %s296_s16  ;;  %s196_s26 = scalar_lea.vmem %s400_s3, %s296_s16 }
   0xf   : > { %v197_v0 = vld [vmem:[%s189_s19] sm:$0x3] }
  0x10   : > { %v198_v2 = vunpack.c.l.bf16 %v197_v0 }
  0x12   : > { %v206_v4 = vmul.f32 %v298_v1, %v198_v2 }
  0x14   : > { %v214_v5 = vadd.f32 %v299_v3, %v206_v4 }
  0x16   : > { %v215_v6 = vpack.c.bf16 %v214_v5, %v214_v5 }
  0x18   : > { %216 = vst [vmem:[%s196_s26] sm:$0x3] %v215_v6 }
  0x19 PF: > { %s13_s14 = sadd.s32 1, %s348_s14   ;;  %s401_s12 = smov %s344_s13 }
  0x1a   : > { %p10_p5 = scmp.ge.s32.totalorder %s13_s14, 4   ;;  %s402_s13 = smov %s404_s15 }
  0x1c   :  { %12 = sbr.rel (!%p10_p5) target bundleno = 2 (0x2), region = 62 }

// kernel: _lambda_.49
= control target key start
LH: loop header
LB: loop body
LE: loop exit
PB: predicated region body
PF: predicated region fallthrough
CT: control target
= control target key end

     0   :  { %s745_s15 = smov 0   ;;  %s747_s16 = smov 0   ;;  %s866_s0 = inlined_call_operand.vmem [shape: bf16[2,4,3200], index: 0, kind: input, shape index: {}]   ;;  %s867_s1 = inlined_call_operand.vmem [shape: bf16[25,128], index: 1, kind: input, shape index: {}]   ;;  %s868_s2 = inlined_call_operand.vmem [shape: bf16[2,4,128], index: 2, kind: output, shape index: {0}]   ;;  %s869_s3 = inlined_call_operand.vmem [shape: f32[2,1,8,128], index: 3, kind: output, shape index: {1}]   ;;  %s870_s4 = inlined_call_operand.vmem [shape: f32[2,1,8,128], index: 4, kind: output, shape index: {2}]  }
   0x1   :  { %s749_s17 = smov 0  }
   0x2 LB: > { %s27_s18 = sadd.s32 1, %s714_s16  ;;  %p660_p0 = scmp.ge.s32.totalorder %s718_s17, 1  ;;  %s718_s17 = sphi %s749_s17, %s15_s17   ;;  %s714_s16 = sphi %s747_s16, %s872_s16   ;;  %s710_s15 = sphi %s745_s15, %s871_s15  }
   0x3   : > { %p29_p1 = scmp.ge.s32.totalorder %s27_s18, 2  ;;  %p191_p2 = scmp.lt.s32.totalorder %s718_s17, 3 }
   0x5   : > { %s874_s18 = smov (%p29_p1, %s27_s18), 0  ;;  %p192_p3 = pnand %p660_p0, %p191_p2 }
   0x6   : > { %p237_p4 = scmp.lt.s32.totalorder (!%p192_p3), %s710_s15, 1 }
   0x7   : > { %195 = sbr.rel (%p192_p3) target bundleno = 86 (0x56), region = 28 }
   0xc   : > { %v668_v0 = vld [vmem:[%s867_s1] sm:$0xff]   ;;  %v277_v1 = vlaneseq  ;;  %s876_s15 = smov (!%p237_p4, %s710_s15), 1  ;;  %vm476_vm0 = vcmask 1043456  }
   0xd   : > { %v669_v2 = vunpack.c.l.bf16 %v668_v0  ;;  %s671_s21 = smul.u32 50, %s876_s15  ;;  %v670_v36 = vunpack.c.h.bf16 %v668_v0  ;;  %s662_s29 = sshll.u32 %s876_s15, 1 }
   0xe   : > { %v278_v3 = vshrl.u32 %v277_v1, 7  ;;  %s252_s6 = scalar_lea.vmem %s868_s2, %s662_s29  ;;  %s663_s7 = sshll.u32 %s876_s15, 3 }
   0xf   : > { %s782_s24 = scalar_lea.vmem %s866_s0, %s671_s21  ;;  %s259_s10 = scalar_lea.vmem %s869_s3, %s663_s7 }
  0x10   : > { %v769_v4 = vsub.s32 0, %v278_v3  ;;  %v771_v5 = vsub.s32 1, %v278_v3  ;;  %v773_v6 = vsub.s32 2, %v278_v3  ;;  %v775_v7 = vsub.s32 3, %v278_v3  ;;  %v275_v13 = vld [vmem:[%s782_s24] sm:$0x3]  ;;  %s266_s13 = scalar_lea.vmem %s870_s4, %s663_s7 }
  0x11   : > { %v777_v8 = vsub.s32 4, %v278_v3  ;;  %v787_v12 = vsub.s32 5, %v278_v3  ;;  %v282_v14 = vld [vmem:[%s782_s24 + $0x2] sm:$0x3]  ;;  %v290_v15 = vld [vmem:[%s782_s24 + $0x4] sm:$0x3]  ;;  %v276_v16 = vunpack.c.l.bf16 %v275_v13 }
  0x12   : > { %v280_v9 = vrot.slane %v669_v2, %v769_v4  ;;  %v287_v10 = vrot.slane %v669_v2, %v771_v5  ;;  %v295_v11 = vrot.slane %v669_v2, %v773_v6  ;;  %v283_v17 = vunpack.c.l.bf16 %v282_v14  ;;  %v298_v19 = vld [vmem:[%s782_s24 + $0x6] sm:$0x3]  ;;  %v306_v21 = vld [vmem:[%s782_s24 + $0x8] sm:$0x3]  ;;  %v314_v24 = vld [vmem:[%s782_s24 + $0xa] sm:$0x3] }
  0x13   : > { %v291_v18 = vunpack.c.l.bf16 %v290_v15  ;;  %v303_v20 = vrot.slane %v669_v2, %v775_v7  ;;  %v299_v22 = vunpack.c.l.bf16 %v298_v19  ;;  %v311_v23 = vrot.slane %v669_v2, %v777_v8  ;;  %v322_v30 = vld [vmem:[%s782_s24 + $0xc] sm:$0x3]  ;;  %v330_v37 = vld [vmem:[%s782_s24 + $0xe] sm:$0x3]  ;;  %v338_v42 = vld [vmem:[%s782_s24 + $0x10] sm:$0x3] }
  0x14   : > { %v797_v25 = vsub.s32 6, %v278_v3  ;;  %v281_v26 = vmul.f32 %v280_v9, %v276_v16  ;;  %v288_v27 = vmul.f32 %v287_v10, %v283_v17  ;;  %v307_v29 = vunpack.c.l.bf16 %v306_v21  ;;  %v346_v47 = vld [vmem:[%s782_s24 + $0x12] sm:$0x3]  ;;  %v354_v52 = vld [vmem:[%s782_s24 + $0x14] sm:$0x3] }
  0x15   : > { %v296_v28 = vmul.f32 %v295_v11, %v291_v18  ;;  %v800_v31 = vsub.s32 7, %v278_v3  ;;  %v304_v33 = vmul.f32 %v303_v20, %v299_v22  ;;  %v315_v34 = vunpack.c.l.bf16 %v314_v24  ;;  %v362_v57 = vld [vmem:[%s782_s24 + $0x16] sm:$0x3]  ;;  %v370_v62 = vld [vmem:[%s782_s24 + $0x18] sm:$0x3] }
  0x16   : > { %v289_v32 = vadd.f32 %v288_v27, %v281_v26  ;;  %v319_v35 = vrot.slane %v669_v2, %v787_v12  ;;  %v312_v39 = vmul.f32 %v311_v23, %v307_v29  ;;  %v323_v40 = vunpack.c.l.bf16 %v322_v30  ;;  %v378_v3 = vld [vmem:[%s782_s24 + $0x1a] sm:$0x3]  ;;  %v269_v9 = vld [vmem:[%s867_s1 + $0x8] sm:$0xf]  ;;  %v386_v15 = vld [vmem:[%s782_s24 + $0x1c] sm:$0x3] }
  0x17   : > { %v327_v41 = vrot.slane %v669_v2, %v797_v25  ;;  %v331_v45 = vunpack.c.l.bf16 %v330_v37  ;;  %v335_v46 = vrot.slane %v669_v2, %v800_v31  ;;  %v339_v50 = vunpack.c.l.bf16 %v338_v42  ;;  %v394_v21 = vld [vmem:[%s782_s24 + $0x1e] sm:$0x3]  ;;  %v402_v27 = vld [vmem:[%s782_s24 + $0x20] sm:$0x3] }
  0x18   : > { %v297_v38 = vadd.f32 %v296_v28, %v289_v32  ;;  %v320_v44 = vmul.f32 %v319_v35, %v315_v34  ;;  %v343_v51 = vrot.slane %v670_v36, %v769_v4  ;;  %v347_v55 = vunpack.c.l.bf16 %v346_v47 }
  0x19   : > { %v328_v49 = vmul.f32 %v327_v41, %v323_v40  ;;  %v336_v54 = vmul.f32 %v335_v46, %v331_v45  ;;  %v351_v56 = vrot.slane %v670_v36, %v771_v5  ;;  %v355_v60 = vunpack.c.l.bf16 %v354_v52 }
  0x1a   : > { %v305_v43 = vadd.f32 %v304_v33, %v297_v38  ;;  %v344_v59 = vmul.f32 %v343_v51, %v339_v50  ;;  %v359_v61 = vrot.slane %v670_v36, %v773_v6  ;;  %v363_v1 = vunpack.c.l.bf16 %v362_v57  ;;  %v410_v33 = vld [vmem:[%s782_s24 + $0x22] sm:$0x3] }
  0x1b   : > { %v352_v0 = vmul.f32 %v351_v56, %v347_v55  ;;  %v367_v2 = vrot.slane %v670_v36, %v775_v7  ;;  %v371_v13 = vunpack.c.l.bf16 %v370_v62  ;;  %v375_v14 = vrot.slane %v670_v36, %v777_v8 }
  0x1c   : > { %v313_v48 = vadd.f32 %v312_v39, %v305_v43  ;;  %v360_v11 = vmul.f32 %v359_v61, %v355_v60  ;;  %v379_v18 = vunpack.c.l.bf16 %v378_v3  ;;  %v383_v19 = vrot.slane %v670_v36, %v787_v12  ;;  %v418_v39 = vld [vmem:[%s782_s24 + $0x24] sm:$0x3]  ;;  %v466_v3 = vld [vmem:[%s782_s24 + $0x30] sm:$0x3] }
  0x1d   : > { %v368_v17 = vmul.f32 %v367_v2, %v363_v1  ;;  %v273_v20 = vunpack.c.l.bf16 %v269_v9  ;;  %v376_v23 = vmul.f32 %v375_v14, %v371_v13  ;;  %v387_v24 = vunpack.c.l.bf16 %v386_v15 }
  0x1e   : > { %v321_v53 = vadd.f32 %v320_v44, %v313_v48  ;;  %v391_v26 = vrot.slane %v670_v36, %v797_v25  ;;  %v384_v29 = vmul.f32 %v383_v19, %v379_v18  ;;  %v395_v30 = vunpack.c.l.bf16 %v394_v21  ;;  %v426_v44 = vld [vmem:[%s782_s24 + $0x26] sm:$0x3]  ;;  %v434_v48 = vld [vmem:[%s782_s24 + $0x28] sm:$0x3] }
  0x1f   : > { %v399_v32 = vrot.slane %v670_v36, %v800_v31  ;;  %v403_v37 = vunpack.c.l.bf16 %v402_v27  ;;  %v407_v38 = vrot.slane %v273_v20, %v769_v4  ;;  %v411_v42 = vunpack.c.l.bf16 %v410_v33 }
  0x20   : > { %v329_v58 = vadd.f32 %v328_v49, %v321_v53  ;;  %v392_v35 = vmul.f32 %v391_v26, %v387_v24  ;;  %v415_v43 = vrot.slane %v273_v20, %v771_v5  ;;  %v419_v47 = vunpack.c.l.bf16 %v418_v39  ;;  %v442_v53 = vld [vmem:[%s782_s24 + $0x2a] sm:$0x3] }
  0x21   : > { %v400_v41 = vmul.f32 %v399_v32, %v395_v30  ;;  %v408_v46 = vmul.f32 %v407_v38, %v403_v37  ;;  %v423_v36 = vrot.slane %v273_v20, %v773_v6  ;;  %v427_v51 = vunpack.c.l.bf16 %v426_v44 }
  0x22   : > { %v337_v63 = vadd.f32 %v336_v54, %v329_v58  ;;  %v416_v50 = vmul.f32 %v415_v43, %v411_v42  ;;  %v431_v52 = vrot.slane %v273_v20, %v775_v7  ;;  %v270_v54 = vld [vmem:[%s867_s1 + $0xc] sm:$0x1]  ;;  %v435_v56 = vunpack.c.l.bf16 %v434_v48 }
  0x23   : > { %v424_v55 = vmul.f32 %v423_v36, %v419_v47  ;;  %v439_v57 = vrot.slane %v273_v20, %v777_v8  ;;  %v450_v58 = vld [vmem:[%s782_s24 + $0x2c] sm:$0x3]  ;;  %v443_v60 = vunpack.c.l.bf16 %v442_v53  ;;  %v447_v61 = vrot.slane %v273_v20, %v787_v12 }
  0x24   : > { %v345_v10 = vadd.f32 %v344_v59, %v337_v63  ;;  %v432_v59 = vmul.f32 %v431_v52, %v427_v51  ;;  %v274_v62 = vunpack.c.l.bf16 %v270_v54  ;;  %v458_v63 = vld [vmem:[%s782_s24 + $0x2e] sm:$0x3]  ;;  %v451_v1 = vunpack.c.l.bf16 %v450_v58 }
  0x25   : > { %v455_v2 = vrot.slane %v273_v20, %v797_v25  ;;  %v463_v8 = vrot.slane %v273_v20, %v800_v31  ;;  %v467_v15 = vunpack.c.l.bf16 %v466_v3 }
  0x26   : > { %v353_v16 = vadd.f32 %v352_v0, %v345_v10  ;;  %v440_v0 = vmul.f32 %v439_v57, %v435_v56  ;;  %v448_v10 = vmul.f32 %v447_v61, %v443_v60 }
  0x27   : > { %v456_v14 = vmul.f32 %v455_v2, %v451_v1 }
  0x28   : > { %v361_v22 = vadd.f32 %v360_v11, %v353_v16  ;;  %v459_v11 = vunpack.c.l.bf16 %v458_v63  ;;  %v471_v16 = vrot.slane %v274_v62, %v769_v4 }
  0x2a   : > { %v369_v28 = vadd.f32 %v368_v17, %v361_v22  ;;  %v464_v17 = vmul.f32 %v463_v8, %v459_v11  ;;  %v472_v19 = vmul.f32 %v471_v16, %v467_v15 }
  0x2c   : > { %v377_v34 = vadd.f32 %v376_v23, %v369_v28 }
  0x2e   : > { %v385_v40 = vadd.f32 %v384_v29, %v377_v34 }
  0x30   : > { %v393_v45 = vadd.f32 %v392_v35, %v385_v40 }
  0x32   : > { %v401_v49 = vadd.f32 %v400_v41, %v393_v45 }
  0x34   : > { %v409_v5 = vadd.f32 %v408_v46, %v401_v49 }
  0x36   : > { %v417_v6 = vadd.f32 %v416_v50, %v409_v5 }
  0x38   : > { %v425_v7 = vadd.f32 %v424_v55, %v417_v6 }
  0x3a   : > { %v433_v9 = vadd.f32 %v432_v59, %v425_v7 }
  0x3c   : > { %v441_v13 = vadd.f32 %v440_v0, %v433_v9 }
  0x3e   : > { %v449_v12 = vadd.f32 %v448_v10, %v441_v13 }
  0x40   : > { %v457_v18 = vadd.f32 %v456_v14, %v449_v12 }
  0x42   : > { %v465_v21 = vadd.f32 %v464_v17, %v457_v18 }
  0x44   : > { %v473_v25 = vadd.f32 %v472_v19, %v465_v21 }
  0x46   : > { %v474_v22 = vpack.c.bf16 %v473_v25, %v473_v25  ;;  %v477_v31 = vsel %vm476_vm0, %v473_v25, 0.0  ;;  %v485_v20 = vmul.f32 %v473_v25, %v473_v25 }
  0x47   : > { %v478_v23 = vrot.slane %v477_v31, 4 }
  0x48   : > { %475 = vst [vmem:[%s252_s6] sm:$0x3] %v474_v22  ;;  %v486_v24 = vsel %vm476_vm0, %v485_v20, 0.0 }
  0x49   : > { %v479_v4 = vadd.f32 %v478_v23, %v477_v31  ;;  %v487_v26 = vrot.slane %v486_v24, 4 }
  0x4b   : > { %v480_v27 = vrot.slane %v479_v4, 2  ;;  %v488_v28 = vadd.f32 %v487_v26, %v486_v24 }
  0x4d   : > { %v481_v29 = vadd.f32 %v480_v27, %v479_v4  ;;  %v489_v30 = vrot.slane %v488_v28, 2 }
  0x4f   : > { %v482_v32 = vrot.slane %v481_v29, 1  ;;  %v490_v33 = vadd.f32 %v489_v30, %v488_v28 }
  0x51   : > { %v483_v34 = vadd.f32 %v482_v32, %v481_v29  ;;  %v491_v35 = vrot.slane %v490_v33, 1 }
  0x53   : > { %484 = vst [vmem:[%s259_s10] sm:$0xff] %v483_v34  ;;  %v492_v37 = vadd.f32 %v491_v35, %v490_v33 }
  0x55   : > { %493 = vst [vmem:[%s266_s13] sm:$0xff] %v492_v37 }
  0x56 PF: > { %s15_s17 = sadd.s32 1, %s718_s17   ;;  %s871_s15 = smov %s714_s16 }
  0x57   : > { %p12_p5 = scmp.ge.s32.totalorder %s15_s17, 4   ;;  %s872_s16 = smov %s874_s18 }
  0x59   :  { %14 = sbr.rel (!%p12_p5) target bundleno = 2 (0x2), region = 82 }

// kernel: _lambda_.52
= control target key start
LH: loop header
LB: loop body
LE: loop exit
PB: predicated region body
PF: predicated region fallthrough
CT: control target
= control target key end

     0   :  { %s746_s18 = smov 0   ;;  %s748_s19 = smov 0   ;;  %s821_s0 = inlined_call_operand.vmem [shape: bf16[2,4,128], index: 0, kind: input, shape index: {}]   ;;  %s822_s1 = inlined_call_operand.vmem [shape: bf16[128,128], index: 1, kind: input, shape index: {}]   ;;  %s823_s2 = inlined_call_operand.vmem [shape: f32[2,8,128], index: 2, kind: input, shape index: {}]   ;;  %s824_s3 = inlined_call_operand.vmem [shape: bf16[2,4,128], index: 3, kind: output, shape index: {0}]   ;;  %s825_s4 = inlined_call_operand.vmem [shape: f32[2,1,8,128], index: 4, kind: output, shape index: {1}]   ;;  %s826_s5 = inlined_call_operand.vmem [shape: f32[2,1,8,128], index: 5, kind: output, shape index: {2}]  }
   0x1   :  { %s750_s20 = smov 0  }
   0x2 LB: > { %s28_s21 = sadd.s32 1, %s708_s19  ;;  %p611_p0 = scmp.ge.s32.totalorder %s712_s20, 1  ;;  %s712_s20 = sphi %s750_s20, %s16_s20   ;;  %s708_s19 = sphi %s748_s19, %s828_s19   ;;  %s704_s18 = sphi %s746_s18, %s827_s18  }
   0x3   : > { %p30_p1 = scmp.ge.s32.totalorder %s28_s21, 2  ;;  %p223_p2 = scmp.lt.s32.totalorder %s712_s20, 3 }
   0x5   : > { %s830_s21 = smov (%p30_p1, %s28_s21), 0  ;;  %p224_p3 = pnand %p611_p0, %p223_p2 }
   0x6   : > { %p273_p4 = scmp.lt.s32.totalorder (!%p224_p3), %s704_s18, 1 }
   0x7   : > { %227 = sbr.rel (%p224_p3) target bundleno = 254 (0xfe), region = 32 }
   0xc   : > { %v682_v0 = vld [vmem:[%s822_s1 + $0x38] sm:$0xff]   ;;  %v714_v1 = vmov 0.0   ;;  %v683_v2 = vld [vmem:[%s822_s1 + $0x30] sm:$0xff]   ;;  %vm715_vm0 = vmmov 0   ;;  %v684_v3 = vld [vmem:[%s822_s1 + $0x28] sm:$0xff]   ;;  %s832_s18 = smov (!%p273_p4, %s704_s18), 1  ;;  %v309_v4 = vlaneseq }
   0xd   : > { %636 = vmatprep.subr.bf16.mxu0 %v714_v1  ;;  %652 = vmatprep.mubr.msk.bf16.mxu0 %vm715_vm0, %v714_v1  ;;  %v685_v5 = vld [vmem:[%s822_s1 + $0x20] sm:$0xff]   ;;  %s612_s30 = sshll.u32 %s832_s18, 1  ;;  %s780_s6 = sshll.u32 %s832_s18, 3  ;;  %v686_v7 = vld [vmem:[%s822_s1 + $0x18] sm:$0xff]   ;;  %v687_v9 = vld [vmem:[%s822_s1 + $0x10] sm:$0xff]   ;;  %vm421_vm1 = vcmask 1043456  }
   0xe   : > { %637 = vmatpush3.bf16.msra.mxu0 %v682_v0  ;;  %v310_v6 = vshrl.u32 %v309_v4, 7  ;;  %s279_s11 = scalar_lea.vmem %s821_s0, %s612_s30  ;;  %s283_s14 = scalar_lea.vmem %s823_s2, %s780_s6  ;;  %v688_v14 = vld [vmem:[%s822_s1 + $0x8] sm:$0xff]   ;;  %v689_v16 = vld [vmem:[%s822_s1] sm:$0xff]  }
   0xf   : > { %638 = vmatprep.subr.bf16.mxu0 %v714_v1  ;;  %v306_v10 = vld [vmem:[%s279_s11] sm:$0x3]  ;;  %s290_s26 = scalar_lea.vmem %s824_s3, %s612_s30  ;;  %s297_s29 = scalar_lea.vmem %s825_s4, %s780_s6 }
  0x10   : > { %v311_v8 = vsub.s32 0, %v310_v6  ;;  %v307_v11 = vld [vmem:[%s283_s14] sm:$0xff]  ;;  %v308_v12 = vunpack.c.l.bf16 %v306_v10  ;;  %s304_s8 = scalar_lea.vmem %s826_s5, %s780_s6 }
  0x12   : > { %639 = vmatpush3.bf16.msra.mxu0 %v683_v2  ;;  %v312_v13 = vrot.slane %v307_v11, %v311_v8 }
  0x13   : > { %640 = vmatprep.subr.bf16.mxu0 %v714_v1 }
  0x14   : > { %v313_v15 = vmul.f32 %v312_v13, %v308_v12 }
  0x16   : > { %641 = vmatpush3.bf16.msra.mxu0 %v684_v3  ;;  %v314_v17 = vpack.c.bf16 %v313_v15, %v313_v15 }
  0x17   : > { %642 = vmatprep.subr.bf16.mxu0 %v714_v1 }
  0x1a   : > { %643 = vmatpush3.bf16.msra.mxu0 %v685_v5 }
  0x1b   : > { %644 = vmatprep.subr.bf16.mxu0 %v714_v1 }
  0x1e   : > { %645 = vmatpush3.bf16.msra.mxu0 %v686_v7 }
  0x1f   : > { %646 = vmatprep.subr.bf16.mxu0 %v714_v1 }
  0x22   : > { %647 = vmatpush3.bf16.msra.mxu0 %v687_v9 }
  0x23   : > { %648 = vmatprep.subr.bf16.mxu0 %v714_v1 }
  0x26   : > { %649 = vmatpush3.bf16.msra.mxu0 %v688_v14 }
  0x27   : > { %650 = vmatprep.subr.bf16.mxu0 %v714_v1 }
  0x2a   : > { %651 = vmatpush3.bf16.msra.mxu0 %v689_v16 }
  0x2d   : > { %653 = vmatmul.mubr.bf16.vlgmr.msra.gmra.mxu0 %v314_v17 }
  0xed   : > { %v413_v18 = vpop.f32.mrf.mxu0 }
  0xee   : > { %v419_v19 = vpack.c.bf16 %v413_v18, %v413_v18  ;;  %v422_v20 = vsel %vm421_vm1, %v413_v18, 0.0  ;;  %v430_v21 = vmul.f32 %v413_v18, %v413_v18 }
  0xef   : > { %v423_v22 = vrot.slane %v422_v20, 4  ;;  %v654_v23 = vpop.f32.mrf.mxu0 }
  0xf0   : > { %420 = vst [vmem:[%s290_s26] sm:$0x3] %v419_v19  ;;  %v431_v24 = vsel %vm421_vm1, %v430_v21, 0.0 }
  0xf1   : > { %v424_v25 = vadd.f32 %v423_v22, %v422_v20  ;;  %v432_v26 = vrot.slane %v431_v24, 4  ;;  %v416_v27 = vpop.f32.mrf.mxu0 }
  0xf3   : > { %v425_v28 = vrot.slane %v424_v25, 2  ;;  %v433_v29 = vadd.f32 %v432_v26, %v431_v24  ;;  %v655_v30 = vpop.f32.mrf.mxu0 }
  0xf5   : > { %v426_v31 = vadd.f32 %v425_v28, %v424_v25  ;;  %v434_v32 = vrot.slane %v433_v29, 2 }
  0xf7   : > { %v427_v33 = vrot.slane %v426_v31, 1  ;;  %v435_v34 = vadd.f32 %v434_v32, %v433_v29 }
  0xf9   : > { %v428_v35 = vadd.f32 %v427_v33, %v426_v31  ;;  %v436_v36 = vrot.slane %v435_v34, 1 }
  0xfb   : > { %429 = vst [vmem:[%s297_s29] sm:$0xff] %v428_v35  ;;  %v437_v37 = vadd.f32 %v436_v36, %v435_v34 }
  0xfd   : > { %438 = vst [vmem:[%s304_s8] sm:$0xff] %v437_v37 }
  0xfe PF: > { %s16_s20 = sadd.s32 1, %s712_s20   ;;  %s827_s18 = smov %s708_s19 }
  0xff   : > { %p13_p5 = scmp.ge.s32.totalorder %s16_s20, 4   ;;  %s828_s19 = smov %s830_s21 }
 0x101   :  { %15 = sbr.rel (!%p13_p5) target bundleno = 2 (0x2), region = 89 }

// kernel: _lambda_.54
= control target key start
LH: loop header
LB: loop body
LE: loop exit
PB: predicated region body
PF: predicated region fallthrough
CT: control target
= control target key end

     0   :  { %s676_s15 = smov 0   ;;  %s678_s16 = smov 0   ;;  %s747_s0 = inlined_call_operand.vmem [shape: bf16[2,4,128], index: 0, kind: input, shape index: {}]   ;;  %s748_s1 = inlined_call_operand.vmem [shape: bf16[128,128], index: 1, kind: input, shape index: {}]   ;;  %s749_s2 = inlined_call_operand.vmem [shape: bf16[2,4,128], index: 2, kind: output, shape index: {0}]   ;;  %s750_s3 = inlined_call_operand.vmem [shape: f32[2,1,8,128], index: 3, kind: output, shape index: {1}]   ;;  %s751_s4 = inlined_call_operand.vmem [shape: f32[2,1,8,128], index: 4, kind: output, shape index: {2}]  }
   0x1   :  { %s680_s17 = smov 0  }
   0x2 LB: > { %s27_s18 = sadd.s32 1, %s643_s16  ;;  %p547_p0 = scmp.ge.s32.totalorder %s647_s17, 1  ;;  %s647_s17 = sphi %s680_s17, %s15_s17   ;;  %s643_s16 = sphi %s678_s16, %s753_s16   ;;  %s639_s15 = sphi %s676_s15, %s752_s15  }
   0x3   : > { %p29_p1 = scmp.ge.s32.totalorder %s27_s18, 2  ;;  %p189_p2 = scmp.lt.s32.totalorder %s647_s17, 3 }
   0x5   : > { %s755_s18 = smov (%p29_p1, %s27_s18), 0  ;;  %p190_p3 = pnand %p547_p0, %p189_p2 }
   0x6   : > { %p233_p4 = scmp.lt.s32.totalorder (!%p190_p3), %s639_s15, 1 }
   0x7   : > { %193 = sbr.rel (%p190_p3) target bundleno = 254 (0xfe), region = 28 }
   0xc   : > { %v617_v0 = vld [vmem:[%s748_s1 + $0x38] sm:$0xff]   ;;  %v649_v1 = vmov 0.0   ;;  %v618_v2 = vld [vmem:[%s748_s1 + $0x30] sm:$0xff]   ;;  %vm650_vm0 = vmmov 0   ;;  %v619_v3 = vld [vmem:[%s748_s1 + $0x28] sm:$0xff]   ;;  %s757_s15 = smov (!%p233_p4, %s639_s15), 1 }
   0xd   : > { %571 = vmatprep.subr.bf16.mxu0 %v649_v1  ;;  %587 = vmatprep.mubr.msk.bf16.mxu0 %vm650_vm0, %v649_v1  ;;  %v620_v4 = vld [vmem:[%s748_s1 + $0x20] sm:$0xff]   ;;  %v621_v5 = vld [vmem:[%s748_s1 + $0x18] sm:$0xff]   ;;  %v622_v6 = vld [vmem:[%s748_s1 + $0x10] sm:$0xff]   ;;  %s548_s7 = sshll.u32 %s757_s15, 1  ;;  %vm369_vm1 = vcmask 1043456   ;;  %s550_s20 = sshll.u32 %s757_s15, 3 }
   0xe   : > { %572 = vmatpush3.bf16.msra.mxu0 %v617_v0  ;;  %v623_v7 = vld [vmem:[%s748_s1 + $0x8] sm:$0xff]   ;;  %v624_v8 = vld [vmem:[%s748_s1] sm:$0xff]   ;;  %s239_s12 = scalar_lea.vmem %s747_s0, %s548_s7  ;;  %s246_s19 = scalar_lea.vmem %s749_s2, %s548_s7 }
   0xf   : > { %573 = vmatprep.subr.bf16.mxu0 %v649_v1  ;;  %v262_v9 = vld [vmem:[%s239_s12] sm:$0x3]  ;;  %s253_s23 = scalar_lea.vmem %s750_s3, %s550_s20  ;;  %s260_s26 = scalar_lea.vmem %s751_s4, %s550_s20 }
  0x12   : > { %574 = vmatpush3.bf16.msra.mxu0 %v618_v2 }
  0x13   : > { %575 = vmatprep.subr.bf16.mxu0 %v649_v1 }
  0x16   : > { %576 = vmatpush3.bf16.msra.mxu0 %v619_v3 }
  0x17   : > { %577 = vmatprep.subr.bf16.mxu0 %v649_v1 }
  0x1a   : > { %578 = vmatpush3.bf16.msra.mxu0 %v620_v4 }
  0x1b   : > { %579 = vmatprep.subr.bf16.mxu0 %v649_v1 }
  0x1e   : > { %580 = vmatpush3.bf16.msra.mxu0 %v621_v5 }
  0x1f   : > { %581 = vmatprep.subr.bf16.mxu0 %v649_v1 }
  0x22   : > { %582 = vmatpush3.bf16.msra.mxu0 %v622_v6 }
  0x23   : > { %583 = vmatprep.subr.bf16.mxu0 %v649_v1 }
  0x26   : > { %584 = vmatpush3.bf16.msra.mxu0 %v623_v7 }
  0x27   : > { %585 = vmatprep.subr.bf16.mxu0 %v649_v1 }
  0x2a   : > { %586 = vmatpush3.bf16.msra.mxu0 %v624_v8 }
  0x2d   : > { %588 = vmatmul.mubr.bf16.vlgmr.msra.gmra.mxu0 %v262_v9 }
  0xed   : > { %v361_v10 = vpop.f32.mrf.mxu0 }
  0xee   : > { %v367_v11 = vpack.c.bf16 %v361_v10, %v361_v10  ;;  %v370_v12 = vsel %vm369_vm1, %v361_v10, 0.0  ;;  %v378_v13 = vmul.f32 %v361_v10, %v361_v10 }
  0xef   : > { %v371_v14 = vrot.slane %v370_v12, 4  ;;  %v589_v15 = vpop.f32.mrf.mxu0 }
  0xf0   : > { %368 = vst [vmem:[%s246_s19] sm:$0x3] %v367_v11  ;;  %v379_v16 = vsel %vm369_vm1, %v378_v13, 0.0 }
  0xf1   : > { %v372_v17 = vadd.f32 %v371_v14, %v370_v12  ;;  %v380_v18 = vrot.slane %v379_v16, 4  ;;  %v364_v19 = vpop.f32.mrf.mxu0 }
  0xf3   : > { %v373_v20 = vrot.slane %v372_v17, 2  ;;  %v381_v21 = vadd.f32 %v380_v18, %v379_v16  ;;  %v590_v22 = vpop.f32.mrf.mxu0 }
  0xf5   : > { %v374_v23 = vadd.f32 %v373_v20, %v372_v17  ;;  %v382_v24 = vrot.slane %v381_v21, 2 }
  0xf7   : > { %v375_v25 = vrot.slane %v374_v23, 1  ;;  %v383_v26 = vadd.f32 %v382_v24, %v381_v21 }
  0xf9   : > { %v376_v27 = vadd.f32 %v375_v25, %v374_v23  ;;  %v384_v28 = vrot.slane %v383_v26, 1 }
  0xfb   : > { %377 = vst [vmem:[%s253_s23] sm:$0xff] %v376_v27  ;;  %v385_v29 = vadd.f32 %v384_v28, %v383_v26 }
  0xfd   : > { %386 = vst [vmem:[%s260_s26] sm:$0xff] %v385_v29 }
  0xfe PF: > { %s15_s17 = sadd.s32 1, %s647_s17   ;;  %s752_s15 = smov %s643_s16 }
  0xff   : > { %p12_p5 = scmp.ge.s32.totalorder %s15_s17, 4   ;;  %s753_s16 = smov %s755_s18 }
 0x101   :  { %14 = sbr.rel (!%p12_p5) target bundleno = 2 (0x2), region = 82 }

// kernel: _lambda_.55
= control target key start
LH: loop header
LB: loop body
LE: loop exit
PB: predicated region body
PF: predicated region fallthrough
CT: control target
= control target key end

     0   :  { %s375_s12 = smov 0   ;;  %s377_s13 = smov 0   ;;  %s411_s0 = inlined_call_operand.vmem [shape: bf16[2,4,128], index: 0, kind: input, shape index: {}]   ;;  %s412_s1 = inlined_call_operand.vmem [shape: f32[1,128], index: 1, kind: input, shape index: {}]   ;;  %s413_s2 = inlined_call_operand.vmem [shape: f32[1,128], index: 2, kind: input, shape index: {}]   ;;  %s414_s3 = inlined_call_operand.vmem [shape: bf16[2,4,128], index: 3, kind: output, shape index: {}]  }
   0x1   :  { %s379_s14 = smov 0  }
   0x2 LB: > { %s25_s15 = sadd.s32 1, %s349_s13  ;;  %p300_p0 = scmp.ge.s32.totalorder %s353_s14, 1  ;;  %s353_s14 = sphi %s379_s14, %s13_s14   ;;  %s349_s13 = sphi %s377_s13, %s416_s13   ;;  %s345_s12 = sphi %s375_s12, %s415_s12  }
   0x3   : > { %p27_p1 = scmp.ge.s32.totalorder %s25_s15, 2  ;;  %p155_p2 = scmp.lt.s32.totalorder %s353_s14, 3 }
   0x5   : > { %s418_s15 = smov (%p27_p1, %s25_s15), 0  ;;  %p156_p3 = pnand %p300_p0, %p155_p2 }
   0x6   : > { %p183_p4 = scmp.lt.s32.totalorder (!%p156_p3), %s345_s12, 1 }
   0x7   : > { %159 = sbr.rel (%p156_p3) target bundleno = 35 (0x23), region = 32 }
   0xc   : > { %s420_s12 = smov (!%p183_p4, %s345_s12), 1  ;;  %v303_v1 = vld [vmem:[%s412_s1] ss:$0 sm:$0xff] }
   0xd   : > { %s301_s16 = sshll.u32 %s420_s12, 1  ;;  %v304_v3 = vld [vmem:[%s413_s2] ss:$0 sm:$0xff] }
   0xe   : > { %s189_s19 = scalar_lea.vmem %s411_s0, %s301_s16  ;;  %s196_s26 = scalar_lea.vmem %s414_s3, %s301_s16 }
   0xf   : > { %v197_v0 = vld [vmem:[%s189_s19] sm:$0x3] }
  0x10   : > { %v198_v2 = vunpack.c.l.bf16 %v197_v0 }
  0x12   : > { %v206_v4 = vmul.f32 %v303_v1, %v198_v2 }
  0x14   : > { %v214_v5 = vadd.f32 %v304_v3, %v206_v4 }
  0x16   : > { %v215_v6 = vadd.f32 3.0, %v214_v5 }
  0x18   : > { %v216_v7 = vmax.f32 %v215_v6, 0.0 }
  0x1a   : > { %v217_v8 = vmin.f32 %v216_v7, 6.0 }
  0x1c   : > { %v218_v9 = vmul.f32 %v217_v8, %v214_v5 }
  0x1e   : > { %v219_v10 = vmul.f32 0.16666667, %v218_v9 }
  0x20   : > { %v220_v11 = vpack.c.bf16 %v219_v10, %v219_v10 }
  0x22   : > { %221 = vst [vmem:[%s196_s26] sm:$0x3] %v220_v11 }
  0x23 PF: > { %s13_s14 = sadd.s32 1, %s353_s14   ;;  %s415_s12 = smov %s349_s13 }
  0x24   : > { %p10_p5 = scmp.ge.s32.totalorder %s13_s14, 4   ;;  %s416_s13 = smov %s418_s15 }
  0x26   :  { %12 = sbr.rel (!%p10_p5) target bundleno = 2 (0x2), region = 62 }

</bundles_post_ra>
